<compile_context>
chip_gen: v7x
topology: tpu7x:2x2x1
jax: 0.10.0
libtpu: 0.0.40
codegen_flags: <defaults>
</compile_context>

<pallas_src>
import jax
import jax.numpy as jnp
import numpy as np
from jax import lax
from jax.experimental import pallas as pl
from jax.experimental.pallas import tpu as pltpu

jax.config.update("jax_default_matmul_precision", "highest")


# ----------------------------- fused RCNN kernel ----------------------------
def rcnn_kernel(xs_ref, emb_ref, wih_ref, whh_ref, b_ref,
                wc_ref, bc_ref, wf_ref, bf_ref, out_ref, hs_ref):
    # xs_ref : (S, BP, E) stacked LSTM inputs, seq-first.
    #          rows 0..B-1  : left-context (fwd dir), sample b
    #          rows B..2B-1 : reversed right-context (bwd dir), sample B-1-j (pre-flipped)
    #          rows 2B..BP-1: zero padding to a full 8-sublane tile
    # emb_ref: (S, B, E)   embeddings, seq-first (middle channels of the concat)
    # wih_ref: (E, 4H)  whh_ref: (H, 4H)  b_ref: (1, 4H)   (i|f|g|o gate order)
    # wc_ref : (K*C, F) im2col conv weight (C = 2H+E) ; bc_ref: (1, F)
    # wf_ref : (F, NC) ; bf_ref: (1, NC) ; out_ref: (B, NC)
    # hs_ref : (S, BP, H) scratch: per-step hidden states of both directions.
    S, BP, E = xs_ref.shape
    B = emb_ref.shape[1]
    H = whh_ref.shape[0]
    C = 2 * H + E
    K = wc_ref.shape[0] // C
    L = S - K + 1

    # ---- hoisted input projection: one MXU contraction for all steps & directions ----
    gi = lax.dot_general(
        xs_ref[...], wih_ref[...],
        dimension_numbers=(((2,), (0,)), ((), ())),
        preferred_element_type=jnp.float32) + b_ref[...]            # (S, BP, 4H)

    whh = whh_ref[...]                                              # hoist weight load

    # ---- fused fwd+bwd recurrence; h/c live in vregs, one matmul per step ----
    h = jnp.zeros((BP, H), jnp.float32)
    c = jnp.zeros((BP, H), jnp.float32)
    for t in range(S):               # static unroll: S is small, all indices static
        gates = gi[t] + jnp.dot(h, whh, preferred_element_type=jnp.float32)  # (BP, 4H)
        i_g = jax.nn.sigmoid(gates[:, 0 * H:1 * H])
        f_g = jax.nn.sigmoid(gates[:, 1 * H:2 * H])
        g_g = jnp.tanh(gates[:, 2 * H:3 * H])
        o_g = jax.nn.sigmoid(gates[:, 3 * H:4 * H])
        c = f_g * c + i_g * g_g
        h = o_g * jnp.tanh(c)
        hs_ref[t] = h                # off the critical path; consumed after the loop

    # ---- concat layout (fwd | embed | bwd), seq-first, C lanes, VMEM-resident ----
    hs = hs_ref[...]                                                # (S, BP, H)
    cat = jnp.concatenate(
        [hs[:, 0:B, :], emb_ref[...], hs[:, B:2 * B, :]], axis=2)   # (S, B, C)

    # ---- conv1d as a single im2col contraction + tanh + max over positions + fc ----
    xim = jnp.concatenate([cat[k:k + L] for k in range(K)], axis=2)  # (L, B, K*C)
    conv = lax.dot_general(
        xim, wc_ref[...],
        dimension_numbers=(((2,), (0,)), ((), ())),
        preferred_element_type=jnp.float32)                          # (L, B, F)
    act = jnp.tanh(conv + bc_ref[...])
    pooled = jnp.max(act, axis=0)                                    # (B, F)
    out_ref[...] = (jnp.dot(pooled, wf_ref[...], preferred_element_type=jnp.float32)
                    + bf_ref[...])


def rcnn_fused_pallas(xs, emb_sbe, w_ih_t, w_hh_t, b_row, conv_w_2d, conv_b_row,
                      fc_w_t, fc_b_row):
    S, BP, _ = xs.shape
    B = emb_sbe.shape[1]
    H = w_hh_t.shape[0]
    n_classes = fc_w_t.shape[1]
    return pl.pallas_call(
        rcnn_kernel,
        out_shape=jax.ShapeDtypeStruct((B, n_classes), jnp.float32),
        in_specs=[pl.BlockSpec(memory_space=pltpu.MemorySpace.VMEM)] * 9,
        out_specs=pl.BlockSpec(memory_space=pltpu.MemorySpace.VMEM),
        scratch_shapes=[pltpu.VMEM((S, BP, H), jnp.float32)],
    )(xs, emb_sbe, w_ih_t, w_hh_t, b_row, conv_w_2d, conv_b_row, fc_w_t, fc_b_row)


# ------------------------------ full forward --------------------------------
def rcnn_forward(x_tokens, params):
    emb_matrix = params["emb_matrix"]
    B, S = x_tokens.shape
    E = emb_matrix.shape[1]

    # Embedding gather stays a single XLA op (data-dependent gather, tiny table).
    embed = jnp.take(emb_matrix, x_tokens, axis=0)        # (B, S, E)
    emb_sbe = jnp.transpose(embed, (1, 0, 2))             # (S, B, E)

    # Stacked seq-first LSTM input for both directions (~2 KB prep; fused by XLA):
    #   fwd rows: left_context[t]  = embed[:, t-1]                        (zeros at t=0)
    #   bwd rows: reversed right_context, batch pre-flipped = embed[B-1-j, S-t]
    zrow = jnp.zeros((1, B, E), embed.dtype)
    fwd_in = jnp.concatenate([zrow, emb_sbe[:-1]], axis=0)
    bwd_in = jnp.concatenate([zrow, emb_sbe[:0:-1, ::-1, :]], axis=0)
    bp = max(8, ((2 * B + 7) // 8) * 8)                   # pad stacked batch to 8 sublanes
    pad = jnp.zeros((S, bp - 2 * B, E), embed.dtype)
    xs = jnp.concatenate([fwd_in, bwd_in, pad], axis=1)   # (S, BP, E)

    return rcnn_fused_pallas(
        xs, emb_sbe,
        params["lstm_w_ih_t"], params["lstm_w_hh_t"], params["lstm_b_row"],
        params["conv_w_2d"], params["conv_b_row"],
        params["fc_w_t"], params["fc_b_row"])


# --------------------------- pure-JAX reference ------------------------------
def rcnn_reference(x_tokens, params):
    """Mirror of the PyTorch module (eval mode), incl. the torch.flip(bwd,[1]) quirk."""
    emb = jnp.take(params["emb_matrix"], x_tokens, axis=0)          # (B, S, E)
    B, S, E = emb.shape
    w_ih_t, w_hh_t, b = params["lstm_w_ih_t"], params["lstm_w_hh_t"], params["lstm_b_row"]
    H = w_hh_t.shape[0]

    left = jnp.pad(emb, ((0, 0), (1, 0), (0, 0)))[:, :-1, :]
    right = jnp.pad(emb, ((0, 0), (0, 1), (0, 0)))[:, 1:, :]

    def lstm(x_sbe):
        def step(carry, x_t):
            h, c = carry
            g = x_t @ w_ih_t + h @ w_hh_t + b
            i = jax.nn.sigmoid(g[:, 0 * H:1 * H])
            f = jax.nn.sigmoid(g[:, 1 * H:2 * H])
            gg = jnp.tanh(g[:, 2 * H:3 * H])
            o = jax.nn.sigmoid(g[:, 3 * H:4 * H])
            c = f * c + i * gg
            h = o * jnp.tanh(c)
            return (h, c), h
        nb = x_sbe.shape[1]
        init = (jnp.zeros((nb, H), jnp.float32), jnp.zeros((nb, H), jnp.float32))
        _, hs = lax.scan(step, init, x_sbe)
        return hs                                                    # (S, B, H)

    fwd = lstm(jnp.transpose(left, (1, 0, 2)))
    bwd = lstm(jnp.transpose(jnp.flip(right, axis=1), (1, 0, 2)))
    bwd = jnp.flip(bwd, axis=1)                 # torch.flip(bwd, [1]) == batch-axis flip
    fwd = jnp.transpose(fwd, (1, 0, 2))
    bwd = jnp.transpose(bwd, (1, 0, 2))
    cat = jnp.concatenate([fwd, emb, bwd], axis=2)                   # (B, S, C)

    C = cat.shape[2]
    K = params["conv_w_2d"].shape[0] // C
    L = S - K + 1
    xim = jnp.concatenate([cat[:, k:k + L, :] for k in range(K)], axis=2)
    conv = jnp.einsum("blc,cf->blf", xim, params["conv_w_2d"]) + params["conv_b_row"]
    act = jnp.tanh(conv)
    pooled = jnp.max(act, axis=1)
    return pooled @ params["fc_w_t"] + params["fc_b_row"]


# ------------------------------ parameter init -------------------------------
def init_params(key, vocab_size, embed_size, hidden_size, n_filters, filter_size,
                n_classes=6):
    E, H, F, K = embed_size, hidden_size, n_filters, filter_size
    C = 2 * H + E
    ks = jax.random.split(key, 7)
    emb_matrix = jax.random.normal(ks[0], (vocab_size, E), jnp.float32) * 0.1
    w_ih = jax.random.normal(ks[1], (4 * H, E), jnp.float32) * 0.1   # PyTorch layout
    w_hh = jax.random.normal(ks[2], (4 * H, H), jnp.float32) * 0.1
    b_ih = jax.random.normal(ks[3], (4 * H,), jnp.float32) * 0.1
    b_hh = jax.random.normal(ks[4], (4 * H,), jnp.float32) * 0.1
    conv_w = jax.random.normal(ks[5], (F, C, K), jnp.float32) * 0.1  # PyTorch (out,in,k)
    conv_b = jnp.linspace(-0.05, 0.05, F, dtype=jnp.float32)
    fc_w = jax.random.normal(ks[6], (n_classes, F), jnp.float32) * 0.1
    fc_b = jnp.linspace(-0.05, 0.05, n_classes, dtype=jnp.float32)
    return {
        "emb_matrix": emb_matrix,
        "lstm_w_ih_t": w_ih.T,                                       # (E, 4H)
        "lstm_w_hh_t": w_hh.T,                                       # (H, 4H)
        "lstm_b_row": (b_ih + b_hh)[None, :],                        # (1, 4H)
        "conv_w_2d": jnp.transpose(conv_w, (2, 1, 0)).reshape(K * C, F),  # (K*C, F)
        "conv_b_row": conv_b[None, :],                               # (1, F)
        "fc_w_t": fc_w.T,                                            # (F, NC)
        "fc_b_row": fc_b[None, :],                                   # (1, NC)
    }


if __name__ == "__main__":
    B, S = 2, 8
    vocab_size, embed_size = 100, 64
    hidden_size, n_filters, filter_size = 32, 64, 3   # C = 2H+E = 128 lanes, 4H = 128

    key = jax.random.PRNGKey(0)
    k_tok, k_par = jax.random.split(key)
    x = jax.random.randint(k_tok, (B, S), 0, vocab_size, dtype=jnp.int32)
    params = init_params(k_par, vocab_size, embed_size, hidden_size,
                         n_filters, filter_size)

    out = jax.jit(rcnn_forward)(x, params)
    jax.block_until_ready(out)
    assert out.shape == (B, 6) and out.dtype == jnp.float32

    ref = jax.jit(rcnn_reference)(x, params)
    jax.block_until_ready(ref)
    np.testing.assert_allclose(np.asarray(out), np.asarray(ref), rtol=2e-2, atol=2e-2)

    print("KERNEL_OK")
</pallas_src>

<mosaic_0001>
module attributes {stable_mosaic.version = 11 : i64} {
  func.func @rcnn_kernel(%arg0: memref<8x8x64xf32, #tpu.memory_space<vmem>>, %arg1: memref<8x2x64xf32, #tpu.memory_space<vmem>>, %arg2: memref<64x128xf32, #tpu.memory_space<vmem>>, %arg3: memref<32x128xf32, #tpu.memory_space<vmem>>, %arg4: memref<1x128xf32, #tpu.memory_space<vmem>>, %arg5: memref<384x64xf32, #tpu.memory_space<vmem>>, %arg6: memref<1x64xf32, #tpu.memory_space<vmem>>, %arg7: memref<64x6xf32, #tpu.memory_space<vmem>>, %arg8: memref<1x6xf32, #tpu.memory_space<vmem>>, %arg9: memref<2x6xf32, #tpu.memory_space<vmem>>, %arg10: memref<8x8x32xf32, #tpu.memory_space<vmem>>) attributes {dimension_semantics = [], scalar_prefetch = 0 : i64, scratch_operands = 1 : i64, tpu.core_type = #tpu.core_type<tc>} {
    %c0 = arith.constant 0 : index
    %c0_0 = arith.constant 0 : index
    %c0_1 = arith.constant 0 : index
    %0 = vector.load %arg0[%c0, %c0_0, %c0_1] : memref<8x8x64xf32, #tpu.memory_space<vmem>>, vector<8x8x64xf32>
    %c0_2 = arith.constant 0 : index
    %c0_3 = arith.constant 0 : index
    %1 = vector.load %arg2[%c0_2, %c0_3] : memref<64x128xf32, #tpu.memory_space<vmem>>, vector<64x128xf32>
    %cst = arith.constant dense<0.000000e+00> : vector<8x8x128xf32>
    %2 = tpu.matmul %0, %1, %cst {dimension_numbers = #tpu.dot_dimension_numbers<[2], [0], [0, 1], [1], [0, 0, 0, 1, 1, 1], [], []>, precision = #tpu.contract_precision<fp32>} : vector<8x8x64xf32>, vector<64x128xf32>, vector<8x8x128xf32> -> vector<8x8x128xf32>
    %c0_4 = arith.constant 0 : index
    %c0_5 = arith.constant 0 : index
    %3 = vector.load %arg4[%c0_4, %c0_5] : memref<1x128xf32, #tpu.memory_space<vmem>>, vector<1x128xf32>
    %4 = vector.shape_cast %3 : vector<1x128xf32> to vector<1x1x128xf32>
    %5 = vector.broadcast %4 : vector<1x1x128xf32> to vector<8x8x128xf32>
    %6 = arith.addf %2, %5 : vector<8x8x128xf32>
    %c0_6 = arith.constant 0 : index
    %c0_7 = arith.constant 0 : index
    %7 = vector.load %arg3[%c0_6, %c0_7] : memref<32x128xf32, #tpu.memory_space<vmem>>, vector<32x128xf32>
    %cst_8 = arith.constant 0.000000e+00 : f32
    %8 = vector.broadcast %cst_8 : f32 to vector<8x32xf32>
    %cst_9 = arith.constant 0.000000e+00 : f32
    %9 = vector.broadcast %cst_9 : f32 to vector<8x32xf32>
    %10 = vector.extract_strided_slice %6 {offsets = [0, 0, 0], sizes = [1, 8, 128], strides = [1, 1, 1]} : vector<8x8x128xf32> to vector<1x8x128xf32>
    %11 = vector.shape_cast %10 : vector<1x8x128xf32> to vector<8x128xf32>
    %cst_10 = arith.constant dense<0.000000e+00> : vector<8x128xf32>
    %12 = tpu.matmul %8, %7, %cst_10 {dimension_numbers = #tpu.dot_dimension_numbers<[1], [0], [0], [1], [0, 0, 1, 1], [], []>, precision = #tpu.contract_precision<fp32>} : vector<8x32xf32>, vector<32x128xf32>, vector<8x128xf32> -> vector<8x128xf32>
    %13 = arith.addf %11, %12 : vector<8x128xf32>
    %14 = vector.extract_strided_slice %13 {offsets = [0, 0], sizes = [8, 32], strides = [1, 1]} : vector<8x128xf32> to vector<8x32xf32>
    %15 = arith.negf %14 : vector<8x32xf32>
    %16 = math.exp %15 : vector<8x32xf32>
    %cst_11 = arith.constant 1.000000e+00 : f32
    %17 = vector.broadcast %cst_11 : f32 to vector<8x32xf32>
    %18 = arith.addf %17, %16 : vector<8x32xf32>
    %19 = arith.divf %17, %18 : vector<8x32xf32>
    %20 = vector.extract_strided_slice %13 {offsets = [0, 32], sizes = [8, 32], strides = [1, 1]} : vector<8x128xf32> to vector<8x32xf32>
    %21 = arith.negf %20 : vector<8x32xf32>
    %22 = math.exp %21 : vector<8x32xf32>
    %cst_12 = arith.constant 1.000000e+00 : f32
    %23 = vector.broadcast %cst_12 : f32 to vector<8x32xf32>
    %24 = arith.addf %23, %22 : vector<8x32xf32>
    %25 = arith.divf %23, %24 : vector<8x32xf32>
    %26 = vector.extract_strided_slice %13 {offsets = [0, 64], sizes = [8, 32], strides = [1, 1]} : vector<8x128xf32> to vector<8x32xf32>
    %27 = math.tanh %26 : vector<8x32xf32>
    %28 = vector.extract_strided_slice %13 {offsets = [0, 96], sizes = [8, 32], strides = [1, 1]} : vector<8x128xf32> to vector<8x32xf32>
    %29 = arith.negf %28 : vector<8x32xf32>
    %30 = math.exp %29 : vector<8x32xf32>
    %cst_13 = arith.constant 1.000000e+00 : f32
    %31 = vector.broadcast %cst_13 : f32 to vector<8x32xf32>
    %32 = arith.addf %31, %30 : vector<8x32xf32>
    %33 = arith.divf %31, %32 : vector<8x32xf32>
    %34 = arith.mulf %25, %9 : vector<8x32xf32>
    %35 = arith.mulf %19, %27 : vector<8x32xf32>
    %36 = arith.addf %34, %35 : vector<8x32xf32>
    %37 = math.tanh %36 : vector<8x32xf32>
    %38 = arith.mulf %33, %37 : vector<8x32xf32>
    %c0_14 = arith.constant 0 : index
    %c0_15 = arith.constant 0 : index
    %c0_16 = arith.constant 0 : index
    %39 = vector.load %arg10[%c0_14, %c0_15, %c0_16] : memref<8x8x32xf32, #tpu.memory_space<vmem>>, vector<1x8x32xf32>
    %40 = vector.shape_cast %39 : vector<1x8x32xf32> to vector<8x32xf32>
    %41 = vector.shape_cast %38 : vector<8x32xf32> to vector<1x8x32xf32>
    tpu.vector_store %arg10[%c0_14, %c0_15, %c0_16], %41 {strides = array<i32>} : memref<8x8x32xf32, #tpu.memory_space<vmem>>, vector<1x8x32xf32>,
    %42 = vector.extract_strided_slice %6 {offsets = [1, 0, 0], sizes = [1, 8, 128], strides = [1, 1, 1]} : vector<8x8x128xf32> to vector<1x8x128xf32>
    %43 = vector.shape_cast %42 : vector<1x8x128xf32> to vector<8x128xf32>
    %cst_17 = arith.constant dense<0.000000e+00> : vector<8x128xf32>
    %44 = tpu.matmul %38, %7, %cst_17 {dimension_numbers = #tpu.dot_dimension_numbers<[1], [0], [0], [1], [0, 0, 1, 1], [], []>, precision = #tpu.contract_precision<fp32>} : vector<8x32xf32>, vector<32x128xf32>, vector<8x128xf32> -> vector<8x128xf32>
    %45 = arith.addf %43, %44 : vector<8x128xf32>
    %46 = vector.extract_strided_slice %45 {offsets = [0, 0], sizes = [8, 32], strides = [1, 1]} : vector<8x128xf32> to vector<8x32xf32>
    %47 = arith.negf %46 : vector<8x32xf32>
    %48 = math.exp %47 : vector<8x32xf32>
    %cst_18 = arith.constant 1.000000e+00 : f32
    %49 = vector.broadcast %cst_18 : f32 to vector<8x32xf32>
    %50 = arith.addf %49, %48 : vector<8x32xf32>
    %51 = arith.divf %49, %50 : vector<8x32xf32>
    %52 = vector.extract_strided_slice %45 {offsets = [0, 32], sizes = [8, 32], strides = [1, 1]} : vector<8x128xf32> to vector<8x32xf32>
    %53 = arith.negf %52 : vector<8x32xf32>
    %54 = math.exp %53 : vector<8x32xf32>
    %cst_19 = arith.constant 1.000000e+00 : f32
    %55 = vector.broadcast %cst_19 : f32 to vector<8x32xf32>
    %56 = arith.addf %55, %54 : vector<8x32xf32>
    %57 = arith.divf %55, %56 : vector<8x32xf32>
    %58 = vector.extract_strided_slice %45 {offsets = [0, 64], sizes = [8, 32], strides = [1, 1]} : vector<8x128xf32> to vector<8x32xf32>
    %59 = math.tanh %58 : vector<8x32xf32>
    %60 = vector.extract_strided_slice %45 {offsets = [0, 96], sizes = [8, 32], strides = [1, 1]} : vector<8x128xf32> to vector<8x32xf32>
    %61 = arith.negf %60 : vector<8x32xf32>
    %62 = math.exp %61 : vector<8x32xf32>
    %cst_20 = arith.constant 1.000000e+00 : f32
    %63 = vector.broadcast %cst_20 : f32 to vector<8x32xf32>
    %64 = arith.addf %63, %62 : vector<8x32xf32>
    %65 = arith.divf %63, %64 : vector<8x32xf32>
    %66 = arith.mulf %57, %36 : vector<8x32xf32>
    %67 = arith.mulf %51, %59 : vector<8x32xf32>
    %68 = arith.addf %66, %67 : vector<8x32xf32>
    %69 = math.tanh %68 : vector<8x32xf32>
    %70 = arith.mulf %65, %69 : vector<8x32xf32>
    %c1 = arith.constant 1 : index
    %c0_21 = arith.constant 0 : index
    %c0_22 = arith.constant 0 : index
    %71 = vector.load %arg10[%c1, %c0_21, %c0_22] : memref<8x8x32xf32, #tpu.memory_space<vmem>>, vector<1x8x32xf32>
    %72 = vector.shape_cast %71 : vector<1x8x32xf32> to vector<8x32xf32>
    %73 = vector.shape_cast %70 : vector<8x32xf32> to vector<1x8x32xf32>
    tpu.vector_store %arg10[%c1, %c0_21, %c0_22], %73 {strides = array<i32>} : memref<8x8x32xf32, #tpu.memory_space<vmem>>, vector<1x8x32xf32>,
    %74 = vector.extract_strided_slice %6 {offsets = [2, 0, 0], sizes = [1, 8, 128], strides = [1, 1, 1]} : vector<8x8x128xf32> to vector<1x8x128xf32>
    %75 = vector.shape_cast %74 : vector<1x8x128xf32> to vector<8x128xf32>
    %cst_23 = arith.constant dense<0.000000e+00> : vector<8x128xf32>
    %76 = tpu.matmul %70, %7, %cst_23 {dimension_numbers = #tpu.dot_dimension_numbers<[1], [0], [0], [1], [0, 0, 1, 1], [], []>, precision = #tpu.contract_precision<fp32>} : vector<8x32xf32>, vector<32x128xf32>, vector<8x128xf32> -> vector<8x128xf32>
    %77 = arith.addf %75, %76 : vector<8x128xf32>
    %78 = vector.extract_strided_slice %77 {offsets = [0, 0], sizes = [8, 32], strides = [1, 1]} : vector<8x128xf32> to vector<8x32xf32>
    %79 = arith.negf %78 : vector<8x32xf32>
    %80 = math.exp %79 : vector<8x32xf32>
    %cst_24 = arith.constant 1.000000e+00 : f32
    %81 = vector.broadcast %cst_24 : f32 to vector<8x32xf32>
    %82 = arith.addf %81, %80 : vector<8x32xf32>
    %83 = arith.divf %81, %82 : vector<8x32xf32>
    %84 = vector.extract_strided_slice %77 {offsets = [0, 32], sizes = [8, 32], strides = [1, 1]} : vector<8x128xf32> to vector<8x32xf32>
    %85 = arith.negf %84 : vector<8x32xf32>
    %86 = math.exp %85 : vector<8x32xf32>
    %cst_25 = arith.constant 1.000000e+00 : f32
    %87 = vector.broadcast %cst_25 : f32 to vector<8x32xf32>
    %88 = arith.addf %87, %86 : vector<8x32xf32>
    %89 = arith.divf %87, %88 : vector<8x32xf32>
    %90 = vector.extract_strided_slice %77 {offsets = [0, 64], sizes = [8, 32], strides = [1, 1]} : vector<8x128xf32> to vector<8x32xf32>
    %91 = math.tanh %90 : vector<8x32xf32>
    %92 = vector.extract_strided_slice %77 {offsets = [0, 96], sizes = [8, 32], strides = [1, 1]} : vector<8x128xf32> to vector<8x32xf32>
    %93 = arith.negf %92 : vector<8x32xf32>
    %94 = math.exp %93 : vector<8x32xf32>
    %cst_26 = arith.constant 1.000000e+00 : f32
    %95 = vector.broadcast %cst_26 : f32 to vector<8x32xf32>
    %96 = arith.addf %95, %94 : vector<8x32xf32>
    %97 = arith.divf %95, %96 : vector<8x32xf32>
    %98 = arith.mulf %89, %68 : vector<8x32xf32>
    %99 = arith.mulf %83, %91 : vector<8x32xf32>
    %100 = arith.addf %98, %99 : vector<8x32xf32>
    %101 = math.tanh %100 : vector<8x32xf32>
    %102 = arith.mulf %97, %101 : vector<8x32xf32>
    %c2 = arith.constant 2 : index
    %c0_27 = arith.constant 0 : index
    %c0_28 = arith.constant 0 : index
    %103 = vector.load %arg10[%c2, %c0_27, %c0_28] : memref<8x8x32xf32, #tpu.memory_space<vmem>>, vector<1x8x32xf32>
    %104 = vector.shape_cast %103 : vector<1x8x32xf32> to vector<8x32xf32>
    %105 = vector.shape_cast %102 : vector<8x32xf32> to vector<1x8x32xf32>
    tpu.vector_store %arg10[%c2, %c0_27, %c0_28], %105 {strides = array<i32>} : memref<8x8x32xf32, #tpu.memory_space<vmem>>, vector<1x8x32xf32>,
    %106 = vector.extract_strided_slice %6 {offsets = [3, 0, 0], sizes = [1, 8, 128], strides = [1, 1, 1]} : vector<8x8x128xf32> to vector<1x8x128xf32>
    %107 = vector.shape_cast %106 : vector<1x8x128xf32> to vector<8x128xf32>
    %cst_29 = arith.constant dense<0.000000e+00> : vector<8x128xf32>
    %108 = tpu.matmul %102, %7, %cst_29 {dimension_numbers = #tpu.dot_dimension_numbers<[1], [0], [0], [1], [0, 0, 1, 1], [], []>, precision = #tpu.contract_precision<fp32>} : vector<8x32xf32>, vector<32x128xf32>, vector<8x128xf32> -> vector<8x128xf32>
    %109 = arith.addf %107, %108 : vector<8x128xf32>
    %110 = vector.extract_strided_slice %109 {offsets = [0, 0], sizes = [8, 32], strides = [1, 1]} : vector<8x128xf32> to vector<8x32xf32>
    %111 = arith.negf %110 : vector<8x32xf32>
    %112 = math.exp %111 : vector<8x32xf32>
    %cst_30 = arith.constant 1.000000e+00 : f32
    %113 = vector.broadcast %cst_30 : f32 to vector<8x32xf32>
    %114 = arith.addf %113, %112 : vector<8x32xf32>
    %115 = arith.divf %113, %114 : vector<8x32xf32>
    %116 = vector.extract_strided_slice %109 {offsets = [0, 32], sizes = [8, 32], strides = [1, 1]} : vector<8x128xf32> to vector<8x32xf32>
    %117 = arith.negf %116 : vector<8x32xf32>
    %118 = math.exp %117 : vector<8x32xf32>
    %cst_31 = arith.constant 1.000000e+00 : f32
    %119 = vector.broadcast %cst_31 : f32 to vector<8x32xf32>
    %120 = arith.addf %119, %118 : vector<8x32xf32>
    %121 = arith.divf %119, %120 : vector<8x32xf32>
    %122 = vector.extract_strided_slice %109 {offsets = [0, 64], sizes = [8, 32], strides = [1, 1]} : vector<8x128xf32> to vector<8x32xf32>
    %123 = math.tanh %122 : vector<8x32xf32>
    %124 = vector.extract_strided_slice %109 {offsets = [0, 96], sizes = [8, 32], strides = [1, 1]} : vector<8x128xf32> to vector<8x32xf32>
    %125 = arith.negf %124 : vector<8x32xf32>
    %126 = math.exp %125 : vector<8x32xf32>
    %cst_32 = arith.constant 1.000000e+00 : f32
    %127 = vector.broadcast %cst_32 : f32 to vector<8x32xf32>
    %128 = arith.addf %127, %126 : vector<8x32xf32>
    %129 = arith.divf %127, %128 : vector<8x32xf32>
    %130 = arith.mulf %121, %100 : vector<8x32xf32>
    %131 = arith.mulf %115, %123 : vector<8x32xf32>
    %132 = arith.addf %130, %131 : vector<8x32xf32>
    %133 = math.tanh %132 : vector<8x32xf32>
    %134 = arith.mulf %129, %133 : vector<8x32xf32>
    %c3 = arith.constant 3 : index
    %c0_33 = arith.constant 0 : index
    %c0_34 = arith.constant 0 : index
    %135 = vector.load %arg10[%c3, %c0_33, %c0_34] : memref<8x8x32xf32, #tpu.memory_space<vmem>>, vector<1x8x32xf32>
    %136 = vector.shape_cast %135 : vector<1x8x32xf32> to vector<8x32xf32>
    %137 = vector.shape_cast %134 : vector<8x32xf32> to vector<1x8x32xf32>
    tpu.vector_store %arg10[%c3, %c0_33, %c0_34], %137 {strides = array<i32>} : memref<8x8x32xf32, #tpu.memory_space<vmem>>, vector<1x8x32xf32>,
    %138 = vector.extract_strided_slice %6 {offsets = [4, 0, 0], sizes = [1, 8, 128], strides = [1, 1, 1]} : vector<8x8x128xf32> to vector<1x8x128xf32>
    %139 = vector.shape_cast %138 : vector<1x8x128xf32> to vector<8x128xf32>
    %cst_35 = arith.constant dense<0.000000e+00> : vector<8x128xf32>
    %140 = tpu.matmul %134, %7, %cst_35 {dimension_numbers = #tpu.dot_dimension_numbers<[1], [0], [0], [1], [0, 0, 1, 1], [], []>, precision = #tpu.contract_precision<fp32>} : vector<8x32xf32>, vector<32x128xf32>, vector<8x128xf32> -> vector<8x128xf32>
    %141 = arith.addf %139, %140 : vector<8x128xf32>
    %142 = vector.extract_strided_slice %141 {offsets = [0, 0], sizes = [8, 32], strides = [1, 1]} : vector<8x128xf32> to vector<8x32xf32>
    %143 = arith.negf %142 : vector<8x32xf32>
    %144 = math.exp %143 : vector<8x32xf32>
    %cst_36 = arith.constant 1.000000e+00 : f32
    %145 = vector.broadcast %cst_36 : f32 to vector<8x32xf32>
    %146 = arith.addf %145, %144 : vector<8x32xf32>
    %147 = arith.divf %145, %146 : vector<8x32xf32>
    %148 = vector.extract_strided_slice %141 {offsets = [0, 32], sizes = [8, 32], strides = [1, 1]} : vector<8x128xf32> to vector<8x32xf32>
    %149 = arith.negf %148 : vector<8x32xf32>
    %150 = math.exp %149 : vector<8x32xf32>
    %cst_37 = arith.constant 1.000000e+00 : f32
    %151 = vector.broadcast %cst_37 : f32 to vector<8x32xf32>
    %152 = arith.addf %151, %150 : vector<8x32xf32>
    %153 = arith.divf %151, %152 : vector<8x32xf32>
    %154 = vector.extract_strided_slice %141 {offsets = [0, 64], sizes = [8, 32], strides = [1, 1]} : vector<8x128xf32> to vector<8x32xf32>
    %155 = math.tanh %154 : vector<8x32xf32>
    %156 = vector.extract_strided_slice %141 {offsets = [0, 96], sizes = [8, 32], strides = [1, 1]} : vector<8x128xf32> to vector<8x32xf32>
    %157 = arith.negf %156 : vector<8x32xf32>
    %158 = math.exp %157 : vector<8x32xf32>
    %cst_38 = arith.constant 1.000000e+00 : f32
    %159 = vector.broadcast %cst_38 : f32 to vector<8x32xf32>
    %160 = arith.addf %159, %158 : vector<8x32xf32>
    %161 = arith.divf %159, %160 : vector<8x32xf32>
    %162 = arith.mulf %153, %132 : vector<8x32xf32>
    %163 = arith.mulf %147, %155 : vector<8x32xf32>
    %164 = arith.addf %162, %163 : vector<8x32xf32>
    %165 = math.tanh %164 : vector<8x32xf32>
    %166 = arith.mulf %161, %165 : vector<8x32xf32>
    %c4 = arith.constant 4 : index
    %c0_39 = arith.constant 0 : index
    %c0_40 = arith.constant 0 : index
    %167 = vector.load %arg10[%c4, %c0_39, %c0_40] : memref<8x8x32xf32, #tpu.memory_space<vmem>>, vector<1x8x32xf32>
    %168 = vector.shape_cast %167 : vector<1x8x32xf32> to vector<8x32xf32>
    %169 = vector.shape_cast %166 : vector<8x32xf32> to vector<1x8x32xf32>
    tpu.vector_store %arg10[%c4, %c0_39, %c0_40], %169 {strides = array<i32>} : memref<8x8x32xf32, #tpu.memory_space<vmem>>, vector<1x8x32xf32>,
    %170 = vector.extract_strided_slice %6 {offsets = [5, 0, 0], sizes = [1, 8, 128], strides = [1, 1, 1]} : vector<8x8x128xf32> to vector<1x8x128xf32>
    %171 = vector.shape_cast %170 : vector<1x8x128xf32> to vector<8x128xf32>
    %cst_41 = arith.constant dense<0.000000e+00> : vector<8x128xf32>
    %172 = tpu.matmul %166, %7, %cst_41 {dimension_numbers = #tpu.dot_dimension_numbers<[1], [0], [0], [1], [0, 0, 1, 1], [], []>, precision = #tpu.contract_precision<fp32>} : vector<8x32xf32>, vector<32x128xf32>, vector<8x128xf32> -> vector<8x128xf32>
    %173 = arith.addf %171, %172 : vector<8x128xf32>
    %174 = vector.extract_strided_slice %173 {offsets = [0, 0], sizes = [8, 32], strides = [1, 1]} : vector<8x128xf32> to vector<8x32xf32>
    %175 = arith.negf %174 : vector<8x32xf32>
    %176 = math.exp %175 : vector<8x32xf32>
    %cst_42 = arith.constant 1.000000e+00 : f32
    %177 = vector.broadcast %cst_42 : f32 to vector<8x32xf32>
    %178 = arith.addf %177, %176 : vector<8x32xf32>
    %179 = arith.divf %177, %178 : vector<8x32xf32>
    %180 = vector.extract_strided_slice %173 {offsets = [0, 32], sizes = [8, 32], strides = [1, 1]} : vector<8x128xf32> to vector<8x32xf32>
    %181 = arith.negf %180 : vector<8x32xf32>
    %182 = math.exp %181 : vector<8x32xf32>
    %cst_43 = arith.constant 1.000000e+00 : f32
    %183 = vector.broadcast %cst_43 : f32 to vector<8x32xf32>
    %184 = arith.addf %183, %182 : vector<8x32xf32>
    %185 = arith.divf %183, %184 : vector<8x32xf32>
    %186 = vector.extract_strided_slice %173 {offsets = [0, 64], sizes = [8, 32], strides = [1, 1]} : vector<8x128xf32> to vector<8x32xf32>
    %187 = math.tanh %186 : vector<8x32xf32>
    %188 = vector.extract_strided_slice %173 {offsets = [0, 96], sizes = [8, 32], strides = [1, 1]} : vector<8x128xf32> to vector<8x32xf32>
    %189 = arith.negf %188 : vector<8x32xf32>
    %190 = math.exp %189 : vector<8x32xf32>
    %cst_44 = arith.constant 1.000000e+00 : f32
    %191 = vector.broadcast %cst_44 : f32 to vector<8x32xf32>
    %192 = arith.addf %191, %190 : vector<8x32xf32>
    %193 = arith.divf %191, %192 : vector<8x32xf32>
    %194 = arith.mulf %185, %164 : vector<8x32xf32>
    %195 = arith.mulf %179, %187 : vector<8x32xf32>
    %196 = arith.addf %194, %195 : vector<8x32xf32>
    %197 = math.tanh %196 : vector<8x32xf32>
    %198 = arith.mulf %193, %197 : vector<8x32xf32>
    %c5 = arith.constant 5 : index
    %c0_45 = arith.constant 0 : index
    %c0_46 = arith.constant 0 : index
    %199 = vector.load %arg10[%c5, %c0_45, %c0_46] : memref<8x8x32xf32, #tpu.memory_space<vmem>>, vector<1x8x32xf32>
    %200 = vector.shape_cast %199 : vector<1x8x32xf32> to vector<8x32xf32>
    %201 = vector.shape_cast %198 : vector<8x32xf32> to vector<1x8x32xf32>
    tpu.vector_store %arg10[%c5, %c0_45, %c0_46], %201 {strides = array<i32>} : memref<8x8x32xf32, #tpu.memory_space<vmem>>, vector<1x8x32xf32>,
    %202 = vector.extract_strided_slice %6 {offsets = [6, 0, 0], sizes = [1, 8, 128], strides = [1, 1, 1]} : vector<8x8x128xf32> to vector<1x8x128xf32>
    %203 = vector.shape_cast %202 : vector<1x8x128xf32> to vector<8x128xf32>
    %cst_47 = arith.constant dense<0.000000e+00> : vector<8x128xf32>
    %204 = tpu.matmul %198, %7, %cst_47 {dimension_numbers = #tpu.dot_dimension_numbers<[1], [0], [0], [1], [0, 0, 1, 1], [], []>, precision = #tpu.contract_precision<fp32>} : vector<8x32xf32>, vector<32x128xf32>, vector<8x128xf32> -> vector<8x128xf32>
    %205 = arith.addf %203, %204 : vector<8x128xf32>
    %206 = vector.extract_strided_slice %205 {offsets = [0, 0], sizes = [8, 32], strides = [1, 1]} : vector<8x128xf32> to vector<8x32xf32>
    %207 = arith.negf %206 : vector<8x32xf32>
    %208 = math.exp %207 : vector<8x32xf32>
    %cst_48 = arith.constant 1.000000e+00 : f32
    %209 = vector.broadcast %cst_48 : f32 to vector<8x32xf32>
    %210 = arith.addf %209, %208 : vector<8x32xf32>
    %211 = arith.divf %209, %210 : vector<8x32xf32>
    %212 = vector.extract_strided_slice %205 {offsets = [0, 32], sizes = [8, 32], strides = [1, 1]} : vector<8x128xf32> to vector<8x32xf32>
    %213 = arith.negf %212 : vector<8x32xf32>
    %214 = math.exp %213 : vector<8x32xf32>
    %cst_49 = arith.constant 1.000000e+00 : f32
    %215 = vector.broadcast %cst_49 : f32 to vector<8x32xf32>
    %216 = arith.addf %215, %214 : vector<8x32xf32>
    %217 = arith.divf %215, %216 : vector<8x32xf32>
    %218 = vector.extract_strided_slice %205 {offsets = [0, 64], sizes = [8, 32], strides = [1, 1]} : vector<8x128xf32> to vector<8x32xf32>
    %219 = math.tanh %218 : vector<8x32xf32>
    %220 = vector.extract_strided_slice %205 {offsets = [0, 96], sizes = [8, 32], strides = [1, 1]} : vector<8x128xf32> to vector<8x32xf32>
    %221 = arith.negf %220 : vector<8x32xf32>
    %222 = math.exp %221 : vector<8x32xf32>
    %cst_50 = arith.constant 1.000000e+00 : f32
    %223 = vector.broadcast %cst_50 : f32 to vector<8x32xf32>
    %224 = arith.addf %223, %222 : vector<8x32xf32>
    %225 = arith.divf %223, %224 : vector<8x32xf32>
    %226 = arith.mulf %217, %196 : vector<8x32xf32>
    %227 = arith.mulf %211, %219 : vector<8x32xf32>
    %228 = arith.addf %226, %227 : vector<8x32xf32>
    %229 = math.tanh %228 : vector<8x32xf32>
    %230 = arith.mulf %225, %229 : vector<8x32xf32>
    %c6 = arith.constant 6 : index
    %c0_51 = arith.constant 0 : index
    %c0_52 = arith.constant 0 : index
    %231 = vector.load %arg10[%c6, %c0_51, %c0_52] : memref<8x8x32xf32, #tpu.memory_space<vmem>>, vector<1x8x32xf32>
    %232 = vector.shape_cast %231 : vector<1x8x32xf32> to vector<8x32xf32>
    %233 = vector.shape_cast %230 : vector<8x32xf32> to vector<1x8x32xf32>
    tpu.vector_store %arg10[%c6, %c0_51, %c0_52], %233 {strides = array<i32>} : memref<8x8x32xf32, #tpu.memory_space<vmem>>, vector<1x8x32xf32>,
    %234 = vector.extract_strided_slice %6 {offsets = [7, 0, 0], sizes = [1, 8, 128], strides = [1, 1, 1]} : vector<8x8x128xf32> to vector<1x8x128xf32>
    %235 = vector.shape_cast %234 : vector<1x8x128xf32> to vector<8x128xf32>
    %cst_53 = arith.constant dense<0.000000e+00> : vector<8x128xf32>
    %236 = tpu.matmul %230, %7, %cst_53 {dimension_numbers = #tpu.dot_dimension_numbers<[1], [0], [0], [1], [0, 0, 1, 1], [], []>, precision = #tpu.contract_precision<fp32>} : vector<8x32xf32>, vector<32x128xf32>, vector<8x128xf32> -> vector<8x128xf32>
    %237 = arith.addf %235, %236 : vector<8x128xf32>
    %238 = vector.extract_strided_slice %237 {offsets = [0, 0], sizes = [8, 32], strides = [1, 1]} : vector<8x128xf32> to vector<8x32xf32>
    %239 = arith.negf %238 : vector<8x32xf32>
    %240 = math.exp %239 : vector<8x32xf32>
    %cst_54 = arith.constant 1.000000e+00 : f32
    %241 = vector.broadcast %cst_54 : f32 to vector<8x32xf32>
    %242 = arith.addf %241, %240 : vector<8x32xf32>
    %243 = arith.divf %241, %242 : vector<8x32xf32>
    %244 = vector.extract_strided_slice %237 {offsets = [0, 32], sizes = [8, 32], strides = [1, 1]} : vector<8x128xf32> to vector<8x32xf32>
    %245 = arith.negf %244 : vector<8x32xf32>
    %246 = math.exp %245 : vector<8x32xf32>
    %cst_55 = arith.constant 1.000000e+00 : f32
    %247 = vector.broadcast %cst_55 : f32 to vector<8x32xf32>
    %248 = arith.addf %247, %246 : vector<8x32xf32>
    %249 = arith.divf %247, %248 : vector<8x32xf32>
    %250 = vector.extract_strided_slice %237 {offsets = [0, 64], sizes = [8, 32], strides = [1, 1]} : vector<8x128xf32> to vector<8x32xf32>
    %251 = math.tanh %250 : vector<8x32xf32>
    %252 = vector.extract_strided_slice %237 {offsets = [0, 96], sizes = [8, 32], strides = [1, 1]} : vector<8x128xf32> to vector<8x32xf32>
    %253 = arith.negf %252 : vector<8x32xf32>
    %254 = math.exp %253 : vector<8x32xf32>
    %cst_56 = arith.constant 1.000000e+00 : f32
    %255 = vector.broadcast %cst_56 : f32 to vector<8x32xf32>
    %256 = arith.addf %255, %254 : vector<8x32xf32>
    %257 = arith.divf %255, %256 : vector<8x32xf32>
    %258 = arith.mulf %249, %228 : vector<8x32xf32>
    %259 = arith.mulf %243, %251 : vector<8x32xf32>
    %260 = arith.addf %258, %259 : vector<8x32xf32>
    %261 = math.tanh %260 : vector<8x32xf32>
    %262 = arith.mulf %257, %261 : vector<8x32xf32>
    %c7 = arith.constant 7 : index
    %c0_57 = arith.constant 0 : index
    %c0_58 = arith.constant 0 : index
    %263 = vector.load %arg10[%c7, %c0_57, %c0_58] : memref<8x8x32xf32, #tpu.memory_space<vmem>>, vector<1x8x32xf32>
    %264 = vector.shape_cast %263 : vector<1x8x32xf32> to vector<8x32xf32>
    %265 = vector.shape_cast %262 : vector<8x32xf32> to vector<1x8x32xf32>
    tpu.vector_store %arg10[%c7, %c0_57, %c0_58], %265 {strides = array<i32>} : memref<8x8x32xf32, #tpu.memory_space<vmem>>, vector<1x8x32xf32>,
    %c0_59 = arith.constant 0 : index
    %c0_60 = arith.constant 0 : index
    %c0_61 = arith.constant 0 : index
    %266 = vector.load %arg10[%c0_59, %c0_60, %c0_61] : memref<8x8x32xf32, #tpu.memory_space<vmem>>, vector<8x8x32xf32>
    %267 = vector.extract_strided_slice %266 {offsets = [0, 0, 0], sizes = [8, 2, 32], strides = [1, 1, 1]} : vector<8x8x32xf32> to vector<8x2x32xf32>
    %c0_62 = arith.constant 0 : index
    %c0_63 = arith.constant 0 : index
    %c0_64 = arith.constant 0 : index
    %268 = vector.load %arg1[%c0_62, %c0_63, %c0_64] : memref<8x2x64xf32, #tpu.memory_space<vmem>>, vector<8x2x64xf32>
    %269 = vector.extract_strided_slice %266 {offsets = [0, 2, 0], sizes = [8, 2, 32], strides = [1, 1, 1]} : vector<8x8x32xf32> to vector<8x2x32xf32>
    %270 = tpu.concatenate %267, %268, %269 in 2 : vector<8x2x32xf32>, vector<8x2x64xf32>, vector<8x2x32xf32> -> vector<8x2x128xf32>
    %271 = vector.extract_strided_slice %270 {offsets = [0, 0, 0], sizes = [6, 2, 128], strides = [1, 1, 1]} : vector<8x2x128xf32> to vector<6x2x128xf32>
    %272 = vector.extract_strided_slice %270 {offsets = [1, 0, 0], sizes = [6, 2, 128], strides = [1, 1, 1]} : vector<8x2x128xf32> to vector<6x2x128xf32>
    %273 = vector.extract_strided_slice %270 {offsets = [2, 0, 0], sizes = [6, 2, 128], strides = [1, 1, 1]} : vector<8x2x128xf32> to vector<6x2x128xf32>
    %274 = tpu.concatenate %271, %272, %273 in 2 : vector<6x2x128xf32>, vector<6x2x128xf32>, vector<6x2x128xf32> -> vector<6x2x384xf32>
    %c0_65 = arith.constant 0 : index
    %c0_66 = arith.constant 0 : index
    %275 = vector.load %arg5[%c0_65, %c0_66] : memref<384x64xf32, #tpu.memory_space<vmem>>, vector<384x64xf32>
    %cst_67 = arith.constant dense<0.000000e+00> : vector<6x2x64xf32>
    %276 = tpu.matmul %274, %275, %cst_67 {dimension_numbers = #tpu.dot_dimension_numbers<[2], [0], [0, 1], [1], [0, 0, 0, 1, 1, 1], [], []>, precision = #tpu.contract_precision<fp32>} : vector<6x2x384xf32>, vector<384x64xf32>, vector<6x2x64xf32> -> vector<6x2x64xf32>
    %c0_68 = arith.constant 0 : index
    %c0_69 = arith.constant 0 : index
    %277 = vector.load %arg6[%c0_68, %c0_69] : memref<1x64xf32, #tpu.memory_space<vmem>>, vector<1x64xf32>
    %278 = vector.shape_cast %277 : vector<1x64xf32> to vector<1x1x64xf32>
    %279 = vector.broadcast %278 : vector<1x1x64xf32> to vector<6x2x64xf32>
    %280 = arith.addf %276, %279 : vector<6x2x64xf32>
    %281 = math.tanh %280 : vector<6x2x64xf32>
    %cst_70 = arith.constant dense<0xFF800000> : vector<2x64xf32>
    %282 = vector.multi_reduction <maximumf>, %281, %cst_70 [0] : vector<6x2x64xf32> to vector<2x64xf32>
    %c0_71 = arith.constant 0 : index
    %c0_72 = arith.constant 0 : index
    %283 = vector.load %arg7[%c0_71, %c0_72] : memref<64x6xf32, #tpu.memory_space<vmem>>, vector<64x6xf32>
    %cst_73 = arith.constant dense<0.000000e+00> : vector<2x6xf32>
    %284 = tpu.matmul %282, %283, %cst_73 {dimension_numbers = #tpu.dot_dimension_numbers<[1], [0], [0], [1], [0, 0, 1, 1], [], []>, precision = #tpu.contract_precision<fp32>} : vector<2x64xf32>, vector<64x6xf32>, vector<2x6xf32> -> vector<2x6xf32>
    %c0_74 = arith.constant 0 : index
    %c0_75 = arith.constant 0 : index
    %285 = vector.load %arg8[%c0_74, %c0_75] : memref<1x6xf32, #tpu.memory_space<vmem>>, vector<1x6xf32>
    %286 = vector.broadcast %285 : vector<1x6xf32> to vector<2x6xf32>
    %287 = arith.addf %284, %286 : vector<2x6xf32>
    %c0_76 = arith.constant 0 : index
    %c0_77 = arith.constant 0 : index
    %288 = vector.load %arg9[%c0_76, %c0_77] : memref<2x6xf32, #tpu.memory_space<vmem>>, vector<2x6xf32>
    tpu.vector_store %arg9[%c0_76, %c0_77], %287 {strides = array<i32>} : memref<2x6xf32, #tpu.memory_space<vmem>>, vector<2x6xf32>,
    return
  }
}

</mosaic_0001>

<bundles_post_ra>
// kernel: rcnn_forward.1
= control target key start
LH: loop header
LB: loop body
LE: loop exit
PB: predicated region body
PF: predicated region fallthrough
CT: control target
= control target key end

     0   :  { %vm56_vm0 = vcmask 523264   ;;  %v12623_v9 = vmov 0.0|0.0   ;;  %s12600_s0 = inlined_call_operand.vmem [shape: f32[8,8,64], index: 0, kind: input, shape index: {}]   ;;  %s12601_s1 = inlined_call_operand.vmem [shape: f32[8,2,64], index: 1, kind: input, shape index: {}]   ;;  %s12602_s2 = inlined_call_operand.vmem [shape: f32[64,128], index: 2, kind: input, shape index: {}]   ;;  %s12603_s3 = inlined_call_operand.vmem [shape: f32[32,128], index: 3, kind: input, shape index: {}]   ;;  %s12604_s4 = inlined_call_operand.vmem [shape: f32[1,128], index: 4, kind: input, shape index: {}]   ;;  %s12605_s5 = inlined_call_operand.vmem [shape: f32[384,64], index: 5, kind: input, shape index: {}]   ;;  %s12606_s6 = inlined_call_operand.vmem [shape: f32[1,64], index: 6, kind: input, shape index: {}]   ;;  %s12607_s7 = inlined_call_operand.vmem [shape: f32[64,6], index: 7, kind: input, shape index: {}]   ;;  %s12608_s8 = inlined_call_operand.vmem [shape: f32[1,6], index: 8, kind: input, shape index: {}]   ;;  %s12609_s9 = inlined_call_operand.hbm [shape: f32[2,6], index: 9, kind: output, shape index: {}]  }
   0x1   :  { %v41_v0 = vld [vmem:[%s12602_s2] sm:$0xff]  ;;  %v42_v1 = vld [vmem:[%s12602_s2 + $0x8] sm:$0xff]  ;;  %v43_v2 = vld [vmem:[%s12602_s2 + $0x10] sm:$0xff]  ;;  %9489 = vmatprep.subr.bf16.mxu1 %v12623_v9 }
   0x2   :  { %v82_v3 = vand.u32 4294901760, %v41_v0  ;;  %v85_v4 = vand.u32 4294901760, %v42_v1  ;;  %v44_v5 = vld [vmem:[%s12602_s2 + $0x18] sm:$0xff]  ;;  %v88_v6 = vand.u32 4294901760, %v43_v2  ;;  %v10558_v7 = vld [vmem:[%s12602_s2 + $0x20] sm:$0xff]  ;;  %v10563_v8 = vld [vmem:[%s12602_s2 + $0x28] sm:$0xff] }
   0x3   :  { %v91_v10 = vand.u32 4294901760, %v44_v5  ;;  %v94_v11 = vand.u32 4294901760, %v10558_v7  ;;  %v97_v12 = vand.u32 4294901760, %v10563_v8  ;;  %v10571_v13 = vld [vmem:[%s12602_s2 + $0x30] sm:$0xff]  ;;  %v10576_v14 = vld [vmem:[%s12602_s2 + $0x38] sm:$0xff]  ;;  %v33_v15 = vld [vmem:[%s12600_s0] sm:$0xff] }
   0x4   :  { %v10581_v16 = vpack.c.bf16 %v85_v4, %v82_v3  ;;  %v100_v17 = vand.u32 4294901760, %v10571_v13  ;;  %v103_v18 = vand.u32 4294901760, %v10576_v14  ;;  %v58_v19 = vsel %vm56_vm0, %v33_v15, 0  ;;  %v34_v20 = vld [vmem:[%s12600_s0 + $0x8] sm:$0xff]  ;;  %v35_v21 = vld [vmem:[%s12600_s0 + $0x10] sm:$0xff]  ;;  %v36_v22 = vld [vmem:[%s12600_s0 + $0x18] sm:$0xff] }
   0x5   :  { %v10595_v23 = vpack.c.bf16 %v91_v10, %v88_v6  ;;  %v10601_v24 = vpack.c.bf16 %v97_v12, %v94_v11  ;;  %v10603_v25 = vand.u32 4294901760, %v58_v19  ;;  %v61_v26 = vsel %vm56_vm0, %v34_v20, 0 }
   0x6   :  { %9388 = vmatprep.subr.bf16.mxu0 %v10581_v16  ;;  %v10611_v27 = vpack.c.bf16 %v103_v18, %v100_v17  ;;  %v10613_v28 = vand.u32 4294901760, %v61_v26  ;;  %v10615_v29 = vsub.f32 %v41_v0, %v82_v3  ;;  %v10617_v30 = vsub.f32 %v42_v1, %v85_v4 }
   0x7   :  { %9390 = vmatpush3.bf16.msra.mxu0 %v10581_v16  ;;  %v10621_v31 = vsub.f32 %v58_v19, %v10603_v25  ;;  %v64_v32 = vsel %vm56_vm0, %v35_v21, 0  ;;  %v67_v33 = vsel %vm56_vm0, %v36_v22, 0  ;;  %v10625_v34 = vsub.f32 %v43_v2, %v88_v6 }
   0x8   :  { %14 = vsyncpa [#allocation4], 0  ;;  %9392 = vmatprep.subr.bf16.mxu0 %v10595_v23  ;;  %v10629_v35 = vsub.f32 %v61_v26, %v10613_v28  ;;  %v237_v36 = vand.u32 4294901760, %v10615_v29  ;;  %v244_v37 = vand.u32 4294901760, %v10617_v30  ;;  %v10633_v38 = vand.u32 4294901760, %v64_v32  ;;  %v37_v51 = vld [vmem:[%s12600_s0 + $0x20] sm:$0xff] }
   0x9   :  { %v156_v39 = vand.u32 4294901760, %v10621_v31  ;;  %v10636_v40 = vand.u32 4294901760, %v67_v33  ;;  %v251_v41 = vand.u32 4294901760, %v10625_v34  ;;  %v10639_v42 = vsub.f32 %v44_v5, %v91_v10  ;;  %v38_v56 = vld [vmem:[%s12600_s0 + $0x28] sm:$0xff]  ;;  %v39_v1 = vld [vmem:[%s12600_s0 + $0x30] sm:$0xff]  ;;  %v40_v20 = vld [vmem:[%s12600_s0 + $0x38] sm:$0xff] }
   0xa   :  { %v12620_v43 = vand.u32 4294901760, %v10629_v35  ;;  %v238_v44 = vsub.f32 %v10615_v29, %v237_v36  ;;  %v245_v45 = vsub.f32 %v10617_v30, %v244_v37  ;;  %v10649_v46 = vsub.f32 %v64_v32, %v10633_v38  ;;  %s10489_s27 = smov 32   ;;  %s10490_s10 = smov 96  }
   0xb   :  { %9394 = vmatpush3.bf16.msra.mxu0 %v10595_v23  ;;  %v157_v47 = vsub.f32 %v10621_v31, %v156_v39  ;;  %v10656_v48 = vsub.f32 %v67_v33, %v10636_v40  ;;  %v252_v49 = vsub.f32 %v10625_v34, %v251_v41  ;;  %v258_v50 = vand.u32 4294901760, %v10639_v42  ;;  %s10492_s15 = smov [#allocation3]  }
   0xc   :  { %9396 = vmatprep.subr.bf16.mxu0 %v10601_v24  ;;  %v167_v52 = vsub.f32 %v10629_v35, %v12620_v43  ;;  %v239_v53 = vand.u32 4294901760, %v238_v44  ;;  %v246_v54 = vand.u32 4294901760, %v245_v45  ;;  %v12619_v55 = vand.u32 4294901760, %v10649_v46  ;;  %s7616_s16 = sshll.u32 %s10492_s15, 4  ;;  %s7617_s16 = int_to_ptr.vmem [resolvable:$true] %s7616_s16 }
   0xd   :  { %v158_v57 = vand.u32 4294901760, %v157_v47  ;;  %v12616_v58 = vand.u32 4294901760, %v10656_v48  ;;  %v253_v59 = vand.u32 4294901760, %v252_v49  ;;  %v259_v60 = vsub.f32 %v10639_v42, %v258_v50  ;;  %s10461_s17 = scalar_lea.vmem %s7617_s16, 32  ;;  %p10466_p1 = scmp.lt.s32.totalorder %s7617_s16, %s7617_s16 }
   0xe   :  { %v168_v61 = vand.u32 4294901760, %v167_v52  ;;  %v9403_v62 = vpack.c.bf16 %v246_v54, %v239_v53  ;;  %v177_v63 = vsub.f32 %v10649_v46, %v12619_v55  ;;  %v70_v0 = vsel %vm56_vm0, %v37_v51, 0  ;;  %p10462_p0 = scmp.ne.s32.totalorder %s7617_s16, %s10461_s17  ;;  %p10467_p2 = scmp.lt.s32.totalorder %s10461_s17, %s10461_s17 }
   0xf   :  { %9398 = vmatpush3.bf16.msra.mxu0 %v10601_v24  ;;  %8383 = vmatprep.mubr.f32.mxu0 %v158_v57  ;;  %v187_v2 = vsub.f32 %v10656_v48, %v12616_v58  ;;  %v260_v3 = vand.u32 4294901760, %v259_v60  ;;  %v10688_v4 = vand.u32 4294901760, %v70_v0  ;;  %v73_v5 = vsel %vm56_vm0, %v38_v56, 0 }
  0x10   :  { %9400 = vmatprep.subr.bf16.mxu0 %v10611_v27  ;;  %v178_v6 = vand.u32 4294901760, %v177_v63  ;;  %v10692_v10 = vand.u32 4294901760, %v73_v5  ;;  %v10697_v15 = vsub.f32 %v10558_v7, %v94_v11  ;;  %v10702_v19 = vsub.f32 %v10563_v8, %v97_v12  ;;  %p10468_p3 = por %p10467_p2, %p10466_p1 }
  0x11   :  { %v188_v21 = vand.u32 4294901760, %v187_v2  ;;  %v9407_v22 = vpack.c.bf16 %v260_v3, %v253_v59  ;;  %v10708_v26 = vsub.f32 %v70_v0, %v10688_v4  ;;  %v76_v32 = vsel %vm56_vm0, %v39_v1, 0  ;;  %v10764_v1 = vld [vmem:[%s12603_s3] sm:$0xff] }
  0x12   :  { %v10712_v33 = vsub.f32 %v73_v5, %v10692_v10  ;;  %v12618_v7 = vand.u32 4294901760, %v10697_v15  ;;  %v12617_v11 = vand.u32 4294901760, %v10702_v19  ;;  %v10716_v8 = vand.u32 4294901760, %v76_v32  ;;  %v10777_v5 = vld [vmem:[%s12603_s3 + $0x10] sm:$0xff]  ;;  %p10469_p4 = pnand %p10468_p3, %p10462_p0 }
  0x13   :  { %9402 = vmatpush3.bf16.msra.mxu0 %v10611_v27  ;;  %v12615_v12 = vand.u32 4294901760, %v10708_v26  ;;  %v79_v44 = vsel %vm56_vm0, %v40_v20, 0  ;;  %v10724_v45 = vsub.f32 %v10571_v13, %v100_v17  ;;  %v10729_v47 = vsub.f32 %v10576_v14, %v103_v18 }
  0x14   :  { %9404 = vmatprep.subr.bf16.mxu0 %v9403_v62  ;;  %v12612_v49 = vand.u32 4294901760, %v10712_v33  ;;  %v266_v51 = vsub.f32 %v10697_v15, %v12618_v7  ;;  %v273_v52 = vsub.f32 %v10702_v19, %v12617_v11  ;;  %v10739_v53 = vsub.f32 %v76_v32, %v10716_v8 }
  0x15   :  { %v197_v13 = vsub.f32 %v10708_v26, %v12615_v12  ;;  %v10744_v14 = vand.u32 4294901760, %v79_v44  ;;  %v12614_v17 = vand.u32 4294901760, %v10724_v45  ;;  %v12613_v18 = vand.u32 4294901760, %v10729_v47 }
  0x16   :  { %8384 = vmatmul.mubr.f32.vlgmr.msra.gmra.mrb[0].mxu0 %v168_v61  ;;  %v207_v54 = vsub.f32 %v10712_v33, %v12612_v49  ;;  %v267_v56 = vand.u32 4294901760, %v266_v51  ;;  %v274_v57 = vand.u32 4294901760, %v273_v52  ;;  %v12611_v59 = vand.u32 4294901760, %v10739_v53 }
  0x17   :  { %9406 = vmatpush3.bf16.msra.mxu0 %v9403_v62  ;;  %8386 = vmatprep.mubr.f32.mxu0 %v178_v6  ;;  %v198_v60 = vand.u32 4294901760, %v197_v13  ;;  %v10753_v63 = vsub.f32 %v79_v44, %v10744_v14  ;;  %v280_v0 = vsub.f32 %v10724_v45, %v12614_v17  ;;  %v287_v61 = vsub.f32 %v10729_v47, %v12613_v18  ;;  %v10769_v62 = vld [vmem:[%s12603_s3 + $0x8] sm:$0xff]  ;;  %v10783_v44 = vld [vmem:[%s12603_s3 + $0x18] sm:$0xff] }
  0x18   :  { %9408 = vmatprep.subr.bf16.mxu0 %v9407_v22  ;;  %v9411_v2 = vpack.c.bf16 %v274_v57, %v267_v56  ;;  %v217_v3 = vsub.f32 %v10739_v53, %v12611_v59  ;;  %v208_v51 = vand.u32 4294901760, %v207_v54  ;;  %v928_v52 = vand.u32 4294901760, %v10764_v1 }
  0x19   :  { %v12610_v6 = vand.u32 4294901760, %v10753_v63  ;;  %v281_v20 = vand.u32 4294901760, %v280_v0  ;;  %v288_v32 = vand.u32 4294901760, %v287_v61  ;;  %v931_v13 = vand.u32 4294901760, %v10769_v62 }
  0x1a   :  { %8387 = vmatmul.mubr.f32.gmra.mrb[2].mxu0 %v188_v21  ;;  %v218_v56 = vand.u32 4294901760, %v217_v3  ;;  %v934_v0 = vand.u32 4294901760, %v10777_v5  ;;  %v10794_v21 = vsub.f32 %v10764_v1, %v928_v52  ;;  %vm10486_vm1 = vmmov 0  }
  0x1b   :  { %9410 = vmatpush3.bf16.msra.mxu0 %v9407_v22  ;;  %8389 = vmatprep.mubr.f32.mxu0 %v198_v60  ;;  %v227_v57 = vsub.f32 %v10753_v63, %v12610_v6  ;;  %v9415_v61 = vpack.c.bf16 %v288_v32, %v281_v20  ;;  %v10799_v54 = vsub.f32 %v10769_v62, %v931_v13  ;;  %v937_v22 = vand.u32 4294901760, %v10783_v44 }
  0x1c   :  { %9412 = vmatprep.subr.bf16.mxu0 %v9411_v2  ;;  %v10805_v60 = vsub.f32 %v10777_v5, %v934_v0  ;;  %v1009_v20 = vand.u32 4294901760, %v10794_v21  ;;  %v12621_v59 = vmov 0.0   ;;  %v9423_v7 = vpack.c.bf16 %v10639_v42, %v10625_v34 }
  0x1d   :  { %v228_v3 = vand.u32 4294901760, %v227_v57  ;;  %v1016_v32 = vand.u32 4294901760, %v10799_v54  ;;  %v10812_v6 = vsub.f32 %v10783_v44, %v937_v22  ;;  %8554 = vmatprep.mubr.msk.f32.mxu1 %vm10486_vm1, %v12621_v59  ;;  %v9451_v5 = vpack.c.bf16 %v244_v37, %v237_v36 }
  0x1e   :  { %8390 = vmatmul.mubr.f32.gmra.mrb[4].mxu0 %v208_v51  ;;  %v1023_v49 = vand.u32 4294901760, %v10805_v60  ;;  %v9419_v51 = vpack.c.bf16 %v10617_v30, %v10615_v29  ;;  %v1010_v57 = vsub.f32 %v10794_v21, %v1009_v20  ;;  %v9455_v29 = vpack.c.bf16 %v258_v50, %v251_v41 }
  0x1f   :  { %9414 = vmatpush3.bf16.msra.mxu0 %v9411_v2  ;;  %8392 = vmatprep.mubr.f32.mxu0 %v218_v56  ;;  %v1017_v18 = vsub.f32 %v10799_v54, %v1016_v32  ;;  %v1030_v17 = vand.u32 4294901760, %v10812_v6  ;;  %v10898_v1 = vpack.c.bf16 %v1016_v32, %v1009_v20  ;;  %v12697_v30 = vand.u32 4294901760, %v10629_v35 }
  0x20   :  { %9416 = vmatprep.subr.bf16.mxu0 %v9415_v61  ;;  %v1024_v2 = vsub.f32 %v10805_v60, %v1023_v49  ;;  %v1011_v56 = vand.u32 4294901760, %v1010_v57  ;;  %v12698_v36 = vand.u32 4294901760, %v10649_v46  ;;  %v12700_v34 = vand.u32 4294901760, %v10702_v19 }
  0x21   :  { %v1018_v12 = vand.u32 4294901760, %v1017_v18  ;;  %v1031_v58 = vsub.f32 %v10812_v6, %v1030_v17  ;;  %v10911_v62 = vpack.c.bf16 %v1030_v17, %v1023_v49  ;;  %v12703_v41 = vand.u32 4294901760, %v10724_v45 }
  0x22   :  { %8393 = vmatmul.mubr.f32.gmra.mrb[6].mxu0 %v228_v3  ;;  %v1025_v11 = vand.u32 4294901760, %v1024_v2  ;;  %v12704_v42 = vand.u32 4294901760, %v10729_v47  ;;  %v12705_v50 = vand.u32 4294901760, %v10712_v33  ;;  %vm923_vm2 = vcmask 261120  }
  0x23   :  { %9418 = vmatpush3.bf16.msra.mxu0 %v9415_v61  ;;  %8411 = vmatprep.mubr.f32.mxu0 %v10603_v25  ;;  %v10835_v55 = vpack.c.bf16 %v1018_v12, %v1011_v56  ;;  %v1032_v43 = vand.u32 4294901760, %v1031_v58  ;;  %v9427_v61 = vpack.c.bf16 %v10702_v19, %v10697_v15  ;;  %v10849_v58 = vpack.c.bf16 %v10799_v54, %v10794_v21 }
  0x24   :  { %9420 = vmatprep.subr.bf16.mxu0 %v9419_v51  ;;  %v10882_v12 = vpack.c.bf16 %v937_v22, %v934_v0  ;;  %vm5164_vm3 = vcmask 785408   ;;  %vm7041_vm4 = vcmask 517120   ;;  %vm7608_vm5 = vcmask 41984  }
  0x25   :  { %9491 = vmatpush3.bf16.msra.mxu1 %v10835_v55  ;;  %v10839_v18 = vpack.c.bf16 %v1032_v43, %v1025_v11  ;;  %v9431_v43 = vpack.c.bf16 %v10729_v47, %v10724_v45  ;;  %v10860_v11 = vpack.c.bf16 %v10812_v6, %v10805_v60 }
  0x26   :  { %8412 = vmatmul.mubr.f32.vlgmr.msra.gmra.mrb[0].mxu0 %v10613_v28  ;;  %9492 = vmatprep.subr.bf16.mxu1 %v12623_v9 }
  0x27   :  { %9422 = vmatpush3.bf16.msra.mxu0 %v9419_v51  ;;  %8414 = vmatprep.mubr.f32.mxu0 %v10633_v38 }
  0x28   :  { %9424 = vmatprep.subr.bf16.mxu0 %v9423_v7 }
  0x29   :  { %9494 = vmatpush3.bf16.msra.mxu1 %v10839_v18 }
  0x2a   :  { %8415 = vmatmul.mubr.f32.gmra.mrb[2].mxu0 %v10636_v40  ;;  %9495 = vmatprep.subr.bf16.mxu1 %v12623_v9 }
  0x2b   :  { %9426 = vmatpush3.bf16.msra.mxu0 %v9423_v7  ;;  %8417 = vmatprep.mubr.f32.mxu0 %v10688_v4  ;;  %v10870_v7 = vpack.c.bf16 %v931_v13, %v928_v52 }
  0x2c   :  { %9428 = vmatprep.subr.bf16.mxu0 %v9427_v61  ;;  %8555 = vmatmul.mubr.f32.vlgmr.msra.gmra.mrb[0].mxu1 %v12621_v59 }
  0x2d   :  { %9497 = vmatpush3.bf16.msra.mxu1 %v10849_v58  ;;  %8565 = vmatprep.mubr.msk.f32.mxu1 %vm10486_vm1, %v12621_v59 }
  0x2e   :  { %8418 = vmatmul.mubr.f32.gmra.mrb[4].mxu0 %v10692_v10  ;;  %9498 = vmatprep.subr.bf16.mxu1 %v12623_v9 }
  0x2f   :  { %9430 = vmatpush3.bf16.msra.mxu0 %v9427_v61  ;;  %8420 = vmatprep.mubr.f32.mxu0 %v10716_v8 }
  0x30   :  { %9432 = vmatprep.subr.bf16.mxu0 %v9431_v43 }
  0x31   :  { %9500 = vmatpush3.bf16.msra.mxu1 %v10860_v11 }
  0x32   :  { %8421 = vmatmul.mubr.f32.gmra.mrb[6].mxu0 %v10744_v14  ;;  %9501 = vmatprep.subr.bf16.mxu1 %v12623_v9 }
  0x33   :  { %9434 = vmatpush3.bf16.msra.mxu0 %v9431_v43  ;;  %8439 = vmatprep.mubr.f32.mxu0 %v10621_v31  ;;  %v12699_v31 = vand.u32 4294901760, %v10697_v15  ;;  %v12707_v15 = vand.u32 4294901760, %v10753_v63 }
  0x34   :  { %9436 = vmatprep.subr.bf16.mxu0 %v10581_v16  ;;  %8566 = vmatmul.mubr.f32.vlgmr.msra.gmra.mrb[0].mxu1 %v12621_v59 }
  0x35   :  { %9503 = vmatpush3.bf16.msra.mxu1 %v10870_v7  ;;  %8576 = vmatprep.mubr.msk.f32.mxu1 %vm10486_vm1, %v12621_v59  ;;  %v9459_v37 = vpack.c.bf16 %v12700_v34, %v12699_v31 }
  0x36   :  { %8440 = vmatmul.mubr.f32.vlgmr.msra.gmra.mrb[0].mxu0 %v10629_v35  ;;  %9504 = vmatprep.subr.bf16.mxu1 %v12623_v9  ;;  %v12701_v35 = vand.u32 4294901760, %v10656_v48 }
  0x37   :  { %9438 = vmatpush3.bf16.msra.mxu0 %v10581_v16  ;;  %8442 = vmatprep.mubr.f32.mxu0 %v10649_v46  ;;  %v9463_v46 = vpack.c.bf16 %v12704_v42, %v12703_v41 }
  0x38   :  { %9440 = vmatprep.subr.bf16.mxu0 %v10595_v23 }
  0x39   :  { %9506 = vmatpush3.bf16.msra.mxu1 %v10882_v12 }
  0x3a   :  { %8443 = vmatmul.mubr.f32.gmra.mrb[2].mxu0 %v10656_v48  ;;  %9507 = vmatprep.subr.bf16.mxu1 %v12623_v9  ;;  %v12706_v48 = vand.u32 4294901760, %v10739_v53 }
  0x3b   :  { %9442 = vmatpush3.bf16.msra.mxu0 %v10595_v23  ;;  %8445 = vmatprep.mubr.f32.mxu0 %v10708_v26 }
  0x3c   :  { %9444 = vmatprep.subr.bf16.mxu0 %v10601_v24  ;;  %8577 = vmatmul.mubr.f32.vlgmr.msra.gmra.mrb[0].mxu1 %v12621_v59 }
  0x3d   :  { %9509 = vmatpush3.bf16.msra.mxu1 %v10898_v1  ;;  %8587 = vmatprep.mubr.msk.f32.mxu1 %vm10486_vm1, %v12621_v59 }
  0x3e   :  { %8446 = vmatmul.mubr.f32.gmra.mrb[4].mxu0 %v10712_v33  ;;  %9510 = vmatprep.subr.bf16.mxu1 %v12623_v9 }
  0x3f   :  { %9446 = vmatpush3.bf16.msra.mxu0 %v10601_v24  ;;  %8448 = vmatprep.mubr.f32.mxu0 %v10739_v53 }
  0x40   :  { %9448 = vmatprep.subr.bf16.mxu0 %v10611_v27 }
  0x41   :  { %9512 = vmatpush3.bf16.msra.mxu1 %v10911_v62 }
  0x42   :  { %8449 = vmatmul.mubr.f32.gmra.mrb[6].mxu0 %v10753_v63  ;;  %9513 = vmatprep.subr.bf16.mxu1 %v12623_v9 }
  0x43   :  { %9450 = vmatpush3.bf16.msra.mxu0 %v10611_v27  ;;  %8467 = vmatprep.mubr.f32.mxu0 %v156_v39  ;;  %v12702_v39 = vand.u32 4294901760, %v10708_v26 }
  0x44   :  { %9452 = vmatprep.subr.bf16.mxu0 %v9451_v5  ;;  %8588 = vmatmul.mubr.f32.vlgmr.msra.gmra.mrb[0].mxu1 %v12621_v59 }
  0x45   :  { %9515 = vmatpush3.bf16.msra.mxu1 %v10870_v7  ;;  %8598 = vmatprep.mubr.msk.f32.mxu1 %vm10486_vm1, %v12621_v59 }
  0x46   :  { %8468 = vmatmul.mubr.f32.vlgmr.msra.gmra.mrb[0].mxu0 %v12697_v30  ;;  %9516 = vmatprep.subr.bf16.mxu1 %v12623_v9 }
  0x47   :  { %9454 = vmatpush3.bf16.msra.mxu0 %v9451_v5  ;;  %8470 = vmatprep.mubr.f32.mxu0 %v12698_v36 }
  0x48   :  { %9456 = vmatprep.subr.bf16.mxu0 %v9455_v29 }
  0x49   :  { %9518 = vmatpush3.bf16.msra.mxu1 %v10882_v12 }
  0x4a   :  { %8471 = vmatmul.mubr.f32.gmra.mrb[2].mxu0 %v12701_v35  ;;  %9519 = vmatprep.subr.bf16.mxu1 %v12623_v9 }
  0x4b   :  { %9458 = vmatpush3.bf16.msra.mxu0 %v9455_v29  ;;  %8473 = vmatprep.mubr.f32.mxu0 %v12702_v39 }
  0x4c   :  { %9460 = vmatprep.subr.bf16.mxu0 %v9459_v37  ;;  %8599 = vmatmul.mubr.f32.vlgmr.msra.gmra.mrb[0].mxu1 %v12621_v59 }
  0x4d   :  { %9521 = vmatpush3.bf16.msra.mxu1 %v10870_v7  ;;  %8609 = vmatprep.mubr.msk.f32.mxu1 %vm10486_vm1, %v12621_v59 }
  0x4e   :  { %8474 = vmatmul.mubr.f32.gmra.mrb[4].mxu0 %v12705_v50  ;;  %9522 = vmatprep.subr.bf16.mxu1 %v12623_v9 }
  0x4f   :  { %9462 = vmatpush3.bf16.msra.mxu0 %v9459_v37  ;;  %8476 = vmatprep.mubr.f32.mxu0 %v12706_v48 }
  0x50   :  { %9464 = vmatprep.subr.bf16.mxu0 %v9463_v46 }
  0x51   :  { %9524 = vmatpush3.bf16.msra.mxu1 %v10882_v12 }
  0x52   :  { %8477 = vmatmul.mubr.f32.gmra.mrb[6].mxu0 %v12707_v15  ;;  %9525 = vmatprep.subr.bf16.mxu1 %v12623_v9 }
  0x53   :  { %9466 = vmatpush3.bf16.msra.mxu0 %v9463_v46  ;;  %8495 = vmatprep.mubr.f32.mxu0 %v10603_v25 }
  0x54   :  { %9468 = vmatprep.subr.bf16.mxu0 %v10581_v16 }
  0x56   :  { %8496 = vmatmul.mubr.f32.vlgmr.msra.gmra.mrb[0].mxu0 %v10613_v28 }
  0x57   :  { %9470 = vmatpush3.bf16.msra.mxu0 %v10581_v16  ;;  %8498 = vmatprep.mubr.f32.mxu0 %v10633_v38 }
  0x58   :  { %9472 = vmatprep.subr.bf16.mxu0 %v10595_v23 }
  0x5a   :  { %8499 = vmatmul.mubr.f32.gmra.mrb[2].mxu0 %v10636_v40 }
  0x5b   :  { %9474 = vmatpush3.bf16.msra.mxu0 %v10595_v23  ;;  %8501 = vmatprep.mubr.f32.mxu0 %v10688_v4 }
  0x5c   :  { %9476 = vmatprep.subr.bf16.mxu0 %v10601_v24 }
  0x5e   :  { %8502 = vmatmul.mubr.f32.gmra.mrb[4].mxu0 %v10692_v10 }
  0x5f   :  { %9478 = vmatpush3.bf16.msra.mxu0 %v10601_v24  ;;  %8504 = vmatprep.mubr.f32.mxu0 %v10716_v8  ;;  %v7624_v24 = vld [vmem:[%s12604_s4] ss:$0 sm:$0xff]  ;;  %s10488_s4 = smov 64  }
  0x60   :  { %9480 = vmatprep.subr.bf16.mxu0 %v10611_v27 }
  0x62   :  { %8505 = vmatmul.mubr.f32.gmra.mrb[6].mxu0 %v10744_v14 }
  0x63   :  { %9482 = vmatpush3.bf16.msra.mxu0 %v10611_v27  ;;  %8523 = vmatprep.mubr.f32.mxu0 %v10603_v25 }
  0x64   :  { %9483 = vmatprep.subr.bf16.mxu0 %v12623_v9 }
  0x66   :  { %8524 = vmatmul.mubr.f32.vlgmr.msra.gmra.mrb[0].mxu0 %v10613_v28 }
  0x67   :  { %9485 = vmatpush3.bf16.msra.mxu0 %v10870_v7  ;;  %8526 = vmatprep.mubr.f32.mxu0 %v10633_v38 }
  0x68   :  { %9486 = vmatprep.subr.bf16.mxu0 %v12623_v9 }
  0x6a   :  { %8527 = vmatmul.mubr.f32.gmra.mrb[2].mxu0 %v10636_v40 }
  0x6b   :  { %8529 = vmatprep.mubr.f32.mxu0 %v10688_v4  ;;  %9488 = vmatpush3.bf16.msra.mxu0 %v10882_v12 }
  0x6c   :  { %9591 = vmatprep.subr.bf16.mxu0 %v12623_v9 }
  0x6e   :  { %8530 = vmatmul.mubr.f32.gmra.mrb[4].mxu0 %v10692_v10 }
  0x6f   :  { %8532 = vmatprep.mubr.f32.mxu0 %v10716_v8 }
  0x72   :  { %8533 = vmatmul.mubr.f32.gmra.mrb[6].mxu0 %v10744_v14 }
  0x73   :  { %8543 = vmatprep.mubr.msk.f32.mxu0 %vm10486_vm1, %v12621_v59 }
  0x76   :  { %8544 = vmatmul.mubr.f32.vlgmr.msra.gmra.mrb[8].mxu0 %v12621_v59 }
  0x77   :  { %9593 = vmatpush3.bf16.msra.mxu0 %v10870_v7  ;;  %8741 = vmatprep.mubr.msk.f32.mxu0 %vm10486_vm1, %v12621_v59 }
  0x78   :  { %9594 = vmatprep.subr.bf16.mxu0 %v12623_v9 }
  0x7b   :  { %9596 = vmatpush3.bf16.msra.mxu0 %v10882_v12 }
  0x7c   :  { %9597 = vmatprep.subr.bf16.mxu0 %v12623_v9 }
 0x11f   :  { %v1408_v16 = vpop.f32.mrb[0].mxu1 }
 0x120   :  { %v8600_v23 = vpop.f32.mrb[1].mxu1 }
 0x139   :  { %v8525_v25 = vpop.f32.mrb[0].mxu0 }
 0x13a   :  { %v11010_v27 = vadd.f32 %v8525_v25, %v7624_v24  ;;  %v873_v28 = vpop.f32.mrb[1].mxu0 }
 0x13b   :  { %v10228_v17 = vadd.f32 %v7624_v24, %v873_v28 }
 0x13d   :  { %v8528_v38 = vpop.f32.mrb[2].mxu0 }
 0x13e   :  { %v11012_v40 = vadd.f32 %v8528_v38, %v7624_v24  ;;  %v885_v4 = vpop.f32.mrb[3].mxu0 }
 0x13f   :  { %v11014_v10 = vadd.f32 %v7624_v24, %v885_v4 }
 0x141   :  { %v8531_v19 = vpop.f32.mrb[4].mxu0 }
 0x142   :  { %v11016_v26 = vadd.f32 %v8531_v19, %v7624_v24  ;;  %v897_v33 = vpop.f32.mrb[5].mxu0 }
 0x143   :  { %v11018_v8 = vadd.f32 %v7624_v24, %v897_v33 }
 0x145   :  { %v8534_v45 = vpop.f32.mrb[6].mxu0 }
 0x146   :  { %v11020_v47 = vadd.f32 %v8534_v45, %v7624_v24  ;;  %v909_v49 = vpop.f32.mrb[7].mxu0 }
 0x147   :  { %v11022_v53 = vadd.f32 %v7624_v24, %v909_v49 }
 0x149   :  { %v1002_v14 = vpop.f32.mrb[8].mxu0 }
 0x14a   :  { %v10235_v63 = vadd.f32 %v1408_v16, %v1002_v14  ;;  %v8545_v6 = vpop.f32.mrb[9].mxu0 }
 0x14c   :  { %v1412_v44 = vadd.f32 %v10235_v63, %v10228_v17 }
 0x14e   :  { %10385 = vtanh.f32 %v1412_v44  ;;  %v7625_v13 = vmul.f32 -1.442695, %v1412_v44 }
 0x150   :  { %10387 = vpow2.f32 %v7625_v13 }
 0x158   :  { %v10386_v52 = vpop.eup %10385 }
 0x159   :  { %1422 = vrot.lane.b32.xlu0 %v10386_v52, %s10488_s4 }
 0x15a   :  { %v10388_v0 = vpop.eup %10387 }
 0x15b   :  { %v1416_v21 = vadd.f32 1.0, %v10388_v0 }
 0x15d   :  { %10389 = vrcp.f32 %v1416_v21 }
 0x167   :  { %v10390_v54 = vpop.eup %10389 }
 0x168   :  { %v1420_v3 = vmul.f32 0.0, %v10390_v54 }
 0x1cb   :  { %v1423_v22 = vpop.permute.xlu0 %1422 }
 0x1cc   :  { %v1425_v60 = vmul.f32 %v10390_v54, %v1423_v22 }
 0x1ce   :  { %1427 = vrot.lane.b32.xlu0 %v1425_v60, %s10489_s27 }
 0x240   :  { %v1428_v20 = vpop.permute.xlu0 %1427 }
 0x241   :  { %v11026_v32 = vadd.f32 %v1428_v20, %v1420_v3 }
 0x243   :  { %10391 = vtanh.f32 %v11026_v32 }
 0x24d   :  { %v10392_v51 = vpop.eup %10391 }
 0x24e   :  { %1433 = vrot.lane.b32.xlu1 %v10392_v51, %s10488_s4 }
 0x2c0   :  { %v1434_v57 = vpop.permute.xlu1 %1433 }
 0x2c1   :  { %v1436_v2 = vmul.f32 %v10390_v54, %v1434_v57 }
 0x2c3   :  { %1438 = vrot.lane.b32.xlu1 %v1436_v2, %s10489_s27 }
 0x335   :  { %v1439_v56 = vpop.permute.xlu1 %1438 }
 0x336   :  { %1441 = vst.msk [vmem:[#allocation2] sm:$0xff] %vm923_vm2, %v1439_v56  ;;  %v1442_v61 = vsel %vm923_vm2, %v1439_v56, 0 }
 0x337   :  { %v1513_v43 = vand.u32 4294901760, %v1442_v61 }
 0x339   :  { %v1514_v5 = vsub.f32 %v1442_v61, %v1513_v43 }
 0x33b   :  { %v1515_v29 = vand.u32 4294901760, %v1514_v5 }
 0x33d   :  { %v1516_v30 = vsub.f32 %v1514_v5, %v1515_v29 }
 0x33f   :  { %v1517_v36 = vand.u32 4294901760, %v1516_v30 }
 0x341   :  { %8610 = vmatmul.mubr.f32.vlgmr.msra.gmra.mrb[2].mxu1 %v1517_v36 }
 0x342   :  { %9527 = vmatpush3.bf16.msra.mxu1 %v10835_v55  ;;  %8620 = vmatprep.mubr.msk.f32.mxu1 %vm10486_vm1, %v12621_v59 }
 0x343   :  { %9528 = vmatprep.subr.bf16.mxu1 %v12623_v9 }
 0x346   :  { %9530 = vmatpush3.bf16.msra.mxu1 %v10839_v18 }
 0x347   :  { %9531 = vmatprep.subr.bf16.mxu1 %v12623_v9 }
 0x349   :  { %8621 = vmatmul.mubr.f32.vlgmr.msra.gmra.mrb[2].mxu1 %v1513_v43 }
 0x34a   :  { %9533 = vmatpush3.bf16.msra.mxu1 %v10849_v58  ;;  %8631 = vmatprep.mubr.msk.f32.mxu1 %vm10486_vm1, %v12621_v59 }
 0x34b   :  { %9534 = vmatprep.subr.bf16.mxu1 %v12623_v9 }
 0x34e   :  { %9536 = vmatpush3.bf16.msra.mxu1 %v10860_v11 }
 0x34f   :  { %9537 = vmatprep.subr.bf16.mxu1 %v12623_v9 }
 0x351   :  { %8632 = vmatmul.mubr.f32.vlgmr.msra.gmra.mrb[2].mxu1 %v1514_v5 }
 0x352   :  { %9539 = vmatpush3.bf16.msra.mxu1 %v10870_v7  ;;  %8642 = vmatprep.mubr.msk.f32.mxu1 %vm10486_vm1, %v12621_v59 }
 0x353   :  { %9540 = vmatprep.subr.bf16.mxu1 %v12623_v9 }
 0x356   :  { %9542 = vmatpush3.bf16.msra.mxu1 %v10882_v12 }
 0x357   :  { %9543 = vmatprep.subr.bf16.mxu1 %v12623_v9 }
 0x359   :  { %8643 = vmatmul.mubr.f32.vlgmr.msra.gmra.mrb[2].mxu1 %v1515_v29 }
 0x35a   :  { %9545 = vmatpush3.bf16.msra.mxu1 %v10898_v1  ;;  %8653 = vmatprep.mubr.msk.f32.mxu1 %vm10486_vm1, %v12621_v59 }
 0x35b   :  { %9546 = vmatprep.subr.bf16.mxu1 %v12623_v9 }
 0x35e   :  { %9548 = vmatpush3.bf16.msra.mxu1 %v10911_v62 }
 0x35f   :  { %9549 = vmatprep.subr.bf16.mxu1 %v12623_v9 }
 0x361   :  { %8654 = vmatmul.mubr.f32.vlgmr.msra.gmra.mrb[2].mxu1 %v1513_v43 }
 0x362   :  { %9551 = vmatpush3.bf16.msra.mxu1 %v10870_v7  ;;  %8664 = vmatprep.mubr.msk.f32.mxu1 %vm10486_vm1, %v12621_v59 }
 0x363   :  { %9552 = vmatprep.subr.bf16.mxu1 %v12623_v9 }
 0x366   :  { %9554 = vmatpush3.bf16.msra.mxu1 %v10882_v12 }
 0x367   :  { %9555 = vmatprep.subr.bf16.mxu1 %v12623_v9 }
 0x369   :  { %8665 = vmatmul.mubr.f32.vlgmr.msra.gmra.mrb[2].mxu1 %v1513_v43 }
 0x36a   :  { %9557 = vmatpush3.bf16.msra.mxu1 %v10870_v7  ;;  %8675 = vmatprep.mubr.msk.f32.mxu1 %vm10486_vm1, %v12621_v59 }
 0x36b   :  { %9558 = vmatprep.subr.bf16.mxu1 %v12623_v9 }
 0x36e   :  { %9560 = vmatpush3.bf16.msra.mxu1 %v10882_v12 }
 0x36f   :  { %9561 = vmatprep.subr.bf16.mxu1 %v12623_v9 }
 0x43c   :  { %v1925_v31 = vpop.f32.mrb[2].mxu1 }
 0x43d   :  { %v1929_v34 = vadd.f32 %v11010_v27, %v1925_v31  ;;  %v8666_v37 = vpop.f32.mrb[3].mxu1 }
 0x43f   :  { %10393 = vtanh.f32 %v1929_v34  ;;  %v7626_v39 = vmul.f32 -1.442695, %v1929_v34 }
 0x441   :  { %10395 = vpow2.f32 %v7626_v39 }
 0x449   :  { %v10394_v35 = vpop.eup %10393 }
 0x44a   :  { %1939 = vrot.lane.b32.xlu0 %v10394_v35, %s10488_s4 }
 0x44b   :  { %v10396_v41 = vpop.eup %10395 }
 0x44c   :  { %v1933_v42 = vadd.f32 1.0, %v10396_v41 }
 0x44e   :  { %10397 = vrcp.f32 %v1933_v42 }
 0x458   :  { %v10398_v46 = vpop.eup %10397 }
 0x459   :  { %v1937_v15 = vmul.f32 %v10398_v46, %v11026_v32 }
 0x4bc   :  { %v1940_v50 = vpop.permute.xlu0 %1939 }
 0x4bd   :  { %v1942_v48 = vmul.f32 %v10398_v46, %v1940_v50 }
 0x4bf   :  { %1944 = vrot.lane.b32.xlu1 %v1942_v48, %s10489_s27 }
 0x531   :  { %v1945_v16 = vpop.permute.xlu1 %1944 }
 0x532   :  { %v11073_v23 = vadd.f32 %v1945_v16, %v1937_v15 }
 0x534   :  { %10399 = vtanh.f32 %v11073_v23 }
 0x53e   :  { %v10400_v24 = vpop.eup %10399 }
 0x53f   :  { %1950 = vrot.lane.b32.xlu0 %v10400_v24, %s10488_s4 }
 0x5b1   :  { %v1951_v25 = vpop.permute.xlu0 %1950 }
 0x5b2   :  { %v1953_v27 = vmul.f32 %v10398_v46, %v1951_v25 }
 0x5b4   :  { %1955 = vrot.lane.b32.xlu1 %v1953_v27, %s10489_s27 }
 0x626   :  { %v1956_v28 = vpop.permute.xlu1 %1955 }
 0x627   :  { %1959 = vst.msk [vmem:[#allocation2 + $0x8] sm:$0xff] %vm923_vm2, %v1956_v28  ;;  %v1960_v38 = vsel %vm923_vm2, %v1956_v28, 0 }
 0x628   :  { %v2031_v4 = vand.u32 4294901760, %v1960_v38 }
 0x62a   :  { %v2032_v19 = vsub.f32 %v1960_v38, %v2031_v4 }
 0x62c   :  { %v2033_v33 = vand.u32 4294901760, %v2032_v19 }
 0x62e   :  { %v2034_v45 = vsub.f32 %v2032_v19, %v2033_v33 }
 0x630   :  { %v2035_v49 = vand.u32 4294901760, %v2034_v45 }
 0x632   :  { %8676 = vmatmul.mubr.f32.vlgmr.msra.gmra.mrb[4].mxu1 %v2035_v49 }
 0x633   :  { %9563 = vmatpush3.bf16.msra.mxu1 %v10835_v55  ;;  %8686 = vmatprep.mubr.msk.f32.mxu1 %vm10486_vm1, %v12621_v59 }
 0x634   :  { %9564 = vmatprep.subr.bf16.mxu1 %v12623_v9 }
 0x637   :  { %9566 = vmatpush3.bf16.msra.mxu1 %v10839_v18 }
 0x638   :  { %9567 = vmatprep.subr.bf16.mxu1 %v12623_v9 }
 0x63a   :  { %8687 = vmatmul.mubr.f32.vlgmr.msra.gmra.mrb[4].mxu1 %v2031_v4 }
 0x63b   :  { %9569 = vmatpush3.bf16.msra.mxu1 %v10849_v58  ;;  %8697 = vmatprep.mubr.msk.f32.mxu1 %vm10486_vm1, %v12621_v59 }
 0x63c   :  { %9570 = vmatprep.subr.bf16.mxu1 %v12623_v9 }
 0x63f   :  { %9572 = vmatpush3.bf16.msra.mxu1 %v10860_v11 }
 0x640   :  { %9573 = vmatprep.subr.bf16.mxu1 %v12623_v9 }
 0x642   :  { %8698 = vmatmul.mubr.f32.vlgmr.msra.gmra.mrb[4].mxu1 %v2032_v19 }
 0x643   :  { %9575 = vmatpush3.bf16.msra.mxu1 %v10870_v7  ;;  %8708 = vmatprep.mubr.msk.f32.mxu1 %vm10486_vm1, %v12621_v59 }
 0x644   :  { %9576 = vmatprep.subr.bf16.mxu1 %v12623_v9 }
 0x647   :  { %9578 = vmatpush3.bf16.msra.mxu1 %v10882_v12 }
 0x648   :  { %9579 = vmatprep.subr.bf16.mxu1 %v12623_v9 }
 0x64a   :  { %8709 = vmatmul.mubr.f32.vlgmr.msra.gmra.mrb[4].mxu1 %v2033_v33 }
 0x64b   :  { %9581 = vmatpush3.bf16.msra.mxu1 %v10898_v1  ;;  %8719 = vmatprep.mubr.msk.f32.mxu1 %vm10486_vm1, %v12621_v59 }
 0x64c   :  { %9582 = vmatprep.subr.bf16.mxu1 %v12623_v9 }
 0x64f   :  { %9584 = vmatpush3.bf16.msra.mxu1 %v10911_v62 }
 0x650   :  { %9585 = vmatprep.subr.bf16.mxu1 %v12623_v9 }
 0x652   :  { %8720 = vmatmul.mubr.f32.vlgmr.msra.gmra.mrb[4].mxu1 %v2031_v4 }
 0x653   :  { %9587 = vmatpush3.bf16.msra.mxu1 %v10870_v7  ;;  %8730 = vmatprep.mubr.msk.f32.mxu1 %vm10486_vm1, %v12621_v59 }
 0x654   :  { %9588 = vmatprep.subr.bf16.mxu1 %v12623_v9 }
 0x657   :  { %9590 = vmatpush3.bf16.msra.mxu1 %v10882_v12 }
 0x658   :  { %9627 = vmatprep.subr.bf16.mxu1 %v12623_v9 }
 0x65a   :  { %8731 = vmatmul.mubr.f32.vlgmr.msra.gmra.mrb[4].mxu1 %v2031_v4 }
 0x65b   :  { %9629 = vmatpush3.bf16.msra.mxu1 %v10870_v7  ;;  %8807 = vmatprep.mubr.msk.f32.mxu1 %vm10486_vm1, %v12621_v59 }
 0x65c   :  { %9630 = vmatprep.subr.bf16.mxu1 %v12623_v9 }
 0x65f   :  { %9632 = vmatpush3.bf16.msra.mxu1 %v10882_v12 }
 0x660   :  { %9633 = vmatprep.subr.bf16.mxu1 %v12623_v9 }
 0x72d   :  { %v2443_v14 = vpop.f32.mrb[4].mxu1 }
 0x72e   :  { %v2447_v17 = vadd.f32 %v11014_v10, %v2443_v14  ;;  %v8732_v63 = vpop.f32.mrb[5].mxu1 }
 0x730   :  { %10401 = vtanh.f32 %v2447_v17  ;;  %v7627_v44 = vmul.f32 -1.442695, %v2447_v17 }
 0x732   :  { %10403 = vpow2.f32 %v7627_v44 }
 0x73a   :  { %v10402_v6 = vpop.eup %10401 }
 0x73b   :  { %2457 = vrot.lane.b32.xlu0 %v10402_v6, %s10488_s4 }
 0x73c   :  { %v10404_v52 = vpop.eup %10403 }
 0x73d   :  { %v2451_v13 = vadd.f32 1.0, %v10404_v52 }
 0x73f   :  { %10405 = vrcp.f32 %v2451_v13 }
 0x749   :  { %v10406_v0 = vpop.eup %10405 }
 0x74a   :  { %v2455_v22 = vmul.f32 %v10406_v0, %v11073_v23 }
 0x7ad   :  { %v2458_v21 = vpop.permute.xlu0 %2457 }
 0x7ae   :  { %v2460_v54 = vmul.f32 %v10406_v0, %v2458_v21 }
 0x7b0   :  { %2462 = vrot.lane.b32.xlu1 %v2460_v54, %s10489_s27 }
 0x822   :  { %v2463_v60 = vpop.permute.xlu1 %2462 }
 0x823   :  { %v11120_v3 = vadd.f32 %v2463_v60, %v2455_v22 }
 0x825   :  { %10407 = vtanh.f32 %v11120_v3 }
 0x82f   :  { %v10408_v10 = vpop.eup %10407 }
 0x830   :  { %2468 = vrot.lane.b32.xlu0 %v10408_v10, %s10488_s4 }
 0x8a2   :  { %v2469_v20 = vpop.permute.xlu0 %2468 }
 0x8a3   :  { %v2471_v32 = vmul.f32 %v10406_v0, %v2469_v20 }
 0x8a5   :  { %2473 = vrot.lane.b32.xlu1 %v2471_v32, %s10489_s27 }
 0x917   :  { %v2474_v51 = vpop.permute.xlu1 %2473 }
 0x918   :  { %2477 = vst.msk [vmem:[#allocation2 + $0x10] sm:$0xff] %vm923_vm2, %v2474_v51  ;;  %v2478_v57 = vsel %vm923_vm2, %v2474_v51, 0 }
 0x919   :  { %v2549_v2 = vand.u32 4294901760, %v2478_v57 }
 0x91b   :  { %v2550_v56 = vsub.f32 %v2478_v57, %v2549_v2 }
 0x91d   :  { %v2551_v61 = vand.u32 4294901760, %v2550_v56 }
 0x91f   :  { %v2552_v43 = vsub.f32 %v2550_v56, %v2551_v61 }
 0x921   :  { %v2553_v5 = vand.u32 4294901760, %v2552_v43 }
 0x923   :  { %8742 = vmatmul.mubr.f32.vlgmr.msra.gmra.mrb[10].mxu0 %v2553_v5 }
 0x924   :  { %9599 = vmatpush3.bf16.msra.mxu0 %v10835_v55  ;;  %8752 = vmatprep.mubr.msk.f32.mxu0 %vm10486_vm1, %v12621_v59 }
 0x925   :  { %9600 = vmatprep.subr.bf16.mxu0 %v12623_v9 }
 0x928   :  { %9602 = vmatpush3.bf16.msra.mxu0 %v10839_v18 }
 0x929   :  { %9603 = vmatprep.subr.bf16.mxu0 %v12623_v9 }
 0x92b   :  { %8753 = vmatmul.mubr.f32.vlgmr.msra.gmra.mrb[10].mxu0 %v2549_v2 }
 0x92c   :  { %9605 = vmatpush3.bf16.msra.mxu0 %v10849_v58  ;;  %8763 = vmatprep.mubr.msk.f32.mxu0 %vm10486_vm1, %v12621_v59 }
 0x92d   :  { %9606 = vmatprep.subr.bf16.mxu0 %v12623_v9 }
 0x930   :  { %9608 = vmatpush3.bf16.msra.mxu0 %v10860_v11 }
 0x931   :  { %9609 = vmatprep.subr.bf16.mxu0 %v12623_v9 }
 0x933   :  { %8764 = vmatmul.mubr.f32.vlgmr.msra.gmra.mrb[10].mxu0 %v2550_v56 }
 0x934   :  { %9611 = vmatpush3.bf16.msra.mxu0 %v10870_v7  ;;  %8774 = vmatprep.mubr.msk.f32.mxu0 %vm10486_vm1, %v12621_v59 }
 0x935   :  { %9612 = vmatprep.subr.bf16.mxu0 %v12623_v9 }
 0x938   :  { %9614 = vmatpush3.bf16.msra.mxu0 %v10882_v12 }
 0x939   :  { %9615 = vmatprep.subr.bf16.mxu0 %v12623_v9 }
 0x93b   :  { %8775 = vmatmul.mubr.f32.vlgmr.msra.gmra.mrb[10].mxu0 %v2551_v61 }
 0x93c   :  { %9617 = vmatpush3.bf16.msra.mxu0 %v10898_v1  ;;  %8785 = vmatprep.mubr.msk.f32.mxu0 %vm10486_vm1, %v12621_v59 }
 0x93d   :  { %9618 = vmatprep.subr.bf16.mxu0 %v12623_v9 }
 0x940   :  { %9620 = vmatpush3.bf16.msra.mxu0 %v10911_v62 }
 0x941   :  { %9621 = vmatprep.subr.bf16.mxu0 %v12623_v9 }
 0x943   :  { %8786 = vmatmul.mubr.f32.vlgmr.msra.gmra.mrb[10].mxu0 %v2549_v2 }
 0x944   :  { %9623 = vmatpush3.bf16.msra.mxu0 %v10870_v7  ;;  %8796 = vmatprep.mubr.msk.f32.mxu0 %vm10486_vm1, %v12621_v59 }
 0x945   :  { %9624 = vmatprep.subr.bf16.mxu0 %v12623_v9 }
 0x948   :  { %9626 = vmatpush3.bf16.msra.mxu0 %v10882_v12 }
 0x949   :  { %9663 = vmatprep.subr.bf16.mxu0 %v12623_v9 }
 0x94b   :  { %8797 = vmatmul.mubr.f32.vlgmr.msra.gmra.mrb[10].mxu0 %v2549_v2 }
 0x94c   :  { %9665 = vmatpush3.bf16.msra.mxu0 %v10870_v7  ;;  %8873 = vmatprep.mubr.msk.f32.mxu0 %vm10486_vm1, %v12621_v59 }
 0x94d   :  { %9666 = vmatprep.subr.bf16.mxu0 %v12623_v9 }
 0x950   :  { %9668 = vmatpush3.bf16.msra.mxu0 %v10882_v12 }
 0x951   :  { %9669 = vmatprep.subr.bf16.mxu0 %v12623_v9 }
 0xa1e   :  { %v2961_v29 = vpop.f32.mrb[10].mxu0 }
 0xa1f   :  { %v2965_v30 = vadd.f32 %v11012_v40, %v2961_v29  ;;  %v8798_v36 = vpop.f32.mrb[11].mxu0 }
 0xa21   :  { %10409 = vtanh.f32 %v2965_v30  ;;  %v7628_v34 = vmul.f32 -1.442695, %v2965_v30 }
 0xa23   :  { %10411 = vpow2.f32 %v7628_v34 }
 0xa2b   :  { %v10410_v31 = vpop.eup %10409 }
 0xa2c   :  { %2975 = vrot.lane.b32.xlu0 %v10410_v31, %s10488_s4 }
 0xa2d   :  { %v10412_v37 = vpop.eup %10411 }
 0xa2e   :  { %v2969_v35 = vadd.f32 1.0, %v10412_v37 }
 0xa30   :  { %10413 = vrcp.f32 %v2969_v35 }
 0xa3a   :  { %v10414_v39 = vpop.eup %10413 }
 0xa3b   :  { %v2973_v46 = vmul.f32 %v10414_v39, %v11120_v3 }
 0xa9e   :  { %v2976_v41 = vpop.permute.xlu0 %2975 }
 0xa9f   :  { %v2978_v42 = vmul.f32 %v10414_v39, %v2976_v41 }
 0xaa1   :  { %2980 = vrot.lane.b32.xlu1 %v2978_v42, %s10489_s27 }
 0xb13   :  { %v2981_v50 = vpop.permute.xlu1 %2980 }
 0xb14   :  { %v11167_v48 = vadd.f32 %v2981_v50, %v2973_v46 }
 0xb16   :  { %10415 = vtanh.f32 %v11167_v48 }
 0xb20   :  { %v10416_v40 = vpop.eup %10415 }
 0xb21   :  { %2986 = vrot.lane.b32.xlu0 %v10416_v40, %s10488_s4 }
 0xb93   :  { %v2987_v15 = vpop.permute.xlu0 %2986 }
 0xb94   :  { %v2989_v16 = vmul.f32 %v10414_v39, %v2987_v15 }
 0xb96   :  { %2991 = vrot.lane.b32.xlu1 %v2989_v16, %s10489_s27 }
 0xc08   :  { %v2992_v23 = vpop.permute.xlu1 %2991 }
 0xc09   :  { %2995 = vst.msk [vmem:[#allocation2 + $0x18] sm:$0xff] %vm923_vm2, %v2992_v23  ;;  %v2996_v24 = vsel %vm923_vm2, %v2992_v23, 0 }
 0xc0a   :  { %v3067_v25 = vand.u32 4294901760, %v2996_v24 }
 0xc0c   :  { %v3068_v27 = vsub.f32 %v2996_v24, %v3067_v25 }
 0xc0e   :  { %v3069_v28 = vand.u32 4294901760, %v3068_v27 }
 0xc10   :  { %v3070_v38 = vsub.f32 %v3068_v27, %v3069_v28 }
 0xc12   :  { %v3071_v4 = vand.u32 4294901760, %v3070_v38 }
 0xc14   :  { %8808 = vmatmul.mubr.f32.vlgmr.msra.gmra.mrb[6].mxu1 %v3071_v4 }
 0xc15   :  { %9635 = vmatpush3.bf16.msra.mxu1 %v10835_v55  ;;  %8818 = vmatprep.mubr.msk.f32.mxu1 %vm10486_vm1, %v12621_v59 }
 0xc16   :  { %9636 = vmatprep.subr.bf16.mxu1 %v12623_v9 }
 0xc19   :  { %9638 = vmatpush3.bf16.msra.mxu1 %v10839_v18 }
 0xc1a   :  { %9639 = vmatprep.subr.bf16.mxu1 %v12623_v9 }
 0xc1c   :  { %8819 = vmatmul.mubr.f32.vlgmr.msra.gmra.mrb[6].mxu1 %v3067_v25 }
 0xc1d   :  { %9641 = vmatpush3.bf16.msra.mxu1 %v10849_v58  ;;  %8829 = vmatprep.mubr.msk.f32.mxu1 %vm10486_vm1, %v12621_v59 }
 0xc1e   :  { %9642 = vmatprep.subr.bf16.mxu1 %v12623_v9 }
 0xc21   :  { %9644 = vmatpush3.bf16.msra.mxu1 %v10860_v11 }
 0xc22   :  { %9645 = vmatprep.subr.bf16.mxu1 %v12623_v9 }
 0xc24   :  { %8830 = vmatmul.mubr.f32.vlgmr.msra.gmra.mrb[6].mxu1 %v3068_v27 }
 0xc25   :  { %9647 = vmatpush3.bf16.msra.mxu1 %v10870_v7  ;;  %8840 = vmatprep.mubr.msk.f32.mxu1 %vm10486_vm1, %v12621_v59 }
 0xc26   :  { %9648 = vmatprep.subr.bf16.mxu1 %v12623_v9 }
 0xc29   :  { %9650 = vmatpush3.bf16.msra.mxu1 %v10882_v12 }
 0xc2a   :  { %9651 = vmatprep.subr.bf16.mxu1 %v12623_v9 }
 0xc2c   :  { %8841 = vmatmul.mubr.f32.vlgmr.msra.gmra.mrb[6].mxu1 %v3069_v28 }
 0xc2d   :  { %9653 = vmatpush3.bf16.msra.mxu1 %v10898_v1  ;;  %8851 = vmatprep.mubr.msk.f32.mxu1 %vm10486_vm1, %v12621_v59 }
 0xc2e   :  { %9654 = vmatprep.subr.bf16.mxu1 %v12623_v9 }
 0xc31   :  { %9656 = vmatpush3.bf16.msra.mxu1 %v10911_v62 }
 0xc32   :  { %9657 = vmatprep.subr.bf16.mxu1 %v12623_v9 }
 0xc34   :  { %8852 = vmatmul.mubr.f32.vlgmr.msra.gmra.mrb[6].mxu1 %v3067_v25 }
 0xc35   :  { %9659 = vmatpush3.bf16.msra.mxu1 %v10870_v7  ;;  %8862 = vmatprep.mubr.msk.f32.mxu1 %vm10486_vm1, %v12621_v59 }
 0xc36   :  { %9660 = vmatprep.subr.bf16.mxu1 %v12623_v9 }
 0xc39   :  { %9662 = vmatpush3.bf16.msra.mxu1 %v10882_v12 }
 0xc3a   :  { %9699 = vmatprep.subr.bf16.mxu1 %v12623_v9 }
 0xc3c   :  { %8863 = vmatmul.mubr.f32.vlgmr.msra.gmra.mrb[6].mxu1 %v3067_v25 }
 0xc3d   :  { %9701 = vmatpush3.bf16.msra.mxu1 %v10870_v7  ;;  %8939 = vmatprep.mubr.msk.f32.mxu1 %vm10486_vm1, %v12621_v59 }
 0xc3e   :  { %9702 = vmatprep.subr.bf16.mxu1 %v12623_v9 }
 0xc41   :  { %9704 = vmatpush3.bf16.msra.mxu1 %v10882_v12 }
 0xc42   :  { %9705 = vmatprep.subr.bf16.mxu1 %v12623_v9 }
 0xd0f   :  { %v3479_v19 = vpop.f32.mrb[6].mxu1 }
 0xd10   :  { %v3483_v33 = vadd.f32 %v11018_v8, %v3479_v19  ;;  %v8864_v45 = vpop.f32.mrb[7].mxu1 }
 0xd12   :  { %10417 = vtanh.f32 %v3483_v33  ;;  %v7629_v14 = vmul.f32 -1.442695, %v3483_v33 }
 0xd14   :  { %10419 = vpow2.f32 %v7629_v14 }
 0xd1c   :  { %v10418_v49 = vpop.eup %10417 }
 0xd1d   :  { %3493 = vrot.lane.b32.xlu0 %v10418_v49, %s10488_s4 }
 0xd1e   :  { %v10420_v17 = vpop.eup %10419 }
 0xd1f   :  { %v3487_v63 = vadd.f32 1.0, %v10420_v17 }
 0xd21   :  { %10421 = vrcp.f32 %v3487_v63 }
 0xd2b   :  { %v10422_v6 = vpop.eup %10421 }
 0xd2c   :  { %v3491_v13 = vmul.f32 %v10422_v6, %v11167_v48 }
 0xd8f   :  { %v3494_v44 = vpop.permute.xlu0 %3493 }
 0xd90   :  { %v3496_v52 = vmul.f32 %v10422_v6, %v3494_v44 }
 0xd92   :  { %3498 = vrot.lane.b32.xlu1 %v3496_v52, %s10489_s27 }
 0xe04   :  { %v3499_v0 = vpop.permute.xlu1 %3498 }
 0xe05   :  { %v11214_v21 = vadd.f32 %v3499_v0, %v3491_v13 }
 0xe07   :  { %10423 = vtanh.f32 %v11214_v21 }
 0xe11   :  { %v10424_v8 = vpop.eup %10423 }
 0xe12   :  { %3504 = vrot.lane.b32.xlu0 %v10424_v8, %s10488_s4 }
 0xe84   :  { %v3505_v54 = vpop.permute.xlu0 %3504 }
 0xe85   :  { %v3507_v22 = vmul.f32 %v10422_v6, %v3505_v54 }
 0xe87   :  { %3509 = vrot.lane.b32.xlu1 %v3507_v22, %s10489_s27 }
 0xef9   :  { %v3510_v60 = vpop.permute.xlu1 %3509 }
 0xefa   :  { %3513 = vst.msk [vmem:[#allocation2 + $0x20] sm:$0xff] %vm923_vm2, %v3510_v60  ;;  %v3514_v3 = vsel %vm923_vm2, %v3510_v60, 0 }
 0xefb   :  { %v3585_v10 = vand.u32 4294901760, %v3514_v3 }
 0xefd   :  { %v3586_v20 = vsub.f32 %v3514_v3, %v3585_v10 }
 0xeff   :  { %v3587_v32 = vand.u32 4294901760, %v3586_v20 }
 0xf01   :  { %v3588_v51 = vsub.f32 %v3586_v20, %v3587_v32 }
 0xf03   :  { %v3589_v57 = vand.u32 4294901760, %v3588_v51 }
 0xf05   :  { %8874 = vmatmul.mubr.f32.vlgmr.msra.gmra.mrb[12].mxu0 %v3589_v57 }
 0xf06   :  { %9671 = vmatpush3.bf16.msra.mxu0 %v10835_v55  ;;  %8884 = vmatprep.mubr.msk.f32.mxu0 %vm10486_vm1, %v12621_v59 }
 0xf07   :  { %9672 = vmatprep.subr.bf16.mxu0 %v12623_v9 }
 0xf0a   :  { %9674 = vmatpush3.bf16.msra.mxu0 %v10839_v18 }
 0xf0b   :  { %9675 = vmatprep.subr.bf16.mxu0 %v12623_v9 }
 0xf0d   :  { %8885 = vmatmul.mubr.f32.vlgmr.msra.gmra.mrb[12].mxu0 %v3585_v10 }
 0xf0e   :  { %9677 = vmatpush3.bf16.msra.mxu0 %v10849_v58  ;;  %8895 = vmatprep.mubr.msk.f32.mxu0 %vm10486_vm1, %v12621_v59 }
 0xf0f   :  { %9678 = vmatprep.subr.bf16.mxu0 %v12623_v9 }
 0xf12   :  { %9680 = vmatpush3.bf16.msra.mxu0 %v10860_v11 }
 0xf13   :  { %9681 = vmatprep.subr.bf16.mxu0 %v12623_v9 }
 0xf15   :  { %8896 = vmatmul.mubr.f32.vlgmr.msra.gmra.mrb[12].mxu0 %v3586_v20  ;;  %v11346_v20 = vld [vmem:[#allocation2] sm:$0xff] }
 0xf16   :  { %9683 = vmatpush3.bf16.msra.mxu0 %v10870_v7  ;;  %8906 = vmatprep.mubr.msk.f32.mxu0 %vm10486_vm1, %v12621_v59 }
 0xf17   :  { %9684 = vmatprep.subr.bf16.mxu0 %v12623_v9 }
 0xf1a   :  { %9686 = vmatpush3.bf16.msra.mxu0 %v10882_v12 }
 0xf1b   :  { %9687 = vmatprep.subr.bf16.mxu0 %v12623_v9 }
 0xf1d   :  { %8907 = vmatmul.mubr.f32.vlgmr.msra.gmra.mrb[12].mxu0 %v3587_v32  ;;  %v5124_v32 = vrot.slane %v11346_v20, 2 }
 0xf1e   :  { %9689 = vmatpush3.bf16.msra.mxu0 %v10898_v1  ;;  %8917 = vmatprep.mubr.msk.f32.mxu0 %vm10486_vm1, %v12621_v59 }
 0xf1f   :  { %9690 = vmatprep.subr.bf16.mxu0 %v12623_v9 }
 0xf22   :  { %9692 = vmatpush3.bf16.msra.mxu0 %v10911_v62 }
 0xf23   :  { %9693 = vmatprep.subr.bf16.mxu0 %v12623_v9 }
 0xf25   :  { %8918 = vmatmul.mubr.f32.vlgmr.msra.gmra.mrb[12].mxu0 %v3585_v10 }
 0xf26   :  { %9695 = vmatpush3.bf16.msra.mxu0 %v10870_v7  ;;  %8928 = vmatprep.mubr.msk.f32.mxu0 %vm10486_vm1, %v12621_v59 }
 0xf27   :  { %9696 = vmatprep.subr.bf16.mxu0 %v12623_v9 }
 0xf2a   :  { %9698 = vmatpush3.bf16.msra.mxu0 %v10882_v12 }
 0xf2b   :  { %9735 = vmatprep.subr.bf16.mxu0 %v12623_v9 }
 0xf2d   :  { %8929 = vmatmul.mubr.f32.vlgmr.msra.gmra.mrb[12].mxu0 %v3585_v10 }
 0xf2e   :  { %9737 = vmatpush3.bf16.msra.mxu0 %v10870_v7  ;;  %9005 = vmatprep.mubr.msk.f32.mxu0 %vm10486_vm1, %v12621_v59 }
 0xf2f   :  { %9738 = vmatprep.subr.bf16.mxu0 %v12623_v9 }
 0xf32   :  { %9740 = vmatpush3.bf16.msra.mxu0 %v10882_v12 }
 0xf33   :  { %9741 = vmatprep.subr.bf16.mxu0 %v12623_v9 }
0x1000   :  { %v3997_v2 = vpop.f32.mrb[12].mxu0 }
0x1001   :  { %v4001_v56 = vadd.f32 %v11016_v26, %v3997_v2  ;;  %v8930_v61 = vpop.f32.mrb[13].mxu0 }
0x1002   :  { %v5076_v61 = vld [vmem:[%s12601_s1] sm:$0x3] }
0x1003   :  { %10425 = vtanh.f32 %v4001_v56  ;;  %v7630_v5 = vmul.f32 -1.442695, %v4001_v56 }
0x1005   :  { %10427 = vpow2.f32 %v7630_v5  ;;  %v5080_v5 = vld [vmem:[%s12601_s1 + $0x8] sm:$0x3] }
0x100d   :  { %v10426_v43 = vpop.eup %10425 }
0x100e   :  { %4011 = vrot.lane.b32.xlu0 %v10426_v43, %s10488_s4  ;;  %v5078_v43 = vld [vmem:[%s12601_s1 + $0x4] sm:$0x3] }
0x100f   :  { %v10428_v29 = vpop.eup %10427 }
0x1010   :  { %v4005_v30 = vadd.f32 1.0, %v10428_v29  ;;  %v11365_v29 = vld [vmem:[#allocation2 + $0x8] sm:$0xff] }
0x1012   :  { %10429 = vrcp.f32 %v4005_v30  ;;  %v5125_v30 = vrot.slane %v11365_v29, 2 }
0x101c   :  { %v10430_v36 = vpop.eup %10429 }
0x101d   :  { %v4009_v37 = vmul.f32 %v10430_v36, %v11214_v21 }
0x1080   :  { %v4012_v31 = vpop.permute.xlu0 %4011 }
0x1081   :  { %v4014_v34 = vmul.f32 %v10430_v36, %v4012_v31  ;;  %v5189_v31 = vld [vmem:[%s12605_s5 + $0x80] sm:$0xff] }
0x1083   :  { %4016 = vrot.lane.b32.xlu1 %v4014_v34, %s10489_s27  ;;  %v5190_v34 = vld [vmem:[%s12605_s5 + $0x88] sm:$0xff] }
0x10f5   :  { %v4017_v35 = vpop.permute.xlu1 %4016 }
0x10f6   :  { %v4019_v39 = vadd.f32 %v4017_v35, %v4009_v37  ;;  %v5173_v37 = vld [vmem:[%s12605_s5] sm:$0xff]  ;;  %v5449_v35 = vand.u32 4294901760, %v5189_v31 }
0x10f8   :  { %10431 = vtanh.f32 %v4019_v39 }
0x1102   :  { %v10432_v26 = vpop.eup %10431 }
0x1103   :  { %4022 = vrot.lane.b32.xlu0 %v10432_v26, %s10488_s4  ;;  %v5174_v26 = vld [vmem:[%s12605_s5 + $0x8] sm:$0xff] }
0x1175   :  { %v4023_v41 = vpop.permute.xlu0 %4022 }
0x1176   :  { %v4025_v42 = vmul.f32 %v10430_v36, %v4023_v41  ;;  %v11369_v36 = vld [vmem:[#allocation2 + $0x18] sm:$0xff]  ;;  %v5401_v41 = vand.u32 4294901760, %v5173_v37 }
0x1178   :  { %4027 = vrot.lane.b32.xlu1 %v4025_v42, %s10489_s27  ;;  %v5191_v42 = vld [vmem:[%s12605_s5 + $0x90] sm:$0xff] }
0x11ea   :  { %v4028_v46 = vpop.permute.xlu1 %4027 }
0x11eb   :  { %4031 = vst.msk [vmem:[#allocation2 + $0x28] sm:$0xff] %vm923_vm2, %v4028_v46  ;;  %v4032_v50 = vsel %vm923_vm2, %v4028_v46, 0  ;;  %v5192_v46 = vld [vmem:[%s12605_s5 + $0x98] sm:$0xff] }
0x11ec   :  { %v4103_v48 = vand.u32 4294901760, %v4032_v50 }
0x11ee   :  { %v4104_v40 = vsub.f32 %v4032_v50, %v4103_v48  ;;  %v5127_v50 = vrot.slane %v11369_v36, 2 }
0x11f0   :  { %v4105_v15 = vand.u32 4294901760, %v4104_v40 }
0x11f2   :  { %v4106_v16 = vsub.f32 %v4104_v40, %v4105_v15 }
0x11f4   :  { %v4107_v23 = vand.u32 4294901760, %v4106_v16  ;;  %v5175_v16 = vld [vmem:[%s12605_s5 + $0x10] sm:$0xff] }
0x11f6   :  { %8940 = vmatmul.mubr.f32.vlgmr.msra.gmra.mrb[8].mxu1 %v4107_v23  ;;  %v5176_v23 = vld [vmem:[%s12605_s5 + $0x18] sm:$0xff] }
0x11f7   :  { %9707 = vmatpush3.bf16.msra.mxu1 %v10835_v55  ;;  %8950 = vmatprep.mubr.msk.f32.mxu1 %vm10486_vm1, %v12621_v59 }
0x11f8   :  { %9708 = vmatprep.subr.bf16.mxu1 %v12623_v9 }
0x11fb   :  { %9710 = vmatpush3.bf16.msra.mxu1 %v10839_v18 }
0x11fc   :  { %9711 = vmatprep.subr.bf16.mxu1 %v12623_v9 }
0x11fe   :  { %8951 = vmatmul.mubr.f32.vlgmr.msra.gmra.mrb[8].mxu1 %v4103_v48 }
0x11ff   :  { %9713 = vmatpush3.bf16.msra.mxu1 %v10849_v58  ;;  %8961 = vmatprep.mubr.msk.f32.mxu1 %vm10486_vm1, %v12621_v59 }
0x1200   :  { %9714 = vmatprep.subr.bf16.mxu1 %v12623_v9 }
0x1203   :  { %9716 = vmatpush3.bf16.msra.mxu1 %v10860_v11 }
0x1204   :  { %9717 = vmatprep.subr.bf16.mxu1 %v12623_v9 }
0x1206   :  { %8962 = vmatmul.mubr.f32.vlgmr.msra.gmra.mrb[8].mxu1 %v4104_v40  ;;  %v5455_v40 = vand.u32 4294901760, %v5191_v42 }
0x1207   :  { %9719 = vmatpush3.bf16.msra.mxu1 %v10870_v7  ;;  %8972 = vmatprep.mubr.msk.f32.mxu1 %vm10486_vm1, %v12621_v59 }
0x1208   :  { %9720 = vmatprep.subr.bf16.mxu1 %v12623_v9 }
0x120b   :  { %9722 = vmatpush3.bf16.msra.mxu1 %v10882_v12 }
0x120c   :  { %9723 = vmatprep.subr.bf16.mxu1 %v12623_v9 }
0x120e   :  { %8973 = vmatmul.mubr.f32.vlgmr.msra.gmra.mrb[8].mxu1 %v4105_v15  ;;  %v5458_v15 = vand.u32 4294901760, %v5192_v46 }
0x120f   :  { %9725 = vmatpush3.bf16.msra.mxu1 %v10898_v1  ;;  %8983 = vmatprep.mubr.msk.f32.mxu1 %vm10486_vm1, %v12621_v59 }
0x1210   :  { %9726 = vmatprep.subr.bf16.mxu1 %v12623_v9 }
0x1213   :  { %9728 = vmatpush3.bf16.msra.mxu1 %v10911_v62 }
0x1214   :  { %9729 = vmatprep.subr.bf16.mxu1 %v12623_v9 }
0x1216   :  { %8984 = vmatmul.mubr.f32.vlgmr.msra.gmra.mrb[8].mxu1 %v4103_v48 }
0x1217   :  { %9731 = vmatpush3.bf16.msra.mxu1 %v10870_v7  ;;  %8994 = vmatprep.mubr.msk.f32.mxu1 %vm10486_vm1, %v12621_v59 }
0x1218   :  { %9732 = vmatprep.subr.bf16.mxu1 %v12623_v9 }
0x121b   :  { %9734 = vmatpush3.bf16.msra.mxu1 %v10882_v12 }
0x121e   :  { %8995 = vmatmul.mubr.f32.vlgmr.msra.gmra.mrb[8].mxu1 %v4103_v48  ;;  %v5404_v48 = vand.u32 4294901760, %v5174_v26 }
0x12f1   :  { %v4515_v24 = vpop.f32.mrb[8].mxu1 }
0x12f2   :  { %v4519_v25 = vadd.f32 %v11022_v53, %v4515_v24  ;;  %v8996_v27 = vpop.f32.mrb[9].mxu1  ;;  %v11397_v24 = vsub.f32 %v5189_v31, %v5449_v35 }
0x12f3   :  { %v11401_v27 = vsub.f32 %v5173_v37, %v5401_v41 }
0x12f4   :  { %10433 = vtanh.f32 %v4519_v25  ;;  %v7631_v38 = vmul.f32 -1.442695, %v4519_v25 }
0x12f6   :  { %10435 = vpow2.f32 %v7631_v38  ;;  %v11406_v38 = vld [vmem:[%s12605_s5 + $0xa0] sm:$0xff] }
0x12fe   :  { %v10434_v28 = vpop.eup %10433 }
0x12ff   :  { %4529 = vrot.lane.b32.xlu0 %v10434_v28, %s10488_s4  ;;  %v5407_v28 = vand.u32 4294901760, %v5175_v16 }
0x1300   :  { %v10436_v4 = vpop.eup %10435 }
0x1301   :  { %v4523_v19 = vadd.f32 1.0, %v10436_v4  ;;  %v11409_v4 = vsub.f32 %v5174_v26, %v5404_v48  ;;  %v5197_v26 = vld [vmem:[%s12605_s5 + $0xc0] sm:$0xff] }
0x1303   :  { %10437 = vrcp.f32 %v4523_v19  ;;  %v11411_v19 = vsub.f32 %v5191_v42, %v5455_v40 }
0x130d   :  { %v10438_v33 = vpop.eup %10437 }
0x130e   :  { %v4527_v14 = vmul.f32 %v10438_v33, %v4019_v39  ;;  %v5452_v39 = vand.u32 4294901760, %v5190_v34 }
0x1310   :  { %v11399_v25 = vsub.f32 %v5190_v34, %v5452_v39 }
0x1371   :  { %v4530_v45 = vpop.permute.xlu0 %4529 }
0x1372   :  { %v4532_v49 = vmul.f32 %v10438_v33, %v4530_v45  ;;  %v5410_v45 = vand.u32 4294901760, %v5176_v23 }
0x1374   :  { %4534 = vrot.lane.b32.xlu1 %v4532_v49, %s10489_s27  ;;  %v5194_v49 = vld [vmem:[%s12605_s5 + $0xa8] sm:$0xff]  ;;  %v11486_v37 = vpack.c.bf16 %v5410_v45, %v5407_v28 }
0x1376   :  { %12711 = vst [vmem:[#allocation9_spill] sm:$0xff] %v11486_v37 }
0x13e6   :  { %v4535_v17 = vpop.permute.xlu1 %4534 }
0x13e7   :  { %v11297_v63 = vadd.f32 %v4535_v17, %v4527_v14  ;;  %v5081_v14 = vld [vmem:[%s12601_s1 + $0xa] sm:$0x3]  ;;  %v9835_v17 = vpack.c.bf16 %v11399_v25, %v11397_v24 }
0x13e9   :  { %10439 = vtanh.f32 %v11297_v63  ;;  %9836 = vmatprep.subr.bf16.mxu1 %v9835_v17 }
0x13f3   :  { %v10440_v53 = vpop.eup %10439 }
0x13f4   :  { %4540 = vrot.lane.b32.xlu0 %v10440_v53, %s10488_s4  ;;  %v11425_v53 = vpack.c.bf16 %v5452_v39, %v5449_v35 }
0x13f6   :  { %12708 = vst [vmem:[#allocation6_spill] sm:$0xff] %v11425_v53 }
0x1466   :  { %v4541_v6 = vpop.permute.xlu0 %4540 }
0x1467   :  { %v4543_v44 = vmul.f32 %v10438_v33, %v4541_v6  ;;  %v11413_v33 = vsub.f32 %v5192_v46, %v5458_v15  ;;  %v11427_v6 = vpack.c.bf16 %v5404_v48, %v5401_v41  ;;  %v5198_v41 = vld [vmem:[%s12605_s5 + $0xc8] sm:$0xff]  ;;  %v5473_v46 = vand.u32 4294901760, %v5197_v26 }
0x1469   :  { %4545 = vrot.lane.b32.xlu1 %v4543_v44, %s10489_s27  ;;  %12709 = vst [vmem:[#allocation7_spill] sm:$0xff] %v11427_v6  ;;  %v9837_v44 = vpack.c.bf16 %v11409_v4, %v11401_v27 }
0x146b   :  { %9838 = vmatpush3.bf16.msra.mxu1 %v9837_v44  ;;  %v5199_v44 = vld [vmem:[%s12605_s5 + $0xd0] sm:$0xff] }
0x14db   :  { %v4546_v52 = vpop.permute.xlu1 %4545 }
0x14dc   :  { %4549 = vst.msk [vmem:[#allocation2 + $0x30] sm:$0xff] %vm923_vm2, %v4546_v52  ;;  %v4550_v13 = vsel %vm923_vm2, %v4546_v52, 0  ;;  %v9839_v52 = vpack.c.bf16 %v11413_v33, %v11411_v19 }
0x14dd   :  { %v4621_v0 = vand.u32 4294901760, %v4550_v13 }
0x14de   :  { %9840 = vmatprep.subr.bf16.mxu1 %v9839_v52  ;;  %v5200_v52 = vld [vmem:[%s12605_s5 + $0xd8] sm:$0xff] }
0x14df   :  { %v4622_v21 = vsub.f32 %v4550_v13, %v4621_v0  ;;  %v11433_v13 = vsub.f32 %v5176_v23, %v5410_v45  ;;  %v11512_v23 = vsub.f32 %v5197_v26, %v5473_v46  ;;  %v5202_v26 = vld [vmem:[%s12605_s5 + $0xe8] sm:$0xff] }
0x14e1   :  { %v4623_v8 = vand.u32 4294901760, %v4622_v21 }
0x14e3   :  { %v4624_v54 = vsub.f32 %v4622_v21, %v4623_v8 }
0x14e5   :  { %v4625_v22 = vand.u32 4294901760, %v4624_v54 }
0x14e7   :  { %9006 = vmatmul.mubr.f32.vlgmr.msra.gmra.mrb[14].mxu0 %v4625_v22 }
0x14e8   :  { %9743 = vmatpush3.bf16.msra.mxu0 %v10835_v55  ;;  %9016 = vmatprep.mubr.msk.f32.mxu0 %vm10486_vm1, %v12621_v59 }
0x14e9   :  { %9744 = vmatprep.subr.bf16.mxu0 %v12623_v9 }
0x14ec   :  { %9746 = vmatpush3.bf16.msra.mxu0 %v10839_v18 }
0x14ed   :  { %9747 = vmatprep.subr.bf16.mxu0 %v12623_v9 }
0x14ef   :  { %9017 = vmatmul.mubr.f32.vlgmr.msra.gmra.mrb[14].mxu0 %v4621_v0 }
0x14f0   :  { %9749 = vmatpush3.bf16.msra.mxu0 %v10849_v58  ;;  %9027 = vmatprep.mubr.msk.f32.mxu0 %vm10486_vm1, %v12621_v59 }
0x14f1   :  { %9750 = vmatprep.subr.bf16.mxu0 %v12623_v9 }
0x14f4   :  { %9752 = vmatpush3.bf16.msra.mxu0 %v10860_v11 }
0x14f5   :  { %9753 = vmatprep.subr.bf16.mxu0 %v12623_v9 }
0x14f7   :  { %9028 = vmatmul.mubr.f32.vlgmr.msra.gmra.mrb[14].mxu0 %v4622_v21  ;;  %v11436_v21 = vld [vmem:[#allocation2 + $0x28] sm:$0xff] }
0x14f8   :  { %9755 = vmatpush3.bf16.msra.mxu0 %v10870_v7  ;;  %9038 = vmatprep.mubr.msk.f32.mxu0 %vm10486_vm1, %v12621_v59 }
0x14f9   :  { %9756 = vmatprep.subr.bf16.mxu0 %v12623_v9 }
0x14fc   :  { %9758 = vmatpush3.bf16.msra.mxu0 %v10882_v12 }
0x14fd   :  { %9759 = vmatprep.subr.bf16.mxu0 %v12623_v9 }
0x14ff   :  { %9039 = vmatmul.mubr.f32.vlgmr.msra.gmra.mrb[14].mxu0 %v4623_v8  ;;  %v5464_v8 = vand.u32 4294901760, %v5194_v49 }
0x1500   :  { %9761 = vmatpush3.bf16.msra.mxu0 %v10898_v1  ;;  %9049 = vmatprep.mubr.msk.f32.mxu0 %vm10486_vm1, %v12621_v59 }
0x1501   :  { %9762 = vmatprep.subr.bf16.mxu0 %v12623_v9 }
0x1504   :  { %9764 = vmatpush3.bf16.msra.mxu0 %v10911_v62 }
0x1505   :  { %9765 = vmatprep.subr.bf16.mxu0 %v12623_v9 }
0x1507   :  { %9050 = vmatmul.mubr.f32.vlgmr.msra.gmra.mrb[14].mxu0 %v4621_v0 }
0x1508   :  { %9767 = vmatpush3.bf16.msra.mxu0 %v10870_v7  ;;  %9060 = vmatprep.mubr.msk.f32.mxu0 %vm10486_vm1, %v12621_v59  ;;  %v5203_v59 = vld [vmem:[%s12605_s5 + $0xf0] sm:$0xff] }
0x1509   :  { %9768 = vmatprep.subr.bf16.mxu0 %v12623_v9 }
0x150c   :  { %9770 = vmatpush3.bf16.msra.mxu0 %v10882_v12  ;;  %v5077_v12 = vld [vmem:[%s12601_s1 + $0x2] sm:$0x3] }
0x150d   :  { %9772 = vmatprep.subr.bf16.mxu0 %v11425_v53 }
0x150f   :  { %9061 = vmatmul.mubr.f32.vlgmr.msra.gmra.mrb[14].mxu0 %v4621_v0  ;;  %v5461_v0 = vand.u32 4294901760, %v11406_v38 }
0x1510   :  { %9774 = vmatpush3.bf16.msra.mxu0 %v11427_v6 }
0x1511   :  { %v11443_v22 = vsub.f32 %v11406_v38, %v5461_v0 }
0x15e2   :  { %v5033_v55 = vpop.f32.mrb[14].mxu0 }
0x15e3   :  { %v5037_v18 = vadd.f32 %v11020_v47, %v5033_v55  ;;  %v9062_v58 = vpop.f32.mrb[15].mxu0  ;;  %v5079_v47 = vld [vmem:[%s12601_s1 + $0x6] sm:$0x3]  ;;  %v11446_v55 = vsub.f32 %v5194_v49, %v5464_v8 }
0x15e5   :  { %10441 = vtanh.f32 %v5037_v18  ;;  %v7632_v1 = vmul.f32 -1.442695, %v5037_v18  ;;  %v5129_v18 = vrot.slane %v11436_v21, 2  ;;  %v9843_v58 = vpack.c.bf16 %v11446_v55, %v11443_v22 }
0x15e7   :  { %10443 = vpow2.f32 %v7632_v1  ;;  %v5177_v1 = vld [vmem:[%s12605_s5 + $0x20] sm:$0xff] }
0x15ef   :  { %v10442_v11 = vpop.eup %10441 }
0x15f0   :  { %5047 = vrot.lane.b32.xlu0 %v10442_v11, %s10488_s4  ;;  %v5083_v11 = vld [vmem:[%s12601_s1 + $0xe] sm:$0x3] }
0x15f1   :  { %v10444_v62 = vpop.eup %10443 }
0x15f2   :  { %v5041_v7 = vadd.f32 1.0, %v10444_v62  ;;  %v5178_v62 = vld [vmem:[%s12605_s5 + $0x28] sm:$0xff] }
0x15f4   :  { %10445 = vrcp.f32 %v5041_v7  ;;  %v5413_v7 = vand.u32 4294901760, %v5177_v1 }
0x15fe   :  { %v11335_v60 = vpop.eup %10445 }
0x15ff   :  { %v5045_v51 = vmul.f32 %v11335_v60, %v11297_v63  ;;  %v11423_v63 = vsub.f32 %v5175_v16, %v5407_v28  ;;  %v11510_v16 = vpack.c.bf16 %v5464_v8, %v5461_v0  ;;  %v5479_v8 = vand.u32 4294901760, %v5199_v44 }
0x1601   :  { %v9841_v54 = vpack.c.bf16 %v11433_v13, %v11423_v63  ;;  %12712 = vst [vmem:[#allocation10_spill] sm:$0xff] %v11510_v16 }
0x1603   :  { %9842 = vmatpush3.bf16.msra.mxu1 %v9841_v54  ;;  %v5482_v54 = vand.u32 4294901760, %v5200_v52 }
0x1604   :  { %9844 = vmatprep.subr.bf16.mxu1 %v9843_v58  ;;  %v5184_v58 = vld [vmem:[%s12605_s5 + $0x58] sm:$0xff] }
0x1605   :  { %v11607_v9 = vpack.c.bf16 %v5482_v54, %v5479_v8 }
0x1607   :  { %12718 = vst [vmem:[#allocation16_spill] sm:$0xff] %v11607_v9 }
0x1662   :  { %v5048_v3 = vpop.permute.xlu0 %5047 }
0x1663   :  { %v5050_v10 = vmul.f32 %v11335_v60, %v5048_v3  ;;  %v5416_v3 = vand.u32 4294901760, %v5178_v62 }
0x1665   :  { %5052 = vrot.lane.b32.xlu1 %v5050_v10, %s10489_s27  ;;  %v11462_v10 = vsub.f32 %v5177_v1, %v5413_v7  ;;  %v11516_v45 = vpack.c.bf16 %v5416_v3, %v5413_v7  ;;  %v5434_v1 = vand.u32 4294901760, %v5184_v58 }
0x1667   :  { %12713 = vst [vmem:[#allocation11_spill] sm:$0xff] %v11516_v45 }
0x1669   :  { %5094 = vrot.lane.b32.xlu1 %v5077_v12, %s10489_s27  ;;  %v11464_v12 = vsub.f32 %v5178_v62, %v5416_v3  ;;  %v11542_v3 = vsub.f32 %v5199_v44, %v5479_v8  ;;  %v11571_v44 = vld [vmem:[#allocation2 + $0x10] sm:$0xff] }
0x166d   :  { %5098 = vrot.lane.b32.xlu1 %v5079_v47, %s10489_s27  ;;  %v5195_v47 = vld [vmem:[%s12605_s5 + $0xb0] sm:$0xff] }
0x1671   :  { %5132 = vrot.lane.b32.xlu1 %v5124_v32, %s10490_s10  ;;  %v5196_v32 = vld [vmem:[%s12605_s5 + $0xb8] sm:$0xff] }
0x16d7   :  { %v5053_v57 = vpop.permute.xlu1 %5052 }
0x16d8   :  { %v5055_v2 = vadd.f32 %v5053_v57, %v5045_v51  ;;  %v5467_v51 = vand.u32 4294901760, %v5195_v47  ;;  %v5470_v57 = vand.u32 4294901760, %v5196_v32 }
0x16da   :  { %10447 = vtanh.f32 %v5055_v2  ;;  %v5179_v2 = vld [vmem:[%s12605_s5 + $0x30] sm:$0xff]  ;;  %v11482_v31 = vsub.f32 %v5195_v47, %v5467_v51  ;;  %v11484_v34 = vsub.f32 %v5196_v32, %v5470_v57  ;;  %v11540_v7 = vpack.c.bf16 %v5470_v57, %v5467_v51 }
0x16db   :  { %v11544_v47 = vsub.f32 %v5200_v52, %v5482_v54 }
0x16dc   :  { %v9847_v42 = vpack.c.bf16 %v11484_v34, %v11482_v31  ;;  %12714 = vst [vmem:[#allocation12_spill] sm:$0xff] %v11540_v7 }
0x16dd   :  { %v9855_v57 = vpack.c.bf16 %v11544_v47, %v11542_v3 }
0x16e4   :  { %v10448_v56 = vpop.eup %10447 }
0x16e5   :  { %5058 = vrot.lane.b32.xlu0 %v10448_v56, %s10488_s4  ;;  %v5180_v56 = vld [vmem:[%s12605_s5 + $0x38] sm:$0xff] }
0x16e9   :  { %5092 = vrot.lane.b32.xlu0 %v5076_v61, %s10489_s27  ;;  %v9845_v61 = vpack.c.bf16 %v11464_v12, %v11462_v10 }
0x16eb   :  { %9846 = vmatpush3.bf16.msra.mxu1 %v9845_v61  ;;  %v5201_v61 = vld [vmem:[%s12605_s5 + $0xe0] sm:$0xff] }
0x16ec   :  { %9848 = vmatprep.subr.bf16.mxu1 %v9847_v42  ;;  %v5186_v42 = vld [vmem:[%s12605_s5 + $0x68] sm:$0xff] }
0x16ed   :  { %5096 = vrot.lane.b32.xlu0 %v5078_v43, %s10489_s27  ;;  %v5419_v43 = vand.u32 4294901760, %v5179_v2 }
0x16ef   :  { %v11488_v35 = vsub.f32 %v5179_v2, %v5419_v43 }
0x16f1   :  { %5100 = vrot.lane.b32.xlu0 %v5080_v5, %s10489_s27  ;;  %v5422_v5 = vand.u32 4294901760, %v5180_v56 }
0x16f3   :  { %v11490_v39 = vsub.f32 %v5180_v56, %v5422_v5  ;;  %v11546_v32 = vpack.c.bf16 %v5422_v5, %v5419_v43  ;;  %v11550_v56 = vsub.f32 %v5184_v58, %v5434_v1  ;;  %v5485_v43 = vand.u32 4294901760, %v5201_v61 }
0x16f4   :  { %v5488_v5 = vand.u32 4294901760, %v5202_v26 }
0x16f5   :  { %5134 = vrot.lane.b32.xlu0 %v5125_v30, %s10490_s10  ;;  %v11480_v30 = vpack.c.bf16 %v5458_v15, %v5455_v40  ;;  %v9849_v48 = vpack.c.bf16 %v11490_v39, %v11488_v35  ;;  %v5181_v40 = vld [vmem:[%s12605_s5 + $0x40] sm:$0xff]  ;;  %v5182_v15 = vld [vmem:[%s12605_s5 + $0x48] sm:$0xff]  ;;  %12715 = vst [vmem:[#allocation13_spill] sm:$0xff] %v11546_v32 }
0x16f6   :  { %v5425_v38 = vand.u32 4294901760, %v5181_v40  ;;  %v5428_v49 = vand.u32 4294901760, %v5182_v15  ;;  %v11577_v58 = vsub.f32 %v5202_v26, %v5488_v5  ;;  %v5188_v26 = vld [vmem:[%s12605_s5 + $0x78] sm:$0xff]  ;;  %v11627_v54 = vpack.c.bf16 %v5488_v5, %v5485_v43 }
0x16f7   :  { %12710 = vst [vmem:[#allocation8_spill] sm:$0xff] %v11480_v30  ;;  %9776 = vmatprep.subr.bf16.mxu0 %v11480_v30  ;;  %9850 = vmatpush3.bf16.msra.mxu1 %v9849_v48 }
0x16f8   :  { %9778 = vmatpush3.bf16.msra.mxu0 %v11486_v37  ;;  %v11521_v17 = vsub.f32 %v5181_v40, %v5425_v38  ;;  %v11530_v0 = vsub.f32 %v5182_v15, %v5428_v49  ;;  %12720 = vst [vmem:[#allocation18_spill] sm:$0xff] %v11627_v54 }
0x16f9   :  { %5138 = vrot.lane.b32.xlu0 %v5127_v50, %s10490_s10  ;;  %v5476_v50 = vand.u32 4294901760, %v5198_v41  ;;  %9780 = vmatprep.subr.bf16.mxu0 %v11510_v16 }
0x16fa   :  { %v9853_v62 = vpack.c.bf16 %v11530_v0, %v11521_v17 }
0x16fb   :  { %v11514_v28 = vsub.f32 %v5198_v41, %v5476_v50  ;;  %v5185_v41 = vld [vmem:[%s12605_s5 + $0x60] sm:$0xff]  ;;  %v11573_v52 = vpack.c.bf16 %v5476_v50, %v5473_v46  ;;  %v5204_v46 = vld [vmem:[%s12605_s5 + $0xf8] sm:$0xff] }
0x16fc   :  { %9782 = vmatpush3.bf16.msra.mxu0 %v11516_v45  ;;  %v5437_v15 = vand.u32 4294901760, %v5185_v41 }
0x16fd   :  { %5102 = vrot.lane.b32.xlu0 %v5081_v14, %s10489_s27  ;;  %v9851_v14 = vpack.c.bf16 %v11514_v28, %v11512_v23  ;;  %9784 = vmatprep.subr.bf16.mxu0 %v11540_v7  ;;  %12716 = vst [vmem:[#allocation14_spill] sm:$0xff] %v11573_v52 }
0x16ff   :  { %9852 = vmatprep.subr.bf16.mxu1 %v9851_v14  ;;  %v5440_v14 = vand.u32 4294901760, %v5186_v42 }
0x1700   :  { %9854 = vmatpush3.bf16.msra.mxu1 %v9853_v62  ;;  %9786 = vmatpush3.bf16.msra.mxu0 %v11546_v32  ;;  %v11580_v62 = vpack.c.bf16 %v5428_v49, %v5425_v38  ;;  %v5491_v38 = vand.u32 4294901760, %v5203_v59  ;;  %v5494_v49 = vand.u32 4294901760, %v5204_v46 }
0x1701   :  { %5142 = vrot.lane.b32.xlu0 %v5129_v18, %s10490_s10  ;;  %v5183_v18 = vld [vmem:[%s12605_s5 + $0x50] sm:$0xff]  ;;  %9856 = vmatprep.subr.bf16.mxu1 %v9855_v57  ;;  %v5126_v57 = vrot.slane %v11571_v44, 2 }
0x1702   :  { %12717 = vst [vmem:[#allocation15_spill] sm:$0xff] %v11580_v62  ;;  %9788 = vmatprep.subr.bf16.mxu0 %v11573_v52  ;;  %v11609_v52 = vsub.f32 %v5203_v59, %v5491_v38  ;;  %v11611_v32 = vsub.f32 %v5204_v46, %v5494_v49  ;;  %v11632_v46 = vpack.c.bf16 %v5440_v14, %v5437_v15 }
0x1703   :  { %v11641_v5 = vpack.c.bf16 %v5494_v49, %v5491_v38  ;;  %v5558_v49 = vand.u32 4294901760, %v11462_v10 }
0x1704   :  { %9790 = vmatpush3.bf16.msra.mxu0 %v11580_v62  ;;  %12721 = vst [vmem:[#allocation19_spill] sm:$0xff] %v11632_v46 }
0x1705   :  { %5106 = vrot.lane.b32.xlu0 %v5083_v11, %s10489_s27  ;;  %v5431_v11 = vand.u32 4294901760, %v5183_v18  ;;  %9792 = vmatprep.subr.bf16.mxu0 %v11607_v9  ;;  %12722 = vst [vmem:[#allocation20_spill] sm:$0xff] %v11641_v5  ;;  %v5719_v9 = vand.u32 4294901760, %v11544_v47 }
0x1707   :  { %v11548_v2 = vsub.f32 %v5183_v18, %v5431_v11  ;;  %v11575_v18 = vsub.f32 %v5201_v61, %v5485_v43  ;;  %v5187_v61 = vld [vmem:[%s12605_s5 + $0x70] sm:$0xff]  ;;  %v11614_v7 = vpack.c.bf16 %v5434_v1, %v5431_v11  ;;  %v5642_v11 = vand.u32 4294901760, %v11397_v24 }
0x1708   :  { %v5649_v1 = vand.u32 4294901760, %v11399_v25  ;;  %v11639_v43 = vld [vmem:[#allocation2 + $0x30] sm:$0xff] }
0x1709   :  { %v9857_v40 = vpack.c.bf16 %v11550_v56, %v11548_v2  ;;  %v9859_v50 = vpack.c.bf16 %v11577_v58, %v11575_v18  ;;  %12719 = vst [vmem:[#allocation17_spill] sm:$0xff] %v11614_v7  ;;  %9794 = vmatpush3.bf16.msra.mxu0 %v11614_v7  ;;  %v5712_v7 = vand.u32 4294901760, %v11542_v3 }
0x170a   :  { %9796 = vmatprep.subr.bf16.mxu0 %v11627_v54 }
0x170b   :  { %9858 = vmatpush3.bf16.msra.mxu1 %v9857_v40  ;;  %v11605_v40 = vld [vmem:[#allocation2 + $0x20] sm:$0xff] }
0x170c   :  { %9860 = vmatprep.subr.bf16.mxu1 %v9859_v50  ;;  %v9863_v50 = vpack.c.bf16 %v11611_v32, %v11609_v52  ;;  %v5128_v8 = vrot.slane %v11605_v40, 2 }
0x170d   :  { %9798 = vmatpush3.bf16.msra.mxu0 %v11632_v46 }
0x170e   :  { %9800 = vmatprep.subr.bf16.mxu0 %v11641_v5 }
0x1757   :  { %v5059_v51 = vpop.permute.xlu0 %5058 }
0x1758   :  { %v5061_v48 = vmul.f32 %v11335_v60, %v5059_v51  ;;  %v11582_v60 = vsub.f32 %v5185_v41, %v5437_v15  ;;  %v11584_v51 = vsub.f32 %v5186_v42, %v5440_v14  ;;  %v5443_v42 = vand.u32 4294901760, %v5187_v61 }
0x1759   :  { %v5650_v14 = vsub.f32 %v11399_v25, %v5649_v1  ;;  %v5684_v25 = vand.u32 4294901760, %v11482_v31 }
0x175a   :  { %5063 = vrot.lane.b32.xlu1 %v5061_v48, %s10489_s27  ;;  %v9861_v41 = vpack.c.bf16 %v11584_v51, %v11582_v60  ;;  %v5446_v48 = vand.u32 4294901760, %v5188_v26  ;;  %v11616_v45 = vsub.f32 %v5187_v61, %v5443_v42  ;;  %v5082_v61 = vld [vmem:[%s12601_s1 + $0xc] sm:$0x3] }
0x175b   :  { %v5685_v5 = vsub.f32 %v11482_v31, %v5684_v25  ;;  %v5600_v31 = vand.u32 4294901760, %v11548_v2 }
0x175c   :  { %v11618_v62 = vsub.f32 %v5188_v26, %v5446_v48  ;;  %9862 = vmatpush3.bf16.msra.mxu1 %v9861_v41  ;;  %v9899_v26 = vpack.c.bf16 %v5649_v1, %v5642_v11  ;;  %v11645_v15 = vpack.c.bf16 %v5446_v48, %v5443_v42  ;;  %v5691_v48 = vand.u32 4294901760, %v11484_v34 }
0x175d   :  { %9864 = vmatprep.subr.bf16.mxu1 %v9863_v50  ;;  %v5130_v50 = vrot.slane %v11639_v43, 2 }
0x175e   :  { %5136 = vrot.lane.b32.xlu1 %v5126_v57, %s10490_s10  ;;  %v9865_v59 = vpack.c.bf16 %v11618_v62, %v11616_v45  ;;  %v5643_v57 = vsub.f32 %v11397_v24, %v5642_v11  ;;  %12723 = vst [vmem:[#allocation21_spill] sm:$0xff] %v11645_v15  ;;  %9802 = vmatpush3.bf16.msra.mxu0 %v11645_v15  ;;  %v5565_v24 = vand.u32 4294901760, %v11464_v12  ;;  %v5579_v11 = vand.u32 4294901760, %v11490_v39 }
0x175f   :  { %v11660_v1 = vpack.c.bf16 %v5691_v48, %v5684_v25  ;;  %v5593_v15 = vand.u32 4294901760, %v11530_v0  ;;  %v5607_v25 = vand.u32 4294901760, %v11550_v56 }
0x1760   :  { %9866 = vmatpush3.bf16.msra.mxu1 %v9865_v59  ;;  %v5644_v41 = vand.u32 4294901760, %v5643_v57  ;;  %v11654_v42 = vpack.c.bf16 %v5565_v24, %v5558_v49  ;;  %v5572_v59 = vand.u32 4294901760, %v11488_v35  ;;  %v5566_v57 = vsub.f32 %v11464_v12, %v5565_v24 }
0x1761   :  { %9900 = vmatprep.subr.bf16.mxu1 %v9899_v26  ;;  %v5686_v12 = vand.u32 4294901760, %v5685_v5  ;;  %v5594_v37 = vsub.f32 %v11530_v0, %v5593_v15  ;;  %v5601_v0 = vsub.f32 %v11548_v2, %v5600_v31 }
0x1762   :  { %5140 = vrot.lane.b32.xlu1 %v5128_v8, %s10490_s10  ;;  %v5651_v8 = vand.u32 4294901760, %v5650_v14  ;;  %v11663_v26 = vpack.c.bf16 %v5579_v11, %v5572_v59 }
0x1764   :  { %v9803_v38 = vpack.c.bf16 %v5651_v8, %v5644_v41  ;;  %v5698_v41 = vand.u32 4294901760, %v11512_v23  ;;  %v5567_v8 = vand.u32 4294901760, %v5566_v57  ;;  %v5580_v57 = vsub.f32 %v11490_v39, %v5579_v11 }
0x1766   :  { %5104 = vrot.lane.b32.xlu1 %v5082_v61, %s10489_s27  ;;  %9804 = vmatprep.subr.bf16.mxu0 %v9803_v38  ;;  %v5559_v61 = vsub.f32 %v11462_v10, %v5558_v49  ;;  %v5586_v38 = vand.u32 4294901760, %v11521_v17  ;;  %v5692_v10 = vsub.f32 %v11484_v34, %v5691_v48  ;;  %v5699_v34 = vsub.f32 %v11512_v23, %v5698_v41 }
0x1767   :  { %v5726_v23 = vand.u32 4294901760, %v11575_v18 }
0x1768   :  { %v5560_v14 = vand.u32 4294901760, %v5559_v61  ;;  %v11676_v54 = vpack.c.bf16 %v5593_v15, %v5586_v38  ;;  %v5693_v24 = vand.u32 4294901760, %v5692_v10  ;;  %v5573_v61 = vsub.f32 %v11488_v35, %v5572_v59 }
0x1769   :  { %v11688_v10 = vpack.c.bf16 %v5719_v9, %v5712_v7  ;;  %v11690_v35 = vpack.c.bf16 %v5607_v25, %v5600_v31  ;;  %v5700_v39 = vand.u32 4294901760, %v5699_v34  ;;  %v5587_v59 = vsub.f32 %v11521_v17, %v5586_v38 }
0x176a   :  { %5144 = vrot.lane.b32.xlu1 %v5130_v50, %s10490_s10  ;;  %v5705_v50 = vand.u32 4294901760, %v11514_v28  ;;  %v11674_v49 = vpack.c.bf16 %v5567_v8, %v5560_v14  ;;  %v11685_v48 = vpack.c.bf16 %v5693_v24, %v5686_v12  ;;  %v5574_v14 = vand.u32 4294901760, %v5573_v61 }
0x176b   :  { %v5581_v8 = vand.u32 4294901760, %v5580_v57  ;;  %v5733_v12 = vand.u32 4294901760, %v11577_v58  ;;  %v5614_v24 = vand.u32 4294901760, %v11582_v60  ;;  %v5595_v61 = vand.u32 4294901760, %v5594_v37 }
0x176c   :  { %v11671_v46 = vpack.c.bf16 %v5705_v50, %v5698_v41  ;;  %v5706_v5 = vsub.f32 %v11514_v28, %v5705_v50  ;;  %v5588_v41 = vand.u32 4294901760, %v5587_v59  ;;  %v5621_v28 = vand.u32 4294901760, %v11584_v51 }
0x176d   :  { %v11693_v11 = vpack.c.bf16 %v5581_v8, %v5574_v14  ;;  %v5713_v57 = vsub.f32 %v11542_v3, %v5712_v7  ;;  %v5720_v17 = vsub.f32 %v11544_v47, %v5719_v9  ;;  %v11704_v38 = vpack.c.bf16 %v5733_v12, %v5726_v23 }
0x176e   :  { %v5707_v16 = vand.u32 4294901760, %v5706_v5  ;;  %v11706_v34 = vpack.c.bf16 %v5621_v28, %v5614_v24  ;;  %v5608_v15 = vsub.f32 %v11550_v56, %v5607_v25  ;;  %v11710_v14 = vpack.c.bf16 %v5595_v61, %v5588_v41 }
0x176f   :  { %v5714_v8 = vand.u32 4294901760, %v5713_v57  ;;  %v5721_v5 = vand.u32 4294901760, %v5720_v17  ;;  %v5747_v7 = vand.u32 4294901760, %v11611_v32  ;;  %v5628_v9 = vand.u32 4294901760, %v11616_v45 }
0x1770   :  { %v11700_v50 = vpack.c.bf16 %v5707_v16, %v5700_v39  ;;  %v5740_v16 = vand.u32 4294901760, %v11609_v52  ;;  %v5602_v39 = vand.u32 4294901760, %v5601_v0  ;;  %v5609_v37 = vand.u32 4294901760, %v5608_v15 }
0x1771   :  { %v11715_v3 = vpack.c.bf16 %v5721_v5, %v5714_v8  ;;  %v5635_v47 = vand.u32 4294901760, %v11618_v62  ;;  %v5727_v2 = vsub.f32 %v11575_v18, %v5726_v23  ;;  %v5734_v56 = vsub.f32 %v11577_v58, %v5733_v12 }
0x1772   :  { %v11720_v31 = vpack.c.bf16 %v5609_v37, %v5602_v39  ;;  %v11722_v25 = vpack.c.bf16 %v5747_v7, %v5740_v16  ;;  %v5615_v59 = vsub.f32 %v11582_v60, %v5614_v24  ;;  %v5622_v41 = vsub.f32 %v11584_v51, %v5621_v28 }
0x1773   :  { %v11726_v61 = vpack.c.bf16 %v5635_v47, %v5628_v9  ;;  %v5728_v57 = vand.u32 4294901760, %v5727_v2  ;;  %v5735_v17 = vand.u32 4294901760, %v5734_v56  ;;  %v5741_v0 = vsub.f32 %v11609_v52, %v5740_v16  ;;  %v5093_v52 = vpop.permute.xlu0 %5092 }
0x1774   :  { %v5616_v15 = vand.u32 4294901760, %v5615_v59  ;;  %v5623_v8 = vand.u32 4294901760, %v5622_v41  ;;  %v5748_v18 = vsub.f32 %v11611_v32, %v5747_v7  ;;  %v5629_v58 = vsub.f32 %v11616_v45, %v5628_v9  ;;  %v5095_v32 = vpop.permute.xlu1 %5094 }
0x1775   :  { %12724 = vst [vmem:[#allocation22_spill] sm:$0xff] %v11726_v61  ;;  %v11731_v23 = vpack.c.bf16 %v5735_v17, %v5728_v57  ;;  %v5742_v12 = vand.u32 4294901760, %v5741_v0  ;;  %v5636_v5 = vsub.f32 %v11618_v62, %v5635_v47  ;;  %v10491_v9 = vmov 1983009808  }
0x1776   :  { %v11734_v60 = vpack.c.bf16 %v5623_v8, %v5616_v15  ;;  %v5749_v51 = vand.u32 4294901760, %v5748_v18  ;;  %v5630_v24 = vand.u32 4294901760, %v5629_v58  ;;  %v5237_v56 = vunpack.c.l.s4 %v10491_v9 }
0x1777   :  { %v5637_v28 = vand.u32 4294901760, %v5636_v5  ;;  %v5097_v16 = vpop.permute.xlu0 %5096  ;;  %v5239_v41 = vlaneseq  ;;  %v5157_v62 = vsel %vm923_vm2, %v11365_v29, %v5095_v32  ;;  %v5530_v17 = vand.u32 4294901760, %v11401_v27 }
0x1778   :  { %12725 = vst [vmem:[#allocation23_spill] sm:$0xff] %v11734_v60  ;;  %v11736_v39 = vpack.c.bf16 %v5749_v51, %v5742_v12  ;;  %v5099_v45 = vpop.permute.xlu1 %5098  ;;  %v5238_v57 = vunpack.c.0.s8 %v5237_v56  ;;  %v5156_v0 = vsel %vm923_vm2, %v11346_v20, %v5093_v52  ;;  %v5537_v8 = vand.u32 4294901760, %v11409_v4 }
0x1779   :  { %v11738_v37 = vpack.c.bf16 %v5637_v28, %v5630_v24  ;;  %v5240_v15 = vshrl.u32 %v5239_v41, 7  ;;  %v5656_v18 = vand.u32 4294901760, %v11411_v19  ;;  %v5663_v12 = vand.u32 4294901760, %v11413_v33 }
0x177a   :  { %12726 = vst [vmem:[#allocation24_spill] sm:$0xff] %v11736_v39  ;;  %v5544_v5 = vand.u32 4294901760, %v11423_v63  ;;  %v5551_v29 = vand.u32 4294901760, %v11433_v13  ;;  %v5531_v51 = vsub.f32 %v11401_v27, %v5530_v17  ;;  %v5538_v28 = vsub.f32 %v11409_v4, %v5537_v8 }
0x177b   :  { %12727 = vst [vmem:[#allocation25_spill] sm:$0xff] %v11738_v37  ;;  %v5101_v2 = vpop.permute.xlu0 %5100  ;;  %v5670_v20 = vand.u32 4294901760, %v11443_v22  ;;  %v5677_v52 = vand.u32 4294901760, %v11446_v55  ;;  %v5657_v9 = vsub.f32 %v11411_v19, %v5656_v18  ;;  %v5664_v56 = vsub.f32 %v11413_v33, %v5663_v12 }
0x177c   :  { %v5133_v47 = vpop.permute.xlu1 %5132  ;;  %v5545_v41 = vsub.f32 %v11423_v63, %v5544_v5  ;;  %v5552_v30 = vsub.f32 %v11433_v13, %v5551_v29  ;;  %v5159_v27 = vsel %vm923_vm2, %v11369_v36, %v5099_v45  ;;  %v5158_v19 = vsel %vm923_vm2, %v11571_v44, %v5097_v16 }
0x177d   :  { %v5671_v4 = vsub.f32 %v11443_v22, %v5670_v20  ;;  %v5160_v33 = vsel %vm923_vm2, %v11605_v40, %v5101_v2  ;;  %v11769_v63 = vsub.s32 %v5238_v57, %v5240_v15  ;;  %v11774_v36 = vpack.c.bf16 %v5537_v8, %v5530_v17  ;;  %v11902_v8 = vld [vmem:[%s12605_s5 + $0x168] sm:$0xff] }
0x177e   :  { %v5532_v45 = vand.u32 4294901760, %v5531_v51  ;;  %v5546_v53 = vand.u32 4294901760, %v5545_v41  ;;  %v5553_v37 = vand.u32 4294901760, %v5552_v30  ;;  %v11779_v40 = vpack.c.bf16 %v5663_v12, %v5656_v18  ;;  %v11790_v30 = vld [vmem:[%s12605_s5 + $0x110] sm:$0xff] }
0x177f   :  { %v5135_v7 = vpop.permute.xlu0 %5134  ;;  %v5672_v16 = vand.u32 4294901760, %v5671_v4  ;;  %v11785_v15 = vpack.c.bf16 %v5551_v29, %v5544_v5  ;;  %12728 = vst [vmem:[#allocation26_spill] sm:$0xff] %v11790_v30  ;;  %v11799_v51 = vpack.c.bf16 %v5677_v52, %v5670_v20  ;;  %v11845_v4 = vld [vmem:[%s12605_s5 + $0x140] sm:$0xff] }
0x1780   :  { %v5166_v24 = vsel %vm5164_vm3, %v5157_v62, %v5135_v7  ;;  %v5165_v7 = vsel %vm5164_vm3, %v5156_v0, %v5133_v47  ;;  %v5678_v62 = vsub.f32 %v11446_v55, %v5677_v52  ;;  %v5539_v47 = vand.u32 4294901760, %v5538_v28  ;;  %12735 = vst [vmem:[#allocation33_spill] sm:$0xff] %v11845_v4 }
0x1781   :  { %v5235_v13 = vcombine.low %v5165_v7, %v5166_v24  ;;  %v5665_v55 = vand.u32 4294901760, %v5664_v56  ;;  %v11818_v52 = vpack.c.bf16 %v5553_v37, %v5546_v53  ;;  %v11828_v56 = vld [vmem:[%s12605_s5 + $0x130] sm:$0xff]  ;;  %v12657_v53 = vand.u32 4294901760, %v11790_v30  ;;  %v11840_v37 = vld [vmem:[%s12605_s5 + $0x138] sm:$0xff] }
0x1782   :  { %v5679_v2 = vand.u32 4294901760, %v5678_v62  ;;  %v11797_v12 = vpack.c.bf16 %v5539_v47, %v5532_v45  ;;  %12733 = vst [vmem:[#allocation31_spill] sm:$0xff] %v11828_v56  ;;  %12734 = vst [vmem:[#allocation32_spill] sm:$0xff] %v11840_v37  ;;  %v11856_v45 = vld [vmem:[%s12605_s5 + $0x148] sm:$0xff]  ;;  %v11861_v47 = vld [vmem:[%s12605_s5 + $0x150] sm:$0xff] }
0x1783   :  { %v5139_v59 = vpop.permute.xlu0 %5138  ;;  %12736 = vst [vmem:[#allocation34_spill] sm:$0xff] %v11856_v45  ;;  %12737 = vst [vmem:[#allocation35_spill] sm:$0xff] %v11861_v47 }
0x1784   :  { %v11772_v6 = vsel %vm5164_vm3, %v5159_v27, %v5139_v59  ;;  %v5242_v59 = vrot.slane %v5235_v13, %v11769_v63  ;;  %v11834_v7 = vpack.c.bf16 %v5679_v2, %v5672_v16  ;;  %v11874_v16 = vld [vmem:[%s12605_s5 + $0x160] sm:$0xff]  ;;  %v11879_v2 = vsub.f32 %v11790_v30, %v12657_v53 }
0x1787   :  { %v5103_v58 = vpop.permute.xlu0 %5102 }
0x1788   :  { %v5161_v57 = vsel %vm923_vm2, %v11436_v21, %v5103_v58  ;;  %v11804_v21 = vld [vmem:[%s12605_s5 + $0x118] sm:$0xff]  ;;  %v11809_v58 = vld [vmem:[%s12605_s5 + $0x120] sm:$0xff] }
0x1789   :  { %12729 = vst [vmem:[#allocation27_spill] sm:$0xff] %v11804_v21  ;;  %12730 = vst [vmem:[#allocation28_spill] sm:$0xff] %v11809_v58  ;;  %v12659_v13 = vand.u32 4294901760, %v11809_v58 }
0x178b   :  { %v5143_v0 = vpop.permute.xlu0 %5142 }
0x178c   :  { %v11795_v18 = vsel %vm5164_vm3, %v5161_v57, %v5143_v0  ;;  %v11866_v0 = vld [vmem:[%s12605_s5 + $0x158] sm:$0xff] }
0x17cc   :  { %v5064_v32 = vpop.permute.xlu1 %5063 }
0x17cd   :  { %5067 = vst.msk [vmem:[#allocation2 + $0x38] sm:$0xff] %vm923_vm2, %v5064_v32  ;;  %v5658_v32 = vand.u32 4294901760, %v5657_v9  ;;  %v11823_v9 = vld [vmem:[%s12605_s5 + $0x128] sm:$0xff] }
0x17ce   :  { %12732 = vst [vmem:[#allocation30_spill] sm:$0xff] %v11823_v9 }
0x17cf   :  { %v11816_v20 = vpack.c.bf16 %v5665_v55, %v5658_v32 }
0x17d0   :  { %v5137_v22 = vpop.permute.xlu1 %5136 }
0x17d1   :  { %v11777_v44 = vsel %vm5164_vm3, %v5158_v19, %v5137_v22 }
0x17d2   :  { %v5251_v17 = vcombine.low %v5166_v24, %v11777_v44  ;;  %v5267_v29 = vcombine.low %v11777_v44, %v11772_v6 }
0x17d4   :  { %v5258_v5 = vrot.slane %v5251_v17, %v11769_v63  ;;  %v5141_v24 = vpop.permute.xlu1 %5140  ;;  %v11814_v28 = vld [vmem:[#allocation2 + $0x38] sm:$0xff]  ;;  %v5274_v57 = vrot.slane %v5267_v29, %v11769_v63 }
0x17d5   :  { %12731 = vst [vmem:[#allocation29_spill] sm:$0xff] %v11814_v28  ;;  %v11831_v41 = vsel %vm5164_vm3, %v5160_v33, %v5141_v24  ;;  %v5131_v27 = vrot.slane %v11814_v28, 2  ;;  %v12658_v33 = vand.u32 4294901760, %v11804_v21 }
0x17d6   :  { %v5283_v19 = vcombine.low %v11772_v6, %v11831_v41  ;;  %v7634_v22 = vcombine.low %v5242_v59, %v5258_v5  ;;  %v5299_v32 = vcombine.low %v11831_v41, %v11795_v18 }
0x17d7   :  { %5146 = vrot.lane.b32.xlu1 %v5131_v27, %s10490_s10  ;;  %v11887_v24 = vsub.f32 %v11804_v21, %v12658_v33 }
0x17d8   :  { %v5290_v59 = vrot.slane %v5283_v19, %v11769_v63  ;;  %v5105_v17 = vpop.permute.xlu1 %5104  ;;  %v12662_v19 = vand.u32 4294901760, %v11879_v2  ;;  %v5341_v33 = vrot.slane %v7634_v22, %v11769_v63 }
0x17d9   :  { %v12664_v5 = vand.u32 4294901760, %v11887_v24  ;;  %v5162_v53 = vsel %vm923_vm2, %v11639_v43, %v5105_v17  ;;  %v12740_v43 = vand.u32 4294901760, %v11828_v56 }
0x17da   :  { %v7636_v55 = vcombine.low %v5274_v57, %v5290_v59  ;;  %v11907_v57 = vsub.f32 %v11809_v58, %v12659_v13  ;;  %v12738_v59 = vand.u32 4294901760, %v11823_v9  ;;  %v6437_v27 = vsub.f32 %v11879_v2, %v12662_v19 }
0x17db   :  { %v6444_v13 = vsub.f32 %v11887_v24, %v12664_v5  ;;  %v11931_v17 = vsub.f32 %v11828_v56, %v12740_v43 }
0x17dc   :  { %v11912_v29 = vsub.f32 %v11823_v9, %v12738_v59  ;;  %v5145_v62 = vpop.permute.xlu1 %5144  ;;  %v5355_v22 = vrot.slane %v7636_v55, %v11769_v63  ;;  %v6438_v9 = vand.u32 4294901760, %v6437_v27  ;;  %v12741_v43 = vand.u32 4294901760, %v11907_v57 }
0x17dd   :  { %v11924_v28 = vsel %vm5164_vm3, %v5162_v53, %v5145_v62  ;;  %v11941_v62 = vld [vmem:[%s12605_s5 + $0x170] sm:$0xff]  ;;  %v6445_v59 = vand.u32 4294901760, %v6444_v13  ;;  %v5306_v55 = vrot.slane %v5299_v32, %v11769_v63  ;;  %v11958_v13 = vld [vmem:[%s12605_s5 + $0x178] sm:$0xff]  ;;  %v12669_v32 = vand.u32 4294901760, %v11931_v17 }
0x17de   :  { %12739 = vst [vmem:[#allocation36_spill] sm:$0xff] %v11924_v28  ;;  %v5315_v19 = vcombine.low %v11795_v18, %v11924_v28  ;;  %v5364_v58 = vcombine.high %v5341_v33, %v5355_v22  ;;  %v5363_v53 = vcombine.low %v5341_v33, %v5355_v22  ;;  %v6451_v56 = vsub.f32 %v11907_v57, %v12741_v43 }
0x17df   :  { %v12742_v5 = vand.u32 4294901760, %v11912_v29  ;;  %v11960_v27 = vpack.c.bf16 %v6445_v59, %v6438_v9  ;;  %v6465_v61 = vsub.f32 %v11931_v17, %v12669_v32  ;;  %v12746_v9 = vand.u32 4294901760, %v11840_v37 }
0x17e0   :  { %v5322_v39 = vrot.slane %v5315_v19, %v11769_v63  ;;  %v11948_v28 = vand.u32 4294901760, %v5364_v58  ;;  %v11953_v22 = vand.u32 4294901760, %v5363_v53  ;;  %v6452_v43 = vand.u32 4294901760, %v6451_v56 }
0x17e1   :  { %v6458_v33 = vsub.f32 %v11912_v29, %v12742_v5  ;;  %12743 = vst [vmem:[#allocation37_spill] sm:$0xff] %v11960_v27  ;;  %v11976_v56 = vsub.f32 %v11840_v37, %v12746_v9  ;;  %v5281_v32 = vrot.slane %v11831_v41, %v11769_v63 }
0x17e2   :  { %v7638_v60 = vcombine.low %v5306_v55, %v5322_v39  ;;  %v11964_v19 = vsub.f32 %v5364_v58, %v11948_v28  ;;  %v11968_v5 = vsub.f32 %v5363_v53, %v11953_v22  ;;  %v12747_v39 = vand.u32 4294901760, %v11845_v4 }
0x17e3   :  { %v6459_v30 = vand.u32 4294901760, %v6458_v33 }
0x17e4   :  { %12744 = vst [vmem:[#allocation38_spill] sm:$0xff] %v11964_v19  ;;  %12745 = vst [vmem:[#allocation39_spill] sm:$0xff] %v11968_v5  ;;  %v11981_v58 = vsub.f32 %v11845_v4, %v12747_v39  ;;  %v5374_v59 = vrot.slane %v7638_v60, %v11769_v63  ;;  %5896 = vmatprep.mubr.f32.mxu1 %v11964_v19  ;;  %v12671_v55 = vand.u32 4294901760, %v11964_v19  ;;  %v12674_v9 = vand.u32 4294901760, %v11968_v5 }
0x17e5   :  { %v11987_v33 = vpack.c.bf16 %v6459_v30, %v6452_v43  ;;  %5899 = vmatmul.mubr.f32.vlgmr.msra.gmra.mrb[10].mxu1 %v11968_v5  ;;  %v12676_v39 = vand.u32 4294901760, %v11976_v56  ;;  %v6466_v43 = vand.u32 4294901760, %v6465_v61 }
0x17e6   :  { %9902 = vmatpush3.bf16.msra.mxu1 %v11774_v36  ;;  %v5499_v60 = vsub.f32 %v11964_v19, %v12671_v55  ;;  %v5382_v53 = vcombine.high %v5374_v59, %v5374_v59  ;;  %v11999_v30 = vand.u32 4294901760, %v5374_v59  ;;  %v5505_v41 = vsub.f32 %v11968_v5, %v12674_v9 }
0x17e7   :  { %12748 = vst [vmem:[#allocation40_spill] sm:$0xff] %v11987_v33  ;;  %9904 = vmatprep.subr.bf16.mxu1 %v11779_v40  ;;  %v6472_v21 = vsub.f32 %v11976_v56, %v12676_v39  ;;  %v12749_v36 = vand.u32 4294901760, %v11981_v58  ;;  %v12750_v55 = vand.u32 4294901760, %v11856_v45  ;;  %v12751_v9 = vand.u32 4294901760, %v11861_v47 }
0x17e8   :  { %v5500_v61 = vand.u32 4294901760, %v5499_v60  ;;  %v12016_v19 = vand.u32 4294901760, %v5382_v53  ;;  %v12019_v40 = vsub.f32 %v5374_v59, %v11999_v30  ;;  %v12752_v39 = vrot.slane %v11795_v18, %v11769_v63 }
0x17e9   :  { %v6479_v33 = vsub.f32 %v11981_v58, %v12749_v36  ;;  %v12014_v27 = vsub.f32 %v11856_v45, %v12750_v55  ;;  %v12024_v5 = vsub.f32 %v11861_v47, %v12751_v9  ;;  %v5506_v4 = vand.u32 4294901760, %v5505_v41 }
0x17ea   :  { %v7637_v36 = vcombine.low %v5281_v32, %v12752_v39  ;;  %v6473_v37 = vand.u32 4294901760, %v6472_v21  ;;  %9906 = vmatpush3.bf16.msra.mxu1 %v11785_v15  ;;  %5501 = vmatprep.mubr.f32.mxu0 %v5500_v61  ;;  %v12032_v60 = vsub.f32 %v5382_v53, %v12016_v19  ;;  %v12689_v59 = vand.u32 4294901760, %v12019_v40 }
0x17eb   :  { %v12682_v55 = vand.u32 4294901760, %v12014_v27  ;;  %v12681_v45 = vand.u32 4294901760, %v12024_v5  ;;  %v12753_v9 = vand.u32 4294901760, %v11866_v0  ;;  %5507 = vmatmul.mubr.f32.vlgmr.msra.gmra.mrb[16].mxu0 %v5506_v4  ;;  %9908 = vmatprep.subr.bf16.mxu1 %v11799_v51  ;;  %v6480_v21 = vand.u32 4294901760, %v6479_v33 }
0x17ec   :  { %v12042_v18 = vpack.c.bf16 %v6473_v37, %v6466_v43  ;;  %v12754_v32 = vand.u32 4294901760, %v11874_v16  ;;  %9806 = vmatpush3.bf16.msra.mxu0 %v11797_v12  ;;  %5905 = vmatprep.mubr.f32.mxu1 %v12032_v60  ;;  %v12690_v4 = vand.u32 4294901760, %v12032_v60  ;;  %v5520_v51 = vsub.f32 %v12019_v40, %v12689_v59  ;;  %v12798_v59 = vld [vmem:[#allocation13_spill] sm:$0xff] }
0x17ed   :  { %v12039_v47 = vsub.f32 %v11866_v0, %v12753_v9  ;;  %v6486_v15 = vsub.f32 %v12014_v27, %v12682_v55  ;;  %v6493_v37 = vsub.f32 %v12024_v5, %v12681_v45  ;;  %5908 = vmatmul.mubr.f32.gmra.mrb[12].mxu1 %v12019_v40  ;;  %9808 = vmatprep.subr.bf16.mxu0 %v11816_v20  ;;  %v12756_v43 = vand.u32 4294901760, %v11902_v8 }
0x17ee   :  { %v12050_v53 = vsub.f32 %v11874_v16, %v12754_v32  ;;  %v12758_v61 = vand.u32 4294901760, %v11941_v62  ;;  %v12760_v32 = vrot.slane %v11772_v6, %v11769_v63  ;;  %v12761_v45 = vrot.slane %v11777_v44, %v11769_v63  ;;  %9910 = vmatpush3.bf16.msra.mxu1 %v11654_v42  ;;  %6193 = vmatprep.mubr.f32.mxu1 %v11948_v28 }
0x17ef   :  { %v12683_v33 = vand.u32 4294901760, %v12039_v47  ;;  %v6487_v39 = vand.u32 4294901760, %v6486_v15  ;;  %v12068_v41 = vsub.f32 %v11902_v8, %v12756_v43  ;;  %v5514_v15 = vsub.f32 %v12032_v60, %v12690_v4  ;;  %9912 = vmatprep.subr.bf16.mxu1 %v11660_v1  ;;  %v12799_v4 = vld [vmem:[#allocation14_spill] sm:$0xff] }
0x17f0   :  { %12755 = vst [vmem:[#allocation41_spill] sm:$0xff] %v12050_v53  ;;  %v12684_v12 = vand.u32 4294901760, %v12050_v53  ;;  %v12073_v9 = vsub.f32 %v11941_v62, %v12758_v61  ;;  %v7635_v20 = vcombine.low %v12761_v45, %v12760_v32  ;;  %v6494_v43 = vand.u32 4294901760, %v6493_v37  ;;  %9810 = vmatpush3.bf16.msra.mxu0 %v11818_v52 }
0x17f1   :  { %12757 = vst [vmem:[#allocation42_spill] sm:$0xff] %v12068_v41  ;;  %v6500_v61 = vsub.f32 %v12039_v47, %v12683_v33  ;;  %v12090_v6 = vpack.c.bf16 %v6487_v39, %v6480_v21  ;;  %v12687_v42 = vand.u32 4294901760, %v12068_v41  ;;  %v5362_v32 = vrot.slane %v7637_v36, %v11769_v63  ;;  %9812 = vmatprep.subr.bf16.mxu0 %v11834_v7  ;;  %v5206_v7 = vld [vmem:[%s12605_s5 + $0x108] sm:$0xff] }
0x17f2   :  { %12759 = vst [vmem:[#allocation43_spill] sm:$0xff] %v12073_v9  ;;  %v6507_v44 = vsub.f32 %v12050_v53, %v12684_v12  ;;  %v12686_v45 = vand.u32 4294901760, %v12073_v9  ;;  %v5515_v37 = vand.u32 4294901760, %v5514_v15  ;;  %v12762_v33 = vand.u32 4294901760, %v11958_v13  ;;  %9914 = vmatpush3.bf16.msra.mxu1 %v11663_v26 }
0x17f3   :  { %v6501_v55 = vand.u32 4294901760, %v6500_v61  ;;  %v5521_v21 = vand.u32 4294901760, %v5520_v51  ;;  %v6514_v12 = vsub.f32 %v12068_v41, %v12687_v42  ;;  %v5348_v52 = vrot.slane %v7635_v20, %v11769_v63  ;;  %9916 = vmatprep.subr.bf16.mxu1 %v11671_v46  ;;  %v12795_v42 = vld [vmem:[#allocation12_spill] sm:$0xff] }
0x17f4   :  { %v12102_v1 = vsub.f32 %v11958_v13, %v12762_v33  ;;  %v6508_v39 = vand.u32 4294901760, %v6507_v44  ;;  %v6521_v36 = vsub.f32 %v12073_v9, %v12686_v45  ;;  %5516 = vmatprep.mubr.f32.mxu0 %v5515_v37  ;;  %v5205_v33 = vld [vmem:[%s12605_s5 + $0x100] sm:$0xff]  ;;  %9814 = vmatpush3.bf16.msra.mxu0 %v11674_v49 }
0x17f5   :  { %v12119_v51 = vpack.c.bf16 %v6501_v55, %v6494_v43  ;;  %5522 = vmatmul.mubr.f32.gmra.mrb[18].mxu0 %v5521_v21  ;;  %v6515_v61 = vand.u32 4294901760, %v6514_v12  ;;  %v5365_v20 = vcombine.low %v5348_v52, %v5362_v32  ;;  %9816 = vmatprep.subr.bf16.mxu0 %v11685_v48  ;;  %v6319_v55 = vand.u32 4294901760, %v5205_v33 }
0x17f6   :  { %12763 = vst [vmem:[#allocation44_spill] sm:$0xff] %v12102_v1  ;;  %v12685_v15 = vand.u32 4294901760, %v12102_v1  ;;  %5752 = vmatprep.mubr.f32.mxu0 %v11948_v28  ;;  %v6522_v26 = vand.u32 4294901760, %v6521_v36  ;;  %v6322_v43 = vand.u32 4294901760, %v5206_v7  ;;  %9918 = vmatpush3.bf16.msra.mxu1 %v11676_v54  ;;  %v12769_v36 = vld [vmem:[#allocation23_spill] sm:$0xff]  ;;  %v12183_v52 = vpack.c.bf16 %v11976_v56, %v11931_v17 }
0x17f7   :  { %v12129_v37 = vpack.c.bf16 %v6515_v61, %v6508_v39  ;;  %9920 = vmatprep.subr.bf16.mxu1 %v11688_v10  ;;  %v12133_v12 = vsub.f32 %v5205_v33, %v6319_v55  ;;  %v12137_v32 = vand.u32 4294901760, %v5365_v20  ;;  %v12155_v10 = vpack.c.bf16 %v11887_v24, %v11879_v2  ;;  %v12771_v33 = vld [vmem:[#allocation28_spill] sm:$0xff]  ;;  %v12773_v61 = vld [vmem:[#allocation30_spill] sm:$0xff] }
0x17f8   :  { %v6528_v44 = vsub.f32 %v12102_v1, %v12685_v15  ;;  %v12135_v49 = vsub.f32 %v5206_v7, %v6322_v43  ;;  %9818 = vmatpush3.bf16.msra.mxu0 %v11693_v11  ;;  %v12160_v11 = vpack.c.bf16 %v6322_v43, %v6319_v55  ;;  %v12772_v7 = vand.u32 4294901760, %v12771_v33  ;;  %v12783_v33 = vld [vmem:[#allocation33_spill] sm:$0xff] }
0x17f9   :  { %9820 = vmatprep.subr.bf16.mxu0 %v11700_v50  ;;  %v12151_v54 = vsub.f32 %v5365_v20, %v12137_v32  ;;  %v12166_v50 = vpack.c.bf16 %v11912_v29, %v11907_v57  ;;  %v12774_v20 = vand.u32 4294901760, %v12773_v61  ;;  %v12199_v43 = vpack.c.bf16 %v12014_v27, %v11981_v58  ;;  %v12785_v61 = vld [vmem:[#allocation34_spill] sm:$0xff] }
0x17fa   :  { %v6529_v46 = vand.u32 4294901760, %v6528_v44  ;;  %v12145_v48 = vpack.c.bf16 %v12135_v49, %v12133_v12  ;;  %9922 = vmatpush3.bf16.msra.mxu1 %v11690_v35  ;;  %v12775_v44 = vld [vmem:[#allocation25_spill] sm:$0xff]  ;;  %v12249_v45 = vpack.c.bf16 %v12102_v1, %v12073_v9  ;;  %v12802_v1 = vld [vmem:[#allocation15_spill] sm:$0xff]  ;;  %v12803_v9 = vld [vmem:[#allocation16_spill] sm:$0xff] }
0x17fb   :  { %9924 = vmatprep.subr.bf16.mxu1 %v11704_v38  ;;  %v12688_v35 = vand.u32 4294901760, %v12151_v54  ;;  %v12764_v38 = vld [vmem:[#allocation22_spill] sm:$0xff] }
0x17fc   :  { %v12140_v21 = vpack.c.bf16 %v6529_v46, %v6522_v26  ;;  %9822 = vmatpush3.bf16.msra.mxu0 %v11710_v14  ;;  %v12765_v14 = vld [vmem:[#allocation26_spill] sm:$0xff]  ;;  %v12194_v26 = vpack.c.bf16 %v12774_v20, %v12772_v7  ;;  %v12784_v7 = vand.u32 4294901760, %v12783_v33  ;;  %v12786_v20 = vand.u32 4294901760, %v12785_v61  ;;  %v12791_v33 = vld [vmem:[#allocation35_spill] sm:$0xff] }
0x17fd   :  { %9824 = vmatprep.subr.bf16.mxu0 %v11715_v3  ;;  %v12767_v3 = vld [vmem:[#allocation27_spill] sm:$0xff]  ;;  %v12776_v46 = vld [vmem:[#allocation6_spill] sm:$0xff]  ;;  %v12792_v15 = vand.u32 4294901760, %v12791_v33 }
0x17fe   :  { %9926 = vmatpush3.bf16.msra.mxu1 %v11706_v34  ;;  %v12766_v34 = vand.u32 4294901760, %v12765_v14 }
0x17ff   :  { %9928 = vmatprep.subr.bf16.mxu1 %v11722_v25  ;;  %v12768_v25 = vand.u32 4294901760, %v12767_v3 }
0x1800   :  { %9826 = vmatpush3.bf16.msra.mxu0 %v11720_v31  ;;  %v6402_v31 = vsub.f32 %v12151_v54, %v12688_v35 }
0x1801   :  { %9828 = vmatprep.subr.bf16.mxu0 %v11731_v23  ;;  %v12175_v39 = vpack.c.bf16 %v12768_v25, %v12766_v34  ;;  %v12770_v23 = vld [vmem:[#allocation24_spill] sm:$0xff] }
0x1802   :  { %9930 = vmatpush3.bf16.msra.mxu1 %v12764_v38  ;;  %v6403_v55 = vand.u32 4294901760, %v6402_v31  ;;  %v12777_v38 = vld [vmem:[#allocation31_spill] sm:$0xff]  ;;  %v12779_v34 = vld [vmem:[#allocation32_spill] sm:$0xff]  ;;  %v12216_v31 = vpack.c.bf16 %v12039_v47, %v12024_v5 }
0x1803   :  { %9964 = vmatprep.subr.bf16.mxu1 %v12160_v11  ;;  %v12778_v14 = vand.u32 4294901760, %v12777_v38  ;;  %v12780_v3 = vand.u32 4294901760, %v12779_v34  ;;  %v12788_v38 = vld [vmem:[#allocation38_spill] sm:$0xff]  ;;  %v12233_v34 = vpack.c.bf16 %v12068_v41, %v12050_v53  ;;  %v12804_v41 = vld [vmem:[#allocation17_spill] sm:$0xff] }
0x1804   :  { %9830 = vmatpush3.bf16.msra.mxu0 %v12769_v36  ;;  %v12781_v36 = vld [vmem:[#allocation7_spill] sm:$0xff]  ;;  %v12805_v53 = vld [vmem:[#allocation18_spill] sm:$0xff] }
0x1805   :  { %6195 = vmatmul.mubr.f32.vlgmr.msra.gmra.mrb[14].mxu1 %v11953_v22  ;;  %9832 = vmatprep.subr.bf16.mxu0 %v12770_v23  ;;  %v12210_v25 = vpack.c.bf16 %v12780_v3, %v12778_v14  ;;  %v12782_v23 = vld [vmem:[#allocation8_spill] sm:$0xff]  ;;  %v12789_v14 = vand.u32 4294901760, %v12788_v38  ;;  %v12790_v3 = vld [vmem:[#allocation10_spill] sm:$0xff]  ;;  %v12694_v38 = vand.u32 4294901760, %v12135_v49 }
0x1806   :  { %6200 = vmatprep.mubr.f32.mxu1 %v12016_v19  ;;  %9966 = vmatpush3.bf16.msra.mxu1 %v12160_v11 }
0x1807   :  { %9968 = vmatprep.subr.bf16.mxu1 %v12175_v39  ;;  %v6430_v35 = vsub.f32 %v12135_v49, %v12694_v38 }
0x1808   :  { %9834 = vmatpush3.bf16.msra.mxu0 %v12775_v44  ;;  %v12226_v44 = vpack.c.bf16 %v12786_v20, %v12784_v7  ;;  %v12793_v7 = vand.u32 4294901760, %v11866_v0  ;;  %v12691_v20 = vand.u32 4294901760, %v12133_v12  ;;  %v12796_v0 = vand.u32 4294901760, %v11874_v16 }
0x1809   :  { %6202 = vmatmul.mubr.f32.gmra.mrb[16].mxu1 %v11999_v30  ;;  %9868 = vmatprep.subr.bf16.mxu0 %v12776_v46  ;;  %v12801_v16 = vand.u32 4294901760, %v11958_v13  ;;  %v12807_v13 = vld [vmem:[#allocation20_spill] sm:$0xff] }
0x180a   :  { %9095 = vmatprep.mubr.f32.mxu1 %v6403_v55  ;;  %9970 = vmatpush3.bf16.msra.mxu1 %v12175_v39  ;;  %v12787_v55 = vld [vmem:[#allocation9_spill] sm:$0xff]  ;;  %v12242_v61 = vpack.c.bf16 %v12793_v7, %v12792_v15  ;;  %v12797_v15 = vand.u32 4294901760, %v11902_v8  ;;  %v6423_v7 = vsub.f32 %v12133_v12, %v12691_v20  ;;  %v12800_v8 = vand.u32 4294901760, %v11941_v62  ;;  %v12806_v62 = vld [vmem:[#allocation19_spill] sm:$0xff] }
0x180b   :  { %5754 = vmatmul.mubr.f32.vlgmr.msra.gmra.mrb[20].mxu0 %v11953_v22  ;;  %9972 = vmatprep.subr.bf16.mxu1 %v12194_v26  ;;  %v6431_v20 = vand.u32 4294901760, %v6430_v35  ;;  %v12808_v35 = vld [vmem:[#allocation21_spill] sm:$0xff] }
0x180c   :  { %5759 = vmatprep.mubr.f32.mxu0 %v12016_v19  ;;  %9870 = vmatpush3.bf16.msra.mxu0 %v12781_v36  ;;  %v12258_v33 = vpack.c.bf16 %v12797_v15, %v12796_v0  ;;  %v12274_v0 = vpack.c.bf16 %v12801_v16, %v12800_v8  ;;  %v6424_v15 = vand.u32 4294901760, %v6423_v7  ;;  %v12809_v7 = vld [vmem:[#allocation39_spill] sm:$0xff]  ;;  %v12812_v16 = vand.u32 4294901760, %v12019_v40  ;;  %v12813_v40 = vld [vmem:[#allocation29_spill] sm:$0xff] }
0x180d   :  { %9872 = vmatprep.subr.bf16.mxu0 %v12782_v23  ;;  %v12810_v8 = vand.u32 4294901760, %v12809_v7 }
0x180e   :  { %9974 = vmatpush3.bf16.msra.mxu1 %v12194_v26  ;;  %v9995_v38 = vpack.c.bf16 %v6431_v20, %v6424_v15  ;;  %v12811_v20 = vand.u32 4294901760, %v12032_v60  ;;  %v12827_v15 = vand.u32 4294901760, %v11976_v56  ;;  %v12832_v56 = vld [vmem:[#allocation41_spill] sm:$0xff] }
0x180f   :  { %5761 = vmatmul.mubr.f32.gmra.mrb[22].mxu0 %v11999_v30  ;;  %9976 = vmatprep.subr.bf16.mxu1 %v12210_v25 }
0x1810   :  { %9874 = vmatpush3.bf16.msra.mxu0 %v12787_v55  ;;  %6012 = vmatprep.mubr.f32.mxu0 %v12789_v14  ;;  %v12794_v14 = vld [vmem:[#allocation11_spill] sm:$0xff] }
0x1811   :  { %9876 = vmatprep.subr.bf16.mxu0 %v12790_v3 }
0x1812   :  { %9978 = vmatpush3.bf16.msra.mxu1 %v12210_v25 }
0x1813   :  { %9980 = vmatprep.subr.bf16.mxu1 %v12226_v44 }
0x1814   :  { %9878 = vmatpush3.bf16.msra.mxu0 %v12794_v14 }
0x1815   :  { %9880 = vmatprep.subr.bf16.mxu0 %v12795_v42 }
0x1816   :  { %9982 = vmatpush3.bf16.msra.mxu1 %v12226_v44 }
0x1817   :  { %9984 = vmatprep.subr.bf16.mxu1 %v12242_v61 }
0x1818   :  { %9882 = vmatpush3.bf16.msra.mxu0 %v12798_v59 }
0x1819   :  { %9884 = vmatprep.subr.bf16.mxu0 %v12799_v4 }
0x181a   :  { %9986 = vmatpush3.bf16.msra.mxu1 %v12242_v61 }
0x181b   :  { %9988 = vmatprep.subr.bf16.mxu1 %v12258_v33 }
0x181c   :  { %9886 = vmatpush3.bf16.msra.mxu0 %v12802_v1 }
0x181d   :  { %9888 = vmatprep.subr.bf16.mxu0 %v12803_v9 }
0x181e   :  { %9990 = vmatpush3.bf16.msra.mxu1 %v12258_v33 }
0x181f   :  { %9992 = vmatprep.subr.bf16.mxu1 %v12274_v0 }
0x1820   :  { %9890 = vmatpush3.bf16.msra.mxu0 %v12804_v41 }
0x1821   :  { %9892 = vmatprep.subr.bf16.mxu0 %v12805_v53 }
0x1822   :  { %9994 = vmatpush3.bf16.msra.mxu1 %v12274_v0 }
0x1823   :  { %9996 = vmatprep.subr.bf16.mxu1 %v9995_v38 }
0x1824   :  { %9894 = vmatpush3.bf16.msra.mxu0 %v12806_v62 }
0x1825   :  { %9896 = vmatprep.subr.bf16.mxu0 %v12807_v13 }
0x1828   :  { %9898 = vmatpush3.bf16.msra.mxu0 %v12808_v35 }
0x1829   :  { %9932 = vmatprep.subr.bf16.mxu0 %v12776_v46 }
0x182b   :  { %6016 = vmatmul.mubr.f32.vlgmr.msra.gmra.mrb[24].mxu0 %v12810_v8 }
0x182c   :  { %6023 = vmatprep.mubr.f32.mxu0 %v12811_v20  ;;  %9934 = vmatpush3.bf16.msra.mxu0 %v12781_v36  ;;  %v12816_v36 = vmov 0.0  }
0x182d   :  { %9936 = vmatprep.subr.bf16.mxu0 %v12782_v23 }
0x182f   :  { %6027 = vmatmul.mubr.f32.gmra.mrb[26].mxu0 %v12812_v16  ;;  %v12830_v16 = vand.u32 4294901760, %v12024_v5 }
0x1830   :  { %9938 = vmatpush3.bf16.msra.mxu0 %v12787_v55  ;;  %6304 = vmatprep.mubr.f32.mxu0 %v11948_v28  ;;  %v5107_v28 = vpop.permute.xlu0 %5106 }
0x1831   :  { %9940 = vmatprep.subr.bf16.mxu0 %v12790_v3  ;;  %v5163_v60 = vsel %vm923_vm2, %v12813_v40, %v5107_v28  ;;  %v12833_v40 = vand.u32 4294901760, %v12832_v56  ;;  %v7057_v56 = vld [vmem:[%s12607_s7 + $0x20] sm:$0xff] }
0x1834   :  { %9942 = vmatpush3.bf16.msra.mxu0 %v12794_v14 }
0x1835   :  { %9944 = vmatprep.subr.bf16.mxu0 %v12795_v42 }
0x1838   :  { %9946 = vmatpush3.bf16.msra.mxu0 %v12798_v59 }
0x1839   :  { %9948 = vmatprep.subr.bf16.mxu0 %v12799_v4  ;;  %v12814_v4 = vmov 0.0|0.0  }
0x183c   :  { %9950 = vmatpush3.bf16.msra.mxu0 %v12802_v1 }
0x183d   :  { %9952 = vmatprep.subr.bf16.mxu0 %v12803_v9  ;;  %v12815_v9 = vld [vmem:[#allocation36_spill] sm:$0xff] }
0x1840   :  { %9954 = vmatpush3.bf16.msra.mxu0 %v12804_v41  ;;  %v5313_v41 = vrot.slane %v12815_v9, %v11769_v63 }
0x1841   :  { %9956 = vmatprep.subr.bf16.mxu0 %v12805_v53 }
0x1844   :  { %9958 = vmatpush3.bf16.msra.mxu0 %v12806_v62 }
0x1845   :  { %9960 = vmatprep.subr.bf16.mxu0 %v12807_v13 }
0x1848   :  { %9962 = vmatpush3.bf16.msra.mxu0 %v12808_v35 }
0x1849   :  { %v5147_v59 = vpop.permute.xlu1 %5146  ;;  %10155 = vmatprep.subr.bf16.mxu0 %v12814_v4 }
0x184a   :  { %v5172_v42 = vsel %vm5164_vm3, %v5163_v60, %v5147_v59  ;;  %v12834_v60 = vld [vmem:[#allocation42_spill] sm:$0xff] }
0x184b   :  { %v5329_v53 = vrot.slane %v5172_v42, %v11769_v63  ;;  %6306 = vmatmul.mubr.f32.vlgmr.msra.gmra.mrb[28].mxu0 %v11953_v22  ;;  %v12835_v59 = vand.u32 4294901760, %v12834_v60  ;;  %v12836_v42 = vld [vmem:[#allocation43_spill] sm:$0xff] }
0x184c   :  { %6311 = vmatprep.mubr.f32.mxu0 %v12016_v19  ;;  %v12817_v19 = vld [vmem:[#allocation37_spill] sm:$0xff]  ;;  %v12837_v9 = vand.u32 4294901760, %v12836_v42  ;;  %v7059_v60 = vld [vmem:[%s12607_s7 + $0x30] sm:$0xff] }
0x184d   :  { %v7639_v1 = vcombine.low %v5313_v41, %v5329_v53  ;;  %v12838_v41 = vld [vmem:[#allocation44_spill] sm:$0xff]  ;;  %v7090_v42 = vand.u32 4294901760, %v7059_v60 }
0x184e   :  { %v12839_v5 = vand.u32 4294901760, %v12838_v41 }
0x184f   :  { %v5381_v46 = vrot.slane %v7639_v1, %v11769_v63  ;;  %6313 = vmatmul.mubr.f32.gmra.mrb[30].mxu0 %v11999_v30  ;;  %v12818_v30 = vld [vmem:[#allocation40_spill] sm:$0xff] }
0x1850   :  { %9289 = vmatprep.mubr.msk.f32.mxu0 %vm10486_vm1, %v12816_v36  ;;  %v10119_v53 = vpack.c.bf16 %v12839_v5, %v12837_v9 }
0x1851   :  { %v12322_v23 = vand.u32 4294901760, %v5381_v46 }
0x1853   :  { %v12325_v55 = vsub.f32 %v5381_v46, %v12322_v23 }
0x1855   :  { %v6411_v3 = vand.u32 4294901760, %v12325_v55 }
0x1857   :  { %v6412_v14 = vsub.f32 %v12325_v55, %v6411_v3 }
0x1859   :  { %v6413_v22 = vand.u32 4294901760, %v6412_v14 }
0x185b   :  { %9096 = vmatmul.mubr.f32.vlgmr.msra.gmra.mrb[18].mxu1 %v6413_v22 }
0x185c   :  { %9998 = vmatpush3.bf16.msra.mxu1 %v9995_v38  ;;  %9130 = vmatprep.mubr.f32.mxu1 %v12137_v32 }
0x185d   :  { %10000 = vmatprep.subr.bf16.mxu1 %v12817_v19 }
0x1860   :  { %10002 = vmatpush3.bf16.msra.mxu1 %v12817_v19 }
0x1861   :  { %10004 = vmatprep.subr.bf16.mxu1 %v12818_v30 }
0x1864   :  { %10006 = vmatpush3.bf16.msra.mxu1 %v12818_v30 }
0x1865   :  { %10008 = vmatprep.subr.bf16.mxu1 %v12042_v18 }
0x1868   :  { %10010 = vmatpush3.bf16.msra.mxu1 %v12042_v18  ;;  %v12819_v18 = vand.u32 4294901760, %v12151_v54 }
0x1869   :  { %10012 = vmatprep.subr.bf16.mxu1 %v12090_v6 }
0x186c   :  { %10014 = vmatpush3.bf16.msra.mxu1 %v12090_v6  ;;  %v12820_v6 = vand.u32 4294901760, %v12133_v12  ;;  %v12824_v12 = vand.u32 4294901760, %v11907_v57  ;;  %v12828_v57 = vand.u32 4294901760, %v11981_v58  ;;  %v10115_v58 = vpack.c.bf16 %v12835_v59, %v12833_v40  ;;  %v7058_v40 = vld [vmem:[%s12607_s7 + $0x28] sm:$0xff] }
0x186d   :  { %10016 = vmatprep.subr.bf16.mxu1 %v12119_v51  ;;  %v7084_v59 = vand.u32 4294901760, %v7057_v56 }
0x1870   :  { %10018 = vmatpush3.bf16.msra.mxu1 %v12119_v51 }
0x1871   :  { %10020 = vmatprep.subr.bf16.mxu1 %v12129_v37 }
0x1874   :  { %10022 = vmatpush3.bf16.msra.mxu1 %v12129_v37 }
0x1875   :  { %10024 = vmatprep.subr.bf16.mxu1 %v12140_v21 }
0x1878   :  { %10026 = vmatpush3.bf16.msra.mxu1 %v12140_v21 }
0x1879   :  { %10028 = vmatprep.subr.bf16.mxu1 %v12145_v48 }
0x187b   :  { %9131 = vmatmul.mubr.f32.vlgmr.msra.gmra.mrb[18].mxu1 %v12322_v23 }
0x187c   :  { %10030 = vmatpush3.bf16.msra.mxu1 %v12145_v48  ;;  %9165 = vmatprep.mubr.f32.mxu1 %v12151_v54  ;;  %v12822_v48 = vand.u32 4294901760, %v11879_v2  ;;  %v12823_v54 = vand.u32 4294901760, %v11887_v24  ;;  %v12826_v24 = vand.u32 4294901760, %v11931_v17  ;;  %v12831_v17 = vand.u32 4294901760, %v12039_v47 }
0x187d   :  { %10032 = vmatprep.subr.bf16.mxu1 %v12155_v10 }
0x187e   :  { %v10103_v62 = vpack.c.bf16 %v12827_v15, %v12826_v24  ;;  %v10111_v28 = vpack.c.bf16 %v12831_v17, %v12830_v16 }
0x1880   :  { %10034 = vmatpush3.bf16.msra.mxu1 %v12155_v10  ;;  %v10095_v10 = vpack.c.bf16 %v12823_v54, %v12822_v48 }
0x1881   :  { %10036 = vmatprep.subr.bf16.mxu1 %v12166_v50 }
0x1884   :  { %10038 = vmatpush3.bf16.msra.mxu1 %v12166_v50 }
0x1885   :  { %10040 = vmatprep.subr.bf16.mxu1 %v12183_v52 }
0x1888   :  { %10042 = vmatpush3.bf16.msra.mxu1 %v12183_v52 }
0x1889   :  { %10044 = vmatprep.subr.bf16.mxu1 %v12199_v43 }
0x188c   :  { %10046 = vmatpush3.bf16.msra.mxu1 %v12199_v43 }
0x188d   :  { %10048 = vmatprep.subr.bf16.mxu1 %v12216_v31 }
0x1890   :  { %10050 = vmatpush3.bf16.msra.mxu1 %v12216_v31 }
0x1891   :  { %10052 = vmatprep.subr.bf16.mxu1 %v12233_v34 }
0x1894   :  { %10054 = vmatpush3.bf16.msra.mxu1 %v12233_v34 }
0x1895   :  { %10056 = vmatprep.subr.bf16.mxu1 %v12249_v45 }
0x1898   :  { %10058 = vmatpush3.bf16.msra.mxu1 %v12249_v45  ;;  %v12821_v45 = vand.u32 4294901760, %v12135_v49  ;;  %v12825_v49 = vand.u32 4294901760, %v11912_v29  ;;  %v12829_v29 = vand.u32 4294901760, %v12014_v27  ;;  %v7633_v27 = vld [vmem:[%s12606_s6] ss:$0 sm:$0xff] }
0x1899   :  { %10060 = vmatprep.subr.bf16.mxu1 %v12160_v11  ;;  %v5389_v47 = vcombine.low %v7633_v27, %v7633_v27  ;;  %v7060_v27 = vld [vmem:[%s12607_s7 + $0x38] sm:$0xff] }
0x189a   :  { %v10091_v51 = vpack.c.bf16 %v12821_v45, %v12820_v6  ;;  %v10099_v52 = vpack.c.bf16 %v12825_v49, %v12824_v12  ;;  %v10107_v35 = vpack.c.bf16 %v12829_v29, %v12828_v57 }
0x189b   :  { %9166 = vmatmul.mubr.f32.vlgmr.msra.gmra.mrb[18].mxu1 %v12325_v55  ;;  %v5396_v1 = vrot.slane %v5389_v47, %v11769_v63  ;;  %v12479_v47 = vsub.f32 %v7057_v56, %v7084_v59 }
0x189c   :  { %10062 = vmatpush3.bf16.msra.mxu1 %v12160_v11  ;;  %9200 = vmatprep.mubr.f32.mxu1 %v12819_v18 }
0x189d   :  { %10064 = vmatprep.subr.bf16.mxu1 %v12175_v39  ;;  %v5397_v14 = vcombine.low %v5396_v1, %v5396_v1 }
0x18a0   :  { %10066 = vmatpush3.bf16.msra.mxu1 %v12175_v39 }
0x18a1   :  { %10068 = vmatprep.subr.bf16.mxu1 %v12194_v26 }
0x18a4   :  { %10070 = vmatpush3.bf16.msra.mxu1 %v12194_v26 }
0x18a5   :  { %10072 = vmatprep.subr.bf16.mxu1 %v12210_v25 }
0x18a8   :  { %10074 = vmatpush3.bf16.msra.mxu1 %v12210_v25 }
0x18a9   :  { %10076 = vmatprep.subr.bf16.mxu1 %v12226_v44 }
0x18ac   :  { %10078 = vmatpush3.bf16.msra.mxu1 %v12226_v44 }
0x18ad   :  { %10080 = vmatprep.subr.bf16.mxu1 %v12242_v61 }
0x18b0   :  { %10082 = vmatpush3.bf16.msra.mxu1 %v12242_v61 }
0x18b1   :  { %10084 = vmatprep.subr.bf16.mxu1 %v12258_v33 }
0x18b4   :  { %10086 = vmatpush3.bf16.msra.mxu1 %v12258_v33 }
0x18b5   :  { %10088 = vmatprep.subr.bf16.mxu1 %v12274_v0 }
0x18b8   :  { %10090 = vmatpush3.bf16.msra.mxu1 %v12274_v0  ;;  %v8085_v37 = vpop.f32.mrb[10].mxu1 }
0x18b9   :  { %v8086_v21 = vpop.f32.mrb[11].mxu1  ;;  %10092 = vmatprep.subr.bf16.mxu1 %v10091_v51 }
0x18ba   :  { %v8087_v50 = vadd.f32 %v8086_v21, %v8085_v37 }
0x18bb   :  { %9201 = vmatmul.mubr.f32.vlgmr.msra.gmra.mrb[18].mxu1 %v6411_v3 }
0x18bc   :  { %10094 = vmatpush3.bf16.msra.mxu1 %v10091_v51  ;;  %9235 = vmatprep.mubr.f32.mxu1 %v12137_v32 }
0x18bd   :  { %10096 = vmatprep.subr.bf16.mxu1 %v10095_v10 }
0x18be   :  { %v8009_v43 = vpop.f32.mrb[16].mxu0 }
0x18bf   :  { %v8010_v31 = vpop.f32.mrb[17].mxu0 }
0x18c0   :  { %v8011_v34 = vadd.f32 %v8010_v31, %v8009_v43  ;;  %10098 = vmatpush3.bf16.msra.mxu1 %v10095_v10  ;;  %v8088_v38 = vpop.f32.mrb[12].mxu1 }
0x18c1   :  { %v8089_v2 = vpop.f32.mrb[13].mxu1  ;;  %10100 = vmatprep.subr.bf16.mxu1 %v10099_v52 }
0x18c2   :  { %v8090_v13 = vadd.f32 %v8089_v2, %v8088_v38  ;;  %v5509_v45 = vadd.f32 %v8011_v34, %v5397_v14 }
0x18c4   :  { %10102 = vmatpush3.bf16.msra.mxu1 %v10099_v52 }
0x18c5   :  { %10104 = vmatprep.subr.bf16.mxu1 %v10103_v62 }
0x18c8   :  { %v8012_v7 = vpop.f32.mrb[18].mxu0  ;;  %10106 = vmatpush3.bf16.msra.mxu1 %v10103_v62 }
0x18c9   :  { %v8013_v8 = vpop.f32.mrb[19].mxu0  ;;  %10108 = vmatprep.subr.bf16.mxu1 %v10107_v35 }
0x18ca   :  { %v8014_v20 = vadd.f32 %v8013_v8, %v8012_v7  ;;  %v7055_v7 = vld [vmem:[%s12607_s7 + $0x10] sm:$0xff]  ;;  %v7056_v8 = vld [vmem:[%s12607_s7 + $0x18] sm:$0xff] }
0x18cb   :  { %v7078_v17 = vand.u32 4294901760, %v7055_v7 }
0x18cc   :  { %10110 = vmatpush3.bf16.msra.mxu1 %v10107_v35  ;;  %v5524_v54 = vadd.f32 %v8014_v20, %v5396_v1 }
0x18cd   :  { %10112 = vmatprep.subr.bf16.mxu1 %v10111_v28  ;;  %v12475_v41 = vsub.f32 %v7055_v7, %v7078_v17 }
0x18d0   :  { %10114 = vmatpush3.bf16.msra.mxu1 %v10111_v28  ;;  %v7081_v28 = vand.u32 4294901760, %v7056_v8 }
0x18d1   :  { %10116 = vmatprep.subr.bf16.mxu1 %v10115_v58 }
0x18d2   :  { %v12473_v9 = vpack.c.bf16 %v7081_v28, %v7078_v17  ;;  %v12477_v5 = vsub.f32 %v7056_v8, %v7081_v28 }
0x18d4   :  { %10118 = vmatpush3.bf16.msra.mxu1 %v10115_v58  ;;  %v7087_v58 = vand.u32 4294901760, %v7058_v40 }
0x18d5   :  { %10120 = vmatprep.subr.bf16.mxu1 %v10119_v53 }
0x18d6   :  { %v12481_v1 = vsub.f32 %v7058_v40, %v7087_v58 }
0x18d8   :  { %v8161_v46 = vpop.f32.mrb[14].mxu1  ;;  %10122 = vmatpush3.bf16.msra.mxu1 %v10119_v53  ;;  %v7093_v53 = vand.u32 4294901760, %v7060_v27 }
0x18d9   :  { %v8162_v55 = vpop.f32.mrb[15].mxu1  ;;  %10124 = vmatprep.subr.bf16.mxu1 %v12160_v11 }
0x18da   :  { %v8163_v3 = vadd.f32 %v8162_v55, %v8161_v46  ;;  %v12483_v46 = vsub.f32 %v7059_v60, %v7090_v42  ;;  %v12486_v55 = vpack.c.bf16 %v7087_v58, %v7084_v59  ;;  %v12492_v14 = vpack.c.bf16 %v7093_v53, %v7090_v42 }
0x18db   :  { %9236 = vmatmul.mubr.f32.vlgmr.msra.gmra.mrb[18].mxu1 %v12322_v23 }
0x18dc   :  { %v8164_v22 = vpop.f32.mrb[16].mxu1  ;;  %10126 = vmatpush3.bf16.msra.mxu1 %v12160_v11  ;;  %9270 = vmatprep.mubr.f32.mxu1 %v12137_v32 }
0x18dd   :  { %v8165_v19 = vpop.f32.mrb[17].mxu1  ;;  %10128 = vmatprep.subr.bf16.mxu1 %v12175_v39 }
0x18de   :  { %v8166_v30 = vadd.f32 %v8165_v19, %v8164_v22  ;;  %v8047_v18 = vpop.f32.mrb[20].mxu0 }
0x18df   :  { %v8048_v6 = vpop.f32.mrb[21].mxu0 }
0x18e0   :  { %v8049_v51 = vadd.f32 %v8048_v6, %v8047_v18  ;;  %10130 = vmatpush3.bf16.msra.mxu1 %v12175_v39 }
0x18e1   :  { %10132 = vmatprep.subr.bf16.mxu1 %v12194_v26 }
0x18e2   :  { %v5756_v37 = vadd.f32 %v8049_v51, %v5509_v45  ;;  %v8050_v21 = vpop.f32.mrb[22].mxu0  ;;  %v7171_v51 = vand.u32 4294901760, %v12475_v41 }
0x18e3   :  { %v8051_v48 = vpop.f32.mrb[23].mxu0 }
0x18e4   :  { %v8052_v10 = vadd.f32 %v8051_v48, %v8050_v21  ;;  %10134 = vmatpush3.bf16.msra.mxu1 %v12194_v26  ;;  %v5901_v32 = vadd.f32 %v8087_v50, %v5756_v37  ;;  %v7178_v37 = vand.u32 4294901760, %v12477_v5  ;;  %v7172_v48 = vsub.f32 %v12475_v41, %v7171_v51 }
0x18e5   :  { %10136 = vmatprep.subr.bf16.mxu1 %v12210_v25 }
0x18e6   :  { %v5763_v11 = vadd.f32 %v8052_v10, %v5524_v54  ;;  %v7179_v54 = vsub.f32 %v12477_v5, %v7178_v37  ;;  %v7173_v10 = vand.u32 4294901760, %v7172_v48 }
0x18e8   :  { %10138 = vmatpush3.bf16.msra.mxu1 %v12210_v25  ;;  %v5910_v12 = vadd.f32 %v8090_v13, %v5763_v11  ;;  %v7054_v13 = vld [vmem:[%s12607_s7 + $0x8] sm:$0xff]  ;;  %v7185_v11 = vand.u32 4294901760, %v12479_v47 }
0x18e9   :  { %10140 = vmatprep.subr.bf16.mxu1 %v12226_v44  ;;  %v7075_v29 = vand.u32 4294901760, %v7054_v13 }
0x18eb   :  { %v12458_v16 = vsub.f32 %v7054_v13, %v7075_v29 }
0x18ec   :  { %10142 = vmatpush3.bf16.msra.mxu1 %v12226_v44 }
0x18ed   :  { %10144 = vmatprep.subr.bf16.mxu1 %v12242_v61  ;;  %v7164_v19 = vand.u32 4294901760, %v12458_v16 }
0x18ef   :  { %v7165_v18 = vsub.f32 %v12458_v16, %v7164_v19 }
0x18f0   :  { %10146 = vmatpush3.bf16.msra.mxu1 %v12242_v61 }
0x18f1   :  { %10148 = vmatprep.subr.bf16.mxu1 %v12258_v33  ;;  %v7166_v45 = vand.u32 4294901760, %v7165_v18 }
0x18f4   :  { %10150 = vmatpush3.bf16.msra.mxu1 %v12258_v33 }
0x18f5   :  { %10152 = vmatprep.subr.bf16.mxu1 %v12274_v0 }
0x18f8   :  { %10154 = vmatpush3.bf16.msra.mxu1 %v12274_v0 }
0x18fb   :  { %9271 = vmatmul.mubr.f32.vlgmr.msra.gmra.mrb[18].mxu1 %v12322_v23  ;;  %v7053_v23 = vld [vmem:[%s12607_s7] sm:$0xff] }
0x18fc   :  { %v7072_v57 = vand.u32 4294901760, %v7053_v23 }
0x18fe   :  { %v8123_v39 = vpop.f32.mrb[24].mxu0  ;;  %v12447_v35 = vpack.c.bf16 %v7075_v29, %v7072_v57  ;;  %v12456_v20 = vsub.f32 %v7053_v23, %v7072_v57  ;;  %v12527_v57 = vpack.c.bf16 %v7178_v37, %v7171_v51 }
0x18ff   :  { %v8124_v26 = vpop.f32.mrb[25].mxu0 }
0x1900   :  { %v8125_v25 = vadd.f32 %v8124_v26, %v8123_v39  ;;  %10157 = vmatpush3.bf16.msra.mxu0 %v12447_v35  ;;  %v7157_v22 = vand.u32 4294901760, %v12456_v20  ;;  %v7186_v26 = vsub.f32 %v12479_v47, %v7185_v11 }
0x1901   :  { %10158 = vmatprep.subr.bf16.mxu0 %v12814_v4 }
0x1902   :  { %v6018_v50 = vadd.f32 %v8125_v25, %v5901_v32  ;;  %v8126_v49 = vpop.f32.mrb[26].mxu0  ;;  %v7180_v32 = vand.u32 4294901760, %v7179_v54  ;;  %v12525_v13 = vpack.c.bf16 %v7164_v19, %v7157_v22 }
0x1903   :  { %v8127_v44 = vpop.f32.mrb[27].mxu0 }
0x1904   :  { %v8128_v52 = vadd.f32 %v8127_v44, %v8126_v49  ;;  %v6197_v43 = vadd.f32 %v8163_v3, %v6018_v50  ;;  %10160 = vmatpush3.bf16.msra.mxu0 %v12473_v9  ;;  %v12488_v3 = vsub.f32 %v7060_v27, %v7093_v53  ;;  %v12509_v39 = vpack.c.bf16 %v7180_v32, %v7173_v10 }
0x1905   :  { %10161 = vmatprep.subr.bf16.mxu0 %v12814_v4  ;;  %v7187_v50 = vand.u32 4294901760, %v7186_v26  ;;  %v7199_v44 = vand.u32 4294901760, %v12483_v46 }
0x1906   :  { %v6029_v31 = vadd.f32 %v8128_v52, %v5910_v12  ;;  %v7192_v12 = vand.u32 4294901760, %v12481_v1  ;;  %v7206_v52 = vand.u32 4294901760, %v12488_v3  ;;  %v10189_v23 = vpack.c.bf16 %v12488_v3, %v12483_v46 }
0x1908   :  { %v6204_v61 = vadd.f32 %v8166_v30, %v6029_v31  ;;  %10163 = vmatpush3.bf16.msra.mxu0 %v12486_v55  ;;  %v7158_v30 = vsub.f32 %v12456_v20, %v7157_v22  ;;  %v7193_v25 = vsub.f32 %v12481_v1, %v7192_v12  ;;  %v7200_v31 = vsub.f32 %v12483_v46, %v7199_v44 }
0x1909   :  { %10164 = vmatprep.subr.bf16.mxu0 %v12814_v4  ;;  %v12529_v29 = vpack.c.bf16 %v7192_v12, %v7185_v11  ;;  %v12531_v7 = vpack.c.bf16 %v7206_v52, %v7199_v44 }
0x190a   :  { %v7159_v6 = vand.u32 4294901760, %v7158_v30  ;;  %v7194_v49 = vand.u32 4294901760, %v7193_v25 }
0x190c   :  { %10166 = vmatpush3.bf16.msra.mxu0 %v12492_v14  ;;  %v12503_v21 = vpack.c.bf16 %v7166_v45, %v7159_v6 }
0x190d   :  { %10167 = vmatprep.subr.bf16.mxu0 %v12814_v4 }
0x191e   :  { %v8199_v34 = vpop.f32.mrb[28].mxu0 }
0x191f   :  { %v8200_v38 = vpop.f32.mrb[29].mxu0 }
0x1920   :  { %v8201_v2 = vadd.f32 %v8200_v38, %v8199_v34  ;;  %v7201_v34 = vand.u32 4294901760, %v7200_v31 }
0x1922   :  { %v8202_v33 = vpop.f32.mrb[30].mxu0  ;;  %v12437_v24 = vadd.f32 %v8201_v2, %v6197_v43  ;;  %v10174_v43 = vpack.c.bf16 %v7194_v49, %v7187_v50 }
0x1923   :  { %v8203_v15 = vpop.f32.mrb[31].mxu0 }
0x1924   :  { %v8204_v0 = vadd.f32 %v8203_v15, %v8202_v33  ;;  %v10180_v33 = vpack.c.bf16 %v12458_v16, %v12456_v20  ;;  %v10183_v15 = vpack.c.bf16 %v12477_v5, %v12475_v41 }
0x1926   :  { %v12439_v62 = vadd.f32 %v8204_v0, %v6204_v61  ;;  %v7207_v61 = vsub.f32 %v12488_v3, %v7206_v52  ;;  %v10186_v0 = vpack.c.bf16 %v12481_v1, %v12479_v47 }
0x1928   :  { %v7208_v38 = vand.u32 4294901760, %v7207_v61 }
0x192a   :  { %v10177_v2 = vpack.c.bf16 %v7208_v38, %v7201_v34 }
0x19ce   :  { %v9272_v8 = vpop.f32.mrb[18].mxu1 }
0x19cf   :  { %v10236_v20 = vadd.f32 %v9272_v8, %v12439_v62  ;;  %v6992_v16 = vpop.f32.mrb[19].mxu1 }
0x19d0   :  { %v10237_v17 = vadd.f32 %v6992_v16, %v12437_v24 }
0x19d1   :  { %v7027_v28 = vrot.slane %v10236_v20, %v11769_v63 }
0x19d2   :  { %v7004_v56 = vcombine.high %v10237_v17, %v10237_v17  ;;  %v7011_v40 = vrot.slane %v10237_v17, %v11769_v63 }
0x19d3   :  { %v7028_v60 = vcombine.high %v7027_v28, %v7027_v28  ;;  %10449 = vtanh.f32 %v7027_v28 }
0x19d4   :  { %v7018_v59 = vrot.slane %v7004_v56, %v11769_v63  ;;  %v7019_v58 = vcombine.high %v7011_v40, %v7011_v40  ;;  %10451 = vtanh.f32 %v7011_v40 }
0x19d5   :  { %10453 = vtanh.f32 %v7028_v60 }
0x19d6   :  { %v7020_v27 = vcombine.high %v7018_v59, %v7018_v59  ;;  %10455 = vtanh.f32 %v7019_v58 }
0x19d7   :  { %10457 = vtanh.f32 %v7018_v59 }
0x19d8   :  { %10459 = vtanh.f32 %v7020_v27 }
0x19dd   :  { %v10450_v62 = vpop.eup %10449 }
0x19de   :  { %v10452_v42 = vpop.eup %10451  ;;  %v7046_v24 = vsel %vm7041_vm4, %v10450_v62, -inf }
0x19df   :  { %v10454_v41 = vpop.eup %10453  ;;  %v7042_v5 = vsel %vm7041_vm4, %v10452_v42, -inf }
0x19e0   :  { %v10456_v53 = vpop.eup %10455  ;;  %v7048_v47 = vsel %vm7041_vm4, %v10454_v41, -inf  ;;  %v7047_v1 = vmax.f32 %v7042_v5, %v7046_v24 }
0x19e1   :  { %v10458_v22 = vpop.eup %10457  ;;  %v7043_v19 = vsel %vm7041_vm4, %v10456_v53, -inf }
0x19e2   :  { %v10460_v30 = vpop.eup %10459  ;;  %v7049_v63 = vmax.f32 %v7043_v19, %v7048_v47  ;;  %v7044_v18 = vsel %vm7041_vm4, %v10458_v22, -inf }
0x19e3   :  { %v7045_v6 = vsel %vm7041_vm4, %v10460_v30, -inf }
0x19e4   :  { %v7050_v45 = vmax.f32 %v7047_v1, %v7049_v63  ;;  %v7051_v51 = vmax.f32 %v7044_v18, %v7045_v6 }
0x19e6   :  { %v7052_v37 = vmax.f32 %v7050_v45, %v7051_v51 }
0x19e8   :  { %v7069_v48 = vsel %vm56_vm0, %v7052_v37, 0 }
0x19e9   :  { %v7144_v54 = vand.u32 4294901760, %v7069_v48 }
0x19eb   :  { %v7145_v10 = vsub.f32 %v7069_v48, %v7144_v54 }
0x19ed   :  { %v7146_v32 = vand.u32 4294901760, %v7145_v10 }
0x19ef   :  { %v7147_v11 = vsub.f32 %v7145_v10, %v7146_v32 }
0x19f1   :  { %v7148_v12 = vand.u32 4294901760, %v7147_v11 }
0x19f3   :  { %9290 = vmatmul.mubr.f32.vlgmr.msra.gmra.mrb[32].mxu0 %v7148_v12 }
0x19f4   :  { %10169 = vmatpush3.bf16.msra.mxu0 %v12503_v21  ;;  %9308 = vmatprep.mubr.msk.f32.mxu0 %vm10486_vm1, %v12816_v36 }
0x19f5   :  { %10170 = vmatprep.subr.bf16.mxu0 %v12814_v4 }
0x19f8   :  { %10172 = vmatpush3.bf16.msra.mxu0 %v12509_v39 }
0x19f9   :  { %10173 = vmatprep.subr.bf16.mxu0 %v12814_v4 }
0x19fc   :  { %10175 = vmatpush3.bf16.msra.mxu0 %v10174_v43 }
0x19fd   :  { %10176 = vmatprep.subr.bf16.mxu0 %v12814_v4 }
0x1a00   :  { %10178 = vmatpush3.bf16.msra.mxu0 %v10177_v2 }
0x1a01   :  { %10179 = vmatprep.subr.bf16.mxu0 %v12814_v4 }
0x1a03   :  { %9309 = vmatmul.mubr.f32.vlgmr.msra.gmra.mrb[32].mxu0 %v7144_v54 }
0x1a04   :  { %10181 = vmatpush3.bf16.msra.mxu0 %v10180_v33  ;;  %9327 = vmatprep.mubr.msk.f32.mxu0 %vm10486_vm1, %v12816_v36 }
0x1a05   :  { %10182 = vmatprep.subr.bf16.mxu0 %v12814_v4 }
0x1a08   :  { %10184 = vmatpush3.bf16.msra.mxu0 %v10183_v15 }
0x1a09   :  { %10185 = vmatprep.subr.bf16.mxu0 %v12814_v4 }
0x1a0c   :  { %10187 = vmatpush3.bf16.msra.mxu0 %v10186_v0 }
0x1a0d   :  { %10188 = vmatprep.subr.bf16.mxu0 %v12814_v4 }
0x1a10   :  { %10190 = vmatpush3.bf16.msra.mxu0 %v10189_v23 }
0x1a11   :  { %10191 = vmatprep.subr.bf16.mxu0 %v12814_v4 }
0x1a13   :  { %9328 = vmatmul.mubr.f32.vlgmr.msra.gmra.mrb[32].mxu0 %v7145_v10 }
0x1a14   :  { %10193 = vmatpush3.bf16.msra.mxu0 %v12447_v35  ;;  %9346 = vmatprep.mubr.msk.f32.mxu0 %vm10486_vm1, %v12816_v36 }
0x1a15   :  { %10194 = vmatprep.subr.bf16.mxu0 %v12814_v4 }
0x1a18   :  { %10196 = vmatpush3.bf16.msra.mxu0 %v12473_v9 }
0x1a19   :  { %10197 = vmatprep.subr.bf16.mxu0 %v12814_v4 }
0x1a1c   :  { %10199 = vmatpush3.bf16.msra.mxu0 %v12486_v55 }
0x1a1d   :  { %10200 = vmatprep.subr.bf16.mxu0 %v12814_v4 }
0x1a20   :  { %10202 = vmatpush3.bf16.msra.mxu0 %v12492_v14 }
0x1a21   :  { %10203 = vmatprep.subr.bf16.mxu0 %v12814_v4 }
0x1a23   :  { %9347 = vmatmul.mubr.f32.vlgmr.msra.gmra.mrb[32].mxu0 %v7146_v32 }
0x1a24   :  { %10205 = vmatpush3.bf16.msra.mxu0 %v12525_v13  ;;  %9365 = vmatprep.mubr.msk.f32.mxu0 %vm10486_vm1, %v12816_v36 }
0x1a25   :  { %10206 = vmatprep.subr.bf16.mxu0 %v12814_v4 }
0x1a28   :  { %10208 = vmatpush3.bf16.msra.mxu0 %v12527_v57 }
0x1a29   :  { %10209 = vmatprep.subr.bf16.mxu0 %v12814_v4 }
0x1a2c   :  { %10211 = vmatpush3.bf16.msra.mxu0 %v12529_v29 }
0x1a2d   :  { %10212 = vmatprep.subr.bf16.mxu0 %v12814_v4 }
0x1a30   :  { %10214 = vmatpush3.bf16.msra.mxu0 %v12531_v7 }
0x1a31   :  { %10215 = vmatprep.subr.bf16.mxu0 %v12814_v4 }
0x1a33   :  { %9366 = vmatmul.mubr.f32.vlgmr.msra.gmra.mrb[32].mxu0 %v7144_v54 }
0x1a34   :  { %10217 = vmatpush3.bf16.msra.mxu0 %v12447_v35  ;;  %9384 = vmatprep.mubr.msk.f32.mxu0 %vm10486_vm1, %v12816_v36  ;;  %v7640_v35 = vld [vmem:[%s12608_s8] ss:$0 sm:$0xff] }
0x1a35   :  { %10218 = vmatprep.subr.bf16.mxu0 %v12814_v4 }
0x1a38   :  { %10220 = vmatpush3.bf16.msra.mxu0 %v12473_v9 }
0x1a39   :  { %10221 = vmatprep.subr.bf16.mxu0 %v12814_v4 }
0x1a3c   :  { %10223 = vmatpush3.bf16.msra.mxu0 %v12486_v55 }
0x1a3d   :  { %10224 = vmatprep.subr.bf16.mxu0 %v12814_v4 }
0x1a40   :  { %10226 = vmatpush3.bf16.msra.mxu0 %v12492_v14 }
0x1a43   :  { %9385 = vmatmul.mubr.f32.vlgmr.msra.gmra.mrb[32].mxu0 %v7144_v54 }
0x1b16   :  { %v7604_v36 = vpop.f32.mrb[32].mxu0 }
0x1b17   :  { %v10238_v46 = vadd.f32 %v7640_v35, %v7604_v36  ;;  %v9386_v3 = vpop.f32.mrb[33].mxu0 }
0x1b19   :  { %7609 = vst.msk [vmem:[#allocation3] sm:$0x3] %vm7608_vm5, %v10238_v46 }
0x1b1a   :  { %10472 = shalt.err (!%p10469_p4)
}
0x1b1b   :  { %s10473_s18 = scalar_lea.hbm %s12609_s9, 32 }
0x1b1c   :  { %p10474_p5 = scmp.ne.s32.totalorder %s12609_s9, %s10473_s18  ;;  %p10477_p6 = scmp.lt.u32.totalorder %s10473_s18, %s12609_s9 }
0x1b1e   :  { %p10479_p7 = pnand %p10477_p6, %p10474_p5 }
0x1b20   :  { %10482 = shalt.err (!%p10479_p7)
}
0x1b21   :  { %7619 = dma.vmem_to_hbm [thread:$0]  %s7617_s16, 32, %s12609_s9, [#allocation4]  }
0x1b22   :  { %10483 = dma.done.wait [#allocation4], 32  }
0x1b23   :  { %10484 = vsyncadd [#allocation4], 4294967264 }
0x1b24   :  { %7623 = vsyncpa [#allocation4], 1 }

</bundles_post_ra>
